<compile_context>
chip_gen: v7x
topology: tpu7x:2x2x1
jax: 0.10.0
libtpu: 0.0.40
codegen_flags: <defaults>
</compile_context>

<pallas_src>
import functools

import jax
import jax.numpy as jnp
from jax.experimental import pallas as pl
from jax.experimental.pallas import tpu as pltpu

_LANE = 128                      # lane-dense output padding target
_ROW_TILE_TARGET = 512           # per perf review: 512 rows per grid step
_K_TILE_TARGET = 512             # K-reduction tile (only kicks in for deep layers)
_VMEM_LIMIT = 48 * 1024 * 1024   # above the 32 MiB default, below v7x's 64 MiB


def _round_up(a, b):
    return (a + b - 1) // b * b


def _pick_tile(n, target):
    """Largest multiple of 8 <= target that divides n; fallback to padded tile."""
    t = min(target, _round_up(n, 8))
    for cand in range(t, 7, -8):
        if n % cand == 0:
            return cand
    return t


# ----------------------------- Pallas kernels ------------------------------ #

def _matmul_stats_kernel(x_ref, w_ref, y_ref, sum_ref, sq_ref):
    # Pass 1 of BN:  y_tile = x_tile @ w  (bf16 operands, f32 accumulate on MXU),
    # plus per-column sum / sum-of-squares accumulated into resident (1, N) outputs.
    i = pl.program_id(0)
    y = jnp.dot(x_ref[...], w_ref[...], preferred_element_type=jnp.float32)
    y_ref[...] = y

    @pl.when(i == 0)
    def _():
        sum_ref[...] = jnp.zeros_like(sum_ref)
        sq_ref[...] = jnp.zeros_like(sq_ref)

    sum_ref[...] += jnp.sum(y, axis=0, keepdims=True)
    sq_ref[...] += jnp.sum(y * y, axis=0, keepdims=True)


def _bn_relu_kernel(y_ref, sum_ref, sq_ref, gamma_ref, beta_ref, o_ref, *, count, eps):
    # Pass 2 of BN: normalize with batch statistics (biased var) + affine + ReLU.
    y = y_ref[...]
    mean = sum_ref[...] * (1.0 / count)
    var = sq_ref[...] * (1.0 / count) - mean * mean
    inv = jax.lax.rsqrt(var + eps)
    o_ref[...] = jnp.maximum((y - mean) * inv * gamma_ref[...] + beta_ref[...], 0.0)


def _ffc_out_kernel(p_ref, s_ref, wp_ref, ws_ref, o_ref):
    # Fused layer-output matmul:  out = patches @ Wspat + spec @ Wspec.
    # grid = (row tiles [parallel], K tiles of the patches [arbitrary]);
    # the f32 output block is resident across the K axis and used as accumulator.
    kt = pl.program_id(1)

    @pl.when(kt == 0)
    def _():
        o_ref[...] = jnp.dot(s_ref[...], ws_ref[...], preferred_element_type=jnp.float32)

    o_ref[...] += jnp.dot(p_ref[...], wp_ref[...], preferred_element_type=jnp.float32)


# ----------------------------- kernel wrappers ------------------------------ #

def pallas_matmul_stats(x, w):
    """Tiled (M, K) @ (K, N) matmul that also returns per-column [sum, sum_sq]."""
    M, K = x.shape
    _, N = w.shape
    tm = _pick_tile(M, _ROW_TILE_TARGET)
    Mp = _round_up(M, tm)
    if Mp != M:
        x = jnp.pad(x, ((0, Mp - M), (0, 0)))   # zero rows -> contribute 0 to stats
    y, s, sq = pl.pallas_call(
        _matmul_stats_kernel,
        out_shape=(jax.ShapeDtypeStruct((Mp, N), jnp.float32),
                   jax.ShapeDtypeStruct((1, N), jnp.float32),
                   jax.ShapeDtypeStruct((1, N), jnp.float32)),
        grid=(Mp // tm,),
        in_specs=[pl.BlockSpec((tm, K), lambda i: (i, 0)),
                  pl.BlockSpec((K, N), lambda i: (0, 0))],
        out_specs=(pl.BlockSpec((tm, N), lambda i: (i, 0)),
                   pl.BlockSpec((1, N), lambda i: (0, 0)),
                   pl.BlockSpec((1, N), lambda i: (0, 0))),
        compiler_params=pltpu.CompilerParams(
            dimension_semantics=("arbitrary",),       # stats output is resident
            vmem_limit_bytes=_VMEM_LIMIT),
    )(x, w)
    return y, s, sq


def pallas_bn_relu(y, s, sq, gamma, beta, count, eps=1e-5):
    """Tiled BatchNorm(batch stats) + ReLU over rows; row axis parallel (megacore)."""
    M, N = y.shape
    tm = _pick_tile(M, _ROW_TILE_TARGET)
    Mp = _round_up(M, tm)
    if Mp != M:
        y = jnp.pad(y, ((0, Mp - M), (0, 0)))
    out = pl.pallas_call(
        functools.partial(_bn_relu_kernel, count=count, eps=eps),
        out_shape=jax.ShapeDtypeStruct((Mp, N), jnp.float32),
        grid=(Mp // tm,),
        in_specs=[pl.BlockSpec((tm, N), lambda i: (i, 0)),
                  pl.BlockSpec((1, N), lambda i: (0, 0)),
                  pl.BlockSpec((1, N), lambda i: (0, 0)),
                  pl.BlockSpec((1, N), lambda i: (0, 0)),
                  pl.BlockSpec((1, N), lambda i: (0, 0))],
        out_specs=pl.BlockSpec((tm, N), lambda i: (i, 0)),
        compiler_params=pltpu.CompilerParams(
            dimension_semantics=("parallel",),
            vmem_limit_bytes=_VMEM_LIMIT),
    )(y, s, sq, gamma.reshape(1, N), beta.reshape(1, N))
    return out[:M]


def pallas_ffc_out_matmul(patches, spec, w_patch, w_spec):
    """Fused, lane-dense output matmul: patches @ w_patch + spec @ w_spec.
    w_* columns are already zero-padded to a multiple of 128 lanes."""
    M, K = patches.shape
    _, Ks = spec.shape
    Np = w_patch.shape[1]
    tm = _pick_tile(M, _ROW_TILE_TARGET)
    Mp = _round_up(M, tm)
    tk = _pick_tile(K, _K_TILE_TARGET)
    Kp = _round_up(K, tk)
    if Mp != M:
        patches = jnp.pad(patches, ((0, Mp - M), (0, 0)))
        spec = jnp.pad(spec, ((0, Mp - M), (0, 0)))
    if Kp != K:
        patches = jnp.pad(patches, ((0, 0), (0, Kp - K)))
        w_patch = jnp.pad(w_patch, ((0, Kp - K), (0, 0)))
    out = pl.pallas_call(
        _ffc_out_kernel,
        out_shape=jax.ShapeDtypeStruct((Mp, Np), jnp.float32),
        grid=(Mp // tm, Kp // tk),
        in_specs=[pl.BlockSpec((tm, tk), lambda i, kt: (i, kt)),
                  pl.BlockSpec((tm, Ks), lambda i, kt: (i, 0)),
                  pl.BlockSpec((tk, Np), lambda i, kt: (kt, 0)),
                  pl.BlockSpec((Ks, Np), lambda i, kt: (0, 0))],
        out_specs=pl.BlockSpec((tm, Np), lambda i, kt: (i, 0)),
        compiler_params=pltpu.CompilerParams(
            dimension_semantics=("parallel", "arbitrary"),
            vmem_limit_bytes=_VMEM_LIMIT),
    )(patches, spec, w_patch, w_spec)
    return out[:M]   # (M, Np); caller drops the zero lane padding


# ------------------------------- JAX glue ---------------------------------- #

def reflect_im2col(x, k, pad):
    """x: (B, H, W, C) -> (B, Ho, Wo, k*k*C); patch channel order = (dy, dx, ci)."""
    B, H, W, C = x.shape
    xp = jnp.pad(x, ((0, 0), (pad, pad), (pad, pad), (0, 0)), mode="reflect") if pad > 0 else x
    Ho = H + 2 * pad - k + 1
    Wo = W + 2 * pad - k + 1
    cols = [xp[:, dy:dy + Ho, dx:dx + Wo, :] for dy in range(k) for dx in range(k)]
    return jnp.concatenate(cols, axis=-1)


def pack_output_weights(p, in_cl, in_cg, out_cl, out_cg, k):
    """Pack all output-producing conv weights for the single fused matmul.
    Rows follow the im2col(full x) order ((dy, dx, ci), local channels first);
    columns are [out_xl | out_xg], zero-padded to a multiple of 128 lanes."""
    C = in_cl + in_cg
    n_out = out_cl + out_cg
    n_pad = _round_up(n_out, _LANE)
    cg_half = out_cg // 2
    w_sp = jnp.zeros((k, k, C, n_pad), jnp.float32)
    w_sp = w_sp.at[:, :, :in_cl, :out_cl].set(p["w_l2l"])           # convl2l -> out_xl
    w_sp = w_sp.at[:, :, in_cl:, :out_cl].set(p["w_g2l"])           # convg2l -> out_xl
    w_sp = w_sp.at[:, :, :in_cl, out_cl:n_out].set(p["w_l2g"])      # convl2g -> out_xg
    w_sp = w_sp.reshape(k * k * C, n_pad)
    w_spec = jnp.zeros((cg_half, n_pad), jnp.float32)
    w_spec = w_spec.at[:, out_cl:n_out].set(p["w_conv2"])           # conv2(x1+fu) -> out_xg
    return w_sp.astype(jnp.bfloat16), w_spec.astype(jnp.bfloat16), n_out


def ffc_layer_forward(x_nchw, p, *, kernel_size, padding, in_cl, in_cg, out_cl, out_cg):
    k = kernel_size
    C_in = in_cl + in_cg
    cg_half = out_cg // 2

    x = jnp.transpose(x_nchw, (0, 2, 3, 1)).astype(jnp.float32)     # NCHW -> NHWC
    B, H, W, _ = x.shape
    M = B * H * W

    x_bf = x.astype(jnp.bfloat16)                                   # bf16 matmul operands
    x_g_flat = x_bf[..., in_cl:].reshape(M, in_cg)                  # x[:, -global_in_num:]

    # single im2col over ALL input channels; weight rows packed to the same order
    patches = reflect_im2col(x_bf, k, padding)                      # (B, H, W, k*k*C_in)
    assert patches.shape[1] == H and patches.shape[2] == W, "need padding = (k-1)//2"
    patches = patches.reshape(M, k * k * C_in)

    # ---- SpectralTransform.conv1 : 1x1 conv + BN(batch stats) + ReLU (two-pass, tiled) ----
    y1, s1, q1 = pallas_matmul_stats(x_g_flat, p["w_conv1"].astype(jnp.bfloat16))
    x1 = pallas_bn_relu(y1, s1, q1, p["gamma1"], p["beta1"], count=M)[:M]      # (M, cg_half)
    x1_img = x1.reshape(B, H, W, cg_half)

    # ---- FourierUnit: rfft2 -> interleaved real/imag -> 1x1 conv+BN+ReLU -> irfft2 ----
    # TODO(synk): FFT has no Pallas primitive -> jnp.fft glue.
    ffted = jnp.fft.rfft2(x1_img, axes=(1, 2), norm="ortho")        # (B, H, Wf, cg_half) c64
    Wf = ffted.shape[2]
    Mf = B * H * Wf
    ff = jnp.stack([jnp.real(ffted), jnp.imag(ffted)], axis=-1)     # (B, H, Wf, cg_half, 2)
    ff = ff.reshape(Mf, 2 * cg_half)                                # [c0_r, c0_i, c1_r, ...]
    yf, sf, qf = pallas_matmul_stats(ff.astype(jnp.bfloat16), p["w_fu"].astype(jnp.bfloat16))
    ff = pallas_bn_relu(yf, sf, qf, p["gamma_fu"], p["beta_fu"], count=Mf)[:Mf]
    ff = ff.reshape(B, H, Wf, cg_half, 2)
    fu_out = jnp.fft.irfft2(jax.lax.complex(ff[..., 0], ff[..., 1]),
                            s=(H, W), axes=(1, 2), norm="ortho")    # (B, H, W, cg_half) f32

    # ---- single fused, lane-dense output matmul:
    #      cols [0:out_cl]        = convl2l(x_l) + convg2l(x_g)          (out_xl)
    #      cols [out_cl:n_out]    = convl2g(x_l) + conv2(x1 + fu_out)    (out_xg)
    spec_in = (x1_img + fu_out).reshape(M, cg_half).astype(jnp.bfloat16)
    w_patch, w_spec, n_out = pack_output_weights(p, in_cl, in_cg, out_cl, out_cg, k)
    out = pallas_ffc_out_matmul(patches, spec_in, w_patch, w_spec)  # (M, n_pad) f32
    out = out[:, :n_out].reshape(B, H, W, n_out)                    # drop zero lane padding
    return jnp.transpose(out, (0, 3, 1, 2))                         # NHWC -> NCHW


# ----------------------------- parameter init ------------------------------ #

def init_params(key, in_cl, in_cg, out_cl, out_cg, k):
    cg_half = out_cg // 2
    ks = jax.random.split(key, 10)

    def w(kk, shape, fan_in):
        return jax.random.normal(kk, shape, jnp.float32) / (fan_in ** 0.5)

    return {
        # spatial convs (k, k, Cin, Cout); row order matches im2col (dy, dx, ci)
        "w_l2l": w(ks[0], (k, k, in_cl, out_cl), k * k * in_cl),
        "w_l2g": w(ks[1], (k, k, in_cl, out_cg), k * k * in_cl),
        "w_g2l": w(ks[2], (k, k, in_cg, out_cl), k * k * in_cg),
        # SpectralTransform.conv1 (+BN)
        "w_conv1": w(ks[3], (in_cg, cg_half), in_cg),
        "gamma1": 1.0 + 0.1 * jax.random.normal(ks[4], (cg_half,), jnp.float32),
        "beta1": 0.1 * jax.random.normal(ks[5], (cg_half,), jnp.float32),
        # FourierUnit conv (+BN): 2*cg_half -> 2*cg_half (interleaved real/imag basis)
        "w_fu": w(ks[6], (2 * cg_half, 2 * cg_half), 2 * cg_half),
        "gamma_fu": 1.0 + 0.1 * jax.random.normal(ks[7], (2 * cg_half,), jnp.float32),
        "beta_fu": 0.1 * jax.random.normal(ks[8], (2 * cg_half,), jnp.float32),
        # SpectralTransform.conv2
        "w_conv2": w(ks[9], (cg_half, out_cg), cg_half),
    }


# ---------------------------------- main ------------------------------------ #

if __name__ == "__main__":
    B, C_in, H, W = 2, 8, 32, 32          # small, but enough rows for multiple 512-row tiles
    C_out, k, pad = 8, 3, 1
    ratio_gin = ratio_gout = 0.75
    in_cg = int(C_in * ratio_gin)
    in_cl = C_in - in_cg
    out_cg = int(C_out * ratio_gout)
    out_cl = C_out - out_cg

    x = jax.random.normal(jax.random.PRNGKey(0), (B, C_in, H, W), jnp.float32)
    params = init_params(jax.random.PRNGKey(1), in_cl, in_cg, out_cl, out_cg, k)

    fwd = jax.jit(functools.partial(
        ffc_layer_forward, kernel_size=k, padding=pad,
        in_cl=in_cl, in_cg=in_cg, out_cl=out_cl, out_cg=out_cg))
    out = fwd(x, params)
    jax.block_until_ready(out)
    assert out.shape == (B, C_out, H, W), out.shape
    assert bool(jnp.all(jnp.isfinite(out)))
    print("KERNEL_OK")
</pallas_src>

<mosaic_0001>
module attributes {stable_mosaic.version = 11 : i64} {
  func.func @_matmul_stats_kernel(%arg0: i32, %arg1: memref<512x6xbf16, #tpu.memory_space<vmem>>, %arg2: memref<6x3xbf16, #tpu.memory_space<vmem>>, %arg3: memref<512x3xf32, #tpu.memory_space<vmem>>, %arg4: memref<1x3xf32, #tpu.memory_space<vmem>>, %arg5: memref<1x3xf32, #tpu.memory_space<vmem>>) attributes {dimension_semantics = [#tpu.dimension_semantics<arbitrary>], iteration_bounds = array<i64: 4>, scalar_prefetch = 0 : i64, scratch_operands = 0 : i64, tpu.core_type = #tpu.core_type<tc>, window_params = [{transform_indices = @transform_0, window_bounds = array<i64: 512, 6>}, {pipeline_mode = #tpu.pipeline_mode<synchronous>, transform_indices = @transform_1, window_bounds = array<i64: 6, 3>}, {transform_indices = @transform_2, window_bounds = array<i64: 512, 3>}, {pipeline_mode = #tpu.pipeline_mode<synchronous>, transform_indices = @transform_3, window_bounds = array<i64: 1, 3>}, {pipeline_mode = #tpu.pipeline_mode<synchronous>, transform_indices = @transform_4, window_bounds = array<i64: 1, 3>}]} {
    %c0 = arith.constant 0 : index
    %c0_0 = arith.constant 0 : index
    %0 = vector.load %arg1[%c0, %c0_0] : memref<512x6xbf16, #tpu.memory_space<vmem>>, vector<512x6xbf16>
    %c0_1 = arith.constant 0 : index
    %c0_2 = arith.constant 0 : index
    %1 = vector.load %arg2[%c0_1, %c0_2] : memref<6x3xbf16, #tpu.memory_space<vmem>>, vector<6x3xbf16>
    %cst = arith.constant dense<0.000000e+00> : vector<512x3xf32>
    %2 = tpu.matmul %0, %1, %cst {dimension_numbers = #tpu.dot_dimension_numbers<[1], [0], [0], [1], [0, 0, 1, 1], [], []>} : vector<512x6xbf16>, vector<6x3xbf16>, vector<512x3xf32> -> vector<512x3xf32>
    %c0_3 = arith.constant 0 : index
    %c0_4 = arith.constant 0 : index
    %3 = vector.load %arg3[%c0_3, %c0_4] : memref<512x3xf32, #tpu.memory_space<vmem>>, vector<512x3xf32>
    tpu.vector_store %arg3[%c0_3, %c0_4], %2 {strides = array<i32>} : memref<512x3xf32, #tpu.memory_space<vmem>>, vector<512x3xf32>,
    %c0_i32 = arith.constant 0 : i32
    %4 = arith.cmpi eq, %arg0, %c0_i32 : i32
    %5 = arith.extui %4 : i1 to i32
    %c0_i32_5 = arith.constant 0 : i32
    %6 = arith.cmpi ne, %5, %c0_i32_5 : i32
    scf.if %6 {
      %cst_16 = arith.constant 0.000000e+00 : f32
      %18 = vector.broadcast %cst_16 : f32 to vector<1x3xf32>
      %c0_17 = arith.constant 0 : index
      %c0_18 = arith.constant 0 : index
      %19 = vector.load %arg4[%c0_17, %c0_18] : memref<1x3xf32, #tpu.memory_space<vmem>>, vector<1x3xf32>
      tpu.vector_store %arg4[%c0_17, %c0_18], %18 {strides = array<i32>} : memref<1x3xf32, #tpu.memory_space<vmem>>, vector<1x3xf32>,
      %cst_19 = arith.constant 0.000000e+00 : f32
      %20 = vector.broadcast %cst_19 : f32 to vector<1x3xf32>
      %c0_20 = arith.constant 0 : index
      %c0_21 = arith.constant 0 : index
      %21 = vector.load %arg5[%c0_20, %c0_21] : memref<1x3xf32, #tpu.memory_space<vmem>>, vector<1x3xf32>
      tpu.vector_store %arg5[%c0_20, %c0_21], %20 {strides = array<i32>} : memref<1x3xf32, #tpu.memory_space<vmem>>, vector<1x3xf32>,
    } else {
    }
    %c0_6 = arith.constant 0 : index
    %c0_7 = arith.constant 0 : index
    %7 = vector.load %arg4[%c0_6, %c0_7] : memref<1x3xf32, #tpu.memory_space<vmem>>, vector<1x3xf32>
    %cst_8 = arith.constant dense<0.000000e+00> : vector<3xf32>
    %8 = vector.multi_reduction <add>, %2, %cst_8 [0] : vector<512x3xf32> to vector<3xf32>
    %9 = vector.shape_cast %8 : vector<3xf32> to vector<1x3xf32>
    %10 = arith.addf %7, %9 : vector<1x3xf32>
    %c0_9 = arith.constant 0 : index
    %c0_10 = arith.constant 0 : index
    %11 = vector.load %arg4[%c0_9, %c0_10] : memref<1x3xf32, #tpu.memory_space<vmem>>, vector<1x3xf32>
    tpu.vector_store %arg4[%c0_9, %c0_10], %10 {strides = array<i32>} : memref<1x3xf32, #tpu.memory_space<vmem>>, vector<1x3xf32>,
    %c0_11 = arith.constant 0 : index
    %c0_12 = arith.constant 0 : index
    %12 = vector.load %arg5[%c0_11, %c0_12] : memref<1x3xf32, #tpu.memory_space<vmem>>, vector<1x3xf32>
    %13 = arith.mulf %2, %2 : vector<512x3xf32>
    %cst_13 = arith.constant dense<0.000000e+00> : vector<3xf32>
    %14 = vector.multi_reduction <add>, %13, %cst_13 [0] : vector<512x3xf32> to vector<3xf32>
    %15 = vector.shape_cast %14 : vector<3xf32> to vector<1x3xf32>
    %16 = arith.addf %12, %15 : vector<1x3xf32>
    %c0_14 = arith.constant 0 : index
    %c0_15 = arith.constant 0 : index
    %17 = vector.load %arg5[%c0_14, %c0_15] : memref<1x3xf32, #tpu.memory_space<vmem>>, vector<1x3xf32>
    tpu.vector_store %arg5[%c0_14, %c0_15], %16 {strides = array<i32>} : memref<1x3xf32, #tpu.memory_space<vmem>>, vector<1x3xf32>,
    return
  }
  func.func @transform_0(%arg0: i32) -> (i32, i32) {
    %c0_i32 = arith.constant 0 : i32
    %c0_i32_0 = arith.constant 0 : i32
    return %arg0, %c0_i32 : i32, i32
  }
  func.func @transform_1(%arg0: i32) -> (i32, i32) {
    %c0_i32 = arith.constant 0 : i32
    %c0_i32_0 = arith.constant 0 : i32
    %c0_i32_1 = arith.constant 0 : i32
    return %c0_i32, %c0_i32_0 : i32, i32
  }
  func.func @transform_2(%arg0: i32) -> (i32, i32) {
    %c0_i32 = arith.constant 0 : i32
    %c0_i32_0 = arith.constant 0 : i32
    return %arg0, %c0_i32 : i32, i32
  }
  func.func @transform_3(%arg0: i32) -> (i32, i32) {
    %c0_i32 = arith.constant 0 : i32
    %c0_i32_0 = arith.constant 0 : i32
    %c0_i32_1 = arith.constant 0 : i32
    return %c0_i32, %c0_i32_0 : i32, i32
  }
  func.func @transform_4(%arg0: i32) -> (i32, i32) {
    %c0_i32 = arith.constant 0 : i32
    %c0_i32_0 = arith.constant 0 : i32
    %c0_i32_1 = arith.constant 0 : i32
    return %c0_i32, %c0_i32_0 : i32, i32
  }
}

module attributes {stable_mosaic.version = 11 : i64} {
  func.func @_bn_relu_kernel(%arg0: i32, %arg1: memref<512x3xf32, #tpu.memory_space<vmem>>, %arg2: memref<1x3xf32, #tpu.memory_space<vmem>>, %arg3: memref<1x3xf32, #tpu.memory_space<vmem>>, %arg4: memref<1x3xf32, #tpu.memory_space<vmem>>, %arg5: memref<1x3xf32, #tpu.memory_space<vmem>>, %arg6: memref<512x3xf32, #tpu.memory_space<vmem>>) attributes {dimension_semantics = [#tpu.dimension_semantics<parallel>], iteration_bounds = array<i64: 4>, scalar_prefetch = 0 : i64, scratch_operands = 0 : i64, tpu.core_type = #tpu.core_type<tc>, window_params = [{transform_indices = @transform_0, window_bounds = array<i64: 512, 3>}, {pipeline_mode = #tpu.pipeline_mode<synchronous>, transform_indices = @transform_1, window_bounds = array<i64: 1, 3>}, {pipeline_mode = #tpu.pipeline_mode<synchronous>, transform_indices = @transform_2, window_bounds = array<i64: 1, 3>}, {pipeline_mode = #tpu.pipeline_mode<synchronous>, transform_indices = @transform_3, window_bounds = array<i64: 1, 3>}, {pipeline_mode = #tpu.pipeline_mode<synchronous>, transform_indices = @transform_4, window_bounds = array<i64: 1, 3>}, {transform_indices = @transform_5, window_bounds = array<i64: 512, 3>}]} {
    %c0 = arith.constant 0 : index
    %c0_0 = arith.constant 0 : index
    %0 = vector.load %arg1[%c0, %c0_0] : memref<512x3xf32, #tpu.memory_space<vmem>>, vector<512x3xf32>
    %c0_1 = arith.constant 0 : index
    %c0_2 = arith.constant 0 : index
    %1 = vector.load %arg2[%c0_1, %c0_2] : memref<1x3xf32, #tpu.memory_space<vmem>>, vector<1x3xf32>
    %cst = arith.constant 4.8828125E-4 : f32
    %2 = vector.broadcast %cst : f32 to vector<1x3xf32>
    %3 = arith.mulf %1, %2 : vector<1x3xf32>
    %c0_3 = arith.constant 0 : index
    %c0_4 = arith.constant 0 : index
    %4 = vector.load %arg3[%c0_3, %c0_4] : memref<1x3xf32, #tpu.memory_space<vmem>>, vector<1x3xf32>
    %cst_5 = arith.constant 4.8828125E-4 : f32
    %5 = vector.broadcast %cst_5 : f32 to vector<1x3xf32>
    %6 = arith.mulf %4, %5 : vector<1x3xf32>
    %7 = arith.mulf %3, %3 : vector<1x3xf32>
    %8 = arith.subf %6, %7 : vector<1x3xf32>
    %cst_6 = arith.constant 9.99999974E-6 : f32
    %9 = vector.broadcast %cst_6 : f32 to vector<1x3xf32>
    %10 = arith.addf %8, %9 : vector<1x3xf32>
    %11 = math.rsqrt %10 : vector<1x3xf32>
    %12 = vector.broadcast %3 : vector<1x3xf32> to vector<512x3xf32>
    %13 = arith.subf %0, %12 : vector<512x3xf32>
    %14 = vector.broadcast %11 : vector<1x3xf32> to vector<512x3xf32>
    %15 = arith.mulf %13, %14 : vector<512x3xf32>
    %c0_7 = arith.constant 0 : index
    %c0_8 = arith.constant 0 : index
    %16 = vector.load %arg4[%c0_7, %c0_8] : memref<1x3xf32, #tpu.memory_space<vmem>>, vector<1x3xf32>
    %17 = vector.broadcast %16 : vector<1x3xf32> to vector<512x3xf32>
    %18 = arith.mulf %15, %17 : vector<512x3xf32>
    %c0_9 = arith.constant 0 : index
    %c0_10 = arith.constant 0 : index
    %19 = vector.load %arg5[%c0_9, %c0_10] : memref<1x3xf32, #tpu.memory_space<vmem>>, vector<1x3xf32>
    %20 = vector.broadcast %19 : vector<1x3xf32> to vector<512x3xf32>
    %21 = arith.addf %18, %20 : vector<512x3xf32>
    %cst_11 = arith.constant 0.000000e+00 : f32
    %22 = vector.broadcast %cst_11 : f32 to vector<512x3xf32>
    %23 = arith.maximumf %21, %22 : vector<512x3xf32>
    %c0_12 = arith.constant 0 : index
    %c0_13 = arith.constant 0 : index
    %24 = vector.load %arg6[%c0_12, %c0_13] : memref<512x3xf32, #tpu.memory_space<vmem>>, vector<512x3xf32>
    tpu.vector_store %arg6[%c0_12, %c0_13], %23 {strides = array<i32>} : memref<512x3xf32, #tpu.memory_space<vmem>>, vector<512x3xf32>,
    return
  }
  func.func @transform_0(%arg0: i32) -> (i32, i32) {
    %c0_i32 = arith.constant 0 : i32
    %c0_i32_0 = arith.constant 0 : i32
    return %arg0, %c0_i32 : i32, i32
  }
  func.func @transform_1(%arg0: i32) -> (i32, i32) {
    %c0_i32 = arith.constant 0 : i32
    %c0_i32_0 = arith.constant 0 : i32
    %c0_i32_1 = arith.constant 0 : i32
    return %c0_i32, %c0_i32_0 : i32, i32
  }
  func.func @transform_2(%arg0: i32) -> (i32, i32) {
    %c0_i32 = arith.constant 0 : i32
    %c0_i32_0 = arith.constant 0 : i32
    %c0_i32_1 = arith.constant 0 : i32
    return %c0_i32, %c0_i32_0 : i32, i32
  }
  func.func @transform_3(%arg0: i32) -> (i32, i32) {
    %c0_i32 = arith.constant 0 : i32
    %c0_i32_0 = arith.constant 0 : i32
    %c0_i32_1 = arith.constant 0 : i32
    return %c0_i32, %c0_i32_0 : i32, i32
  }
  func.func @transform_4(%arg0: i32) -> (i32, i32) {
    %c0_i32 = arith.constant 0 : i32
    %c0_i32_0 = arith.constant 0 : i32
    %c0_i32_1 = arith.constant 0 : i32
    return %c0_i32, %c0_i32_0 : i32, i32
  }
  func.func @transform_5(%arg0: i32) -> (i32, i32) {
    %c0_i32 = arith.constant 0 : i32
    %c0_i32_0 = arith.constant 0 : i32
    return %arg0, %c0_i32 : i32, i32
  }
}

module attributes {stable_mosaic.version = 11 : i64} {
  func.func @_matmul_stats_kernel(%arg0: i32, %arg1: memref<272x6xbf16, #tpu.memory_space<vmem>>, %arg2: memref<6x6xbf16, #tpu.memory_space<vmem>>, %arg3: memref<272x6xf32, #tpu.memory_space<vmem>>, %arg4: memref<1x6xf32, #tpu.memory_space<vmem>>, %arg5: memref<1x6xf32, #tpu.memory_space<vmem>>) attributes {dimension_semantics = [#tpu.dimension_semantics<arbitrary>], iteration_bounds = array<i64: 4>, scalar_prefetch = 0 : i64, scratch_operands = 0 : i64, tpu.core_type = #tpu.core_type<tc>, window_params = [{transform_indices = @transform_0, window_bounds = array<i64: 272, 6>}, {pipeline_mode = #tpu.pipeline_mode<synchronous>, transform_indices = @transform_1, window_bounds = array<i64: 6, 6>}, {transform_indices = @transform_2, window_bounds = array<i64: 272, 6>}, {pipeline_mode = #tpu.pipeline_mode<synchronous>, transform_indices = @transform_3, window_bounds = array<i64: 1, 6>}, {pipeline_mode = #tpu.pipeline_mode<synchronous>, transform_indices = @transform_4, window_bounds = array<i64: 1, 6>}]} {
    %c0 = arith.constant 0 : index
    %c0_0 = arith.constant 0 : index
    %0 = vector.load %arg1[%c0, %c0_0] : memref<272x6xbf16, #tpu.memory_space<vmem>>, vector<272x6xbf16>
    %c0_1 = arith.constant 0 : index
    %c0_2 = arith.constant 0 : index
    %1 = vector.load %arg2[%c0_1, %c0_2] : memref<6x6xbf16, #tpu.memory_space<vmem>>, vector<6x6xbf16>
    %cst = arith.constant dense<0.000000e+00> : vector<272x6xf32>
    %2 = tpu.matmul %0, %1, %cst {dimension_numbers = #tpu.dot_dimension_numbers<[1], [0], [0], [1], [0, 0, 1, 1], [], []>} : vector<272x6xbf16>, vector<6x6xbf16>, vector<272x6xf32> -> vector<272x6xf32>
    %c0_3 = arith.constant 0 : index
    %c0_4 = arith.constant 0 : index
    %3 = vector.load %arg3[%c0_3, %c0_4] : memref<272x6xf32, #tpu.memory_space<vmem>>, vector<272x6xf32>
    tpu.vector_store %arg3[%c0_3, %c0_4], %2 {strides = array<i32>} : memref<272x6xf32, #tpu.memory_space<vmem>>, vector<272x6xf32>,
    %c0_i32 = arith.constant 0 : i32
    %4 = arith.cmpi eq, %arg0, %c0_i32 : i32
    %5 = arith.extui %4 : i1 to i32
    %c0_i32_5 = arith.constant 0 : i32
    %6 = arith.cmpi ne, %5, %c0_i32_5 : i32
    scf.if %6 {
      %cst_16 = arith.constant 0.000000e+00 : f32
      %18 = vector.broadcast %cst_16 : f32 to vector<1x6xf32>
      %c0_17 = arith.constant 0 : index
      %c0_18 = arith.constant 0 : index
      %19 = vector.load %arg4[%c0_17, %c0_18] : memref<1x6xf32, #tpu.memory_space<vmem>>, vector<1x6xf32>
      tpu.vector_store %arg4[%c0_17, %c0_18], %18 {strides = array<i32>} : memref<1x6xf32, #tpu.memory_space<vmem>>, vector<1x6xf32>,
      %cst_19 = arith.constant 0.000000e+00 : f32
      %20 = vector.broadcast %cst_19 : f32 to vector<1x6xf32>
      %c0_20 = arith.constant 0 : index
      %c0_21 = arith.constant 0 : index
      %21 = vector.load %arg5[%c0_20, %c0_21] : memref<1x6xf32, #tpu.memory_space<vmem>>, vector<1x6xf32>
      tpu.vector_store %arg5[%c0_20, %c0_21], %20 {strides = array<i32>} : memref<1x6xf32, #tpu.memory_space<vmem>>, vector<1x6xf32>,
    } else {
    }
    %c0_6 = arith.constant 0 : index
    %c0_7 = arith.constant 0 : index
    %7 = vector.load %arg4[%c0_6, %c0_7] : memref<1x6xf32, #tpu.memory_space<vmem>>, vector<1x6xf32>
    %cst_8 = arith.constant dense<0.000000e+00> : vector<6xf32>
    %8 = vector.multi_reduction <add>, %2, %cst_8 [0] : vector<272x6xf32> to vector<6xf32>
    %9 = vector.shape_cast %8 : vector<6xf32> to vector<1x6xf32>
    %10 = arith.addf %7, %9 : vector<1x6xf32>
    %c0_9 = arith.constant 0 : index
    %c0_10 = arith.constant 0 : index
    %11 = vector.load %arg4[%c0_9, %c0_10] : memref<1x6xf32, #tpu.memory_space<vmem>>, vector<1x6xf32>
    tpu.vector_store %arg4[%c0_9, %c0_10], %10 {strides = array<i32>} : memref<1x6xf32, #tpu.memory_space<vmem>>, vector<1x6xf32>,
    %c0_11 = arith.constant 0 : index
    %c0_12 = arith.constant 0 : index
    %12 = vector.load %arg5[%c0_11, %c0_12] : memref<1x6xf32, #tpu.memory_space<vmem>>, vector<1x6xf32>
    %13 = arith.mulf %2, %2 : vector<272x6xf32>
    %cst_13 = arith.constant dense<0.000000e+00> : vector<6xf32>
    %14 = vector.multi_reduction <add>, %13, %cst_13 [0] : vector<272x6xf32> to vector<6xf32>
    %15 = vector.shape_cast %14 : vector<6xf32> to vector<1x6xf32>
    %16 = arith.addf %12, %15 : vector<1x6xf32>
    %c0_14 = arith.constant 0 : index
    %c0_15 = arith.constant 0 : index
    %17 = vector.load %arg5[%c0_14, %c0_15] : memref<1x6xf32, #tpu.memory_space<vmem>>, vector<1x6xf32>
    tpu.vector_store %arg5[%c0_14, %c0_15], %16 {strides = array<i32>} : memref<1x6xf32, #tpu.memory_space<vmem>>, vector<1x6xf32>,
    return
  }
  func.func @transform_0(%arg0: i32) -> (i32, i32) {
    %c0_i32 = arith.constant 0 : i32
    %c0_i32_0 = arith.constant 0 : i32
    return %arg0, %c0_i32 : i32, i32
  }
  func.func @transform_1(%arg0: i32) -> (i32, i32) {
    %c0_i32 = arith.constant 0 : i32
    %c0_i32_0 = arith.constant 0 : i32
    %c0_i32_1 = arith.constant 0 : i32
    return %c0_i32, %c0_i32_0 : i32, i32
  }
  func.func @transform_2(%arg0: i32) -> (i32, i32) {
    %c0_i32 = arith.constant 0 : i32
    %c0_i32_0 = arith.constant 0 : i32
    return %arg0, %c0_i32 : i32, i32
  }
  func.func @transform_3(%arg0: i32) -> (i32, i32) {
    %c0_i32 = arith.constant 0 : i32
    %c0_i32_0 = arith.constant 0 : i32
    %c0_i32_1 = arith.constant 0 : i32
    return %c0_i32, %c0_i32_0 : i32, i32
  }
  func.func @transform_4(%arg0: i32) -> (i32, i32) {
    %c0_i32 = arith.constant 0 : i32
    %c0_i32_0 = arith.constant 0 : i32
    %c0_i32_1 = arith.constant 0 : i32
    return %c0_i32, %c0_i32_0 : i32, i32
  }
}

module attributes {stable_mosaic.version = 11 : i64} {
  func.func @_bn_relu_kernel(%arg0: i32, %arg1: memref<272x6xf32, #tpu.memory_space<vmem>>, %arg2: memref<1x6xf32, #tpu.memory_space<vmem>>, %arg3: memref<1x6xf32, #tpu.memory_space<vmem>>, %arg4: memref<1x6xf32, #tpu.memory_space<vmem>>, %arg5: memref<1x6xf32, #tpu.memory_space<vmem>>, %arg6: memref<272x6xf32, #tpu.memory_space<vmem>>) attributes {dimension_semantics = [#tpu.dimension_semantics<parallel>], iteration_bounds = array<i64: 4>, scalar_prefetch = 0 : i64, scratch_operands = 0 : i64, tpu.core_type = #tpu.core_type<tc>, window_params = [{transform_indices = @transform_0, window_bounds = array<i64: 272, 6>}, {pipeline_mode = #tpu.pipeline_mode<synchronous>, transform_indices = @transform_1, window_bounds = array<i64: 1, 6>}, {pipeline_mode = #tpu.pipeline_mode<synchronous>, transform_indices = @transform_2, window_bounds = array<i64: 1, 6>}, {pipeline_mode = #tpu.pipeline_mode<synchronous>, transform_indices = @transform_3, window_bounds = array<i64: 1, 6>}, {pipeline_mode = #tpu.pipeline_mode<synchronous>, transform_indices = @transform_4, window_bounds = array<i64: 1, 6>}, {transform_indices = @transform_5, window_bounds = array<i64: 272, 6>}]} {
    %c0 = arith.constant 0 : index
    %c0_0 = arith.constant 0 : index
    %0 = vector.load %arg1[%c0, %c0_0] : memref<272x6xf32, #tpu.memory_space<vmem>>, vector<272x6xf32>
    %c0_1 = arith.constant 0 : index
    %c0_2 = arith.constant 0 : index
    %1 = vector.load %arg2[%c0_1, %c0_2] : memref<1x6xf32, #tpu.memory_space<vmem>>, vector<1x6xf32>
    %cst = arith.constant 9.1911765E-4 : f32
    %2 = vector.broadcast %cst : f32 to vector<1x6xf32>
    %3 = arith.mulf %1, %2 : vector<1x6xf32>
    %c0_3 = arith.constant 0 : index
    %c0_4 = arith.constant 0 : index
    %4 = vector.load %arg3[%c0_3, %c0_4] : memref<1x6xf32, #tpu.memory_space<vmem>>, vector<1x6xf32>
    %cst_5 = arith.constant 9.1911765E-4 : f32
    %5 = vector.broadcast %cst_5 : f32 to vector<1x6xf32>
    %6 = arith.mulf %4, %5 : vector<1x6xf32>
    %7 = arith.mulf %3, %3 : vector<1x6xf32>
    %8 = arith.subf %6, %7 : vector<1x6xf32>
    %cst_6 = arith.constant 9.99999974E-6 : f32
    %9 = vector.broadcast %cst_6 : f32 to vector<1x6xf32>
    %10 = arith.addf %8, %9 : vector<1x6xf32>
    %11 = math.rsqrt %10 : vector<1x6xf32>
    %12 = vector.broadcast %3 : vector<1x6xf32> to vector<272x6xf32>
    %13 = arith.subf %0, %12 : vector<272x6xf32>
    %14 = vector.broadcast %11 : vector<1x6xf32> to vector<272x6xf32>
    %15 = arith.mulf %13, %14 : vector<272x6xf32>
    %c0_7 = arith.constant 0 : index
    %c0_8 = arith.constant 0 : index
    %16 = vector.load %arg4[%c0_7, %c0_8] : memref<1x6xf32, #tpu.memory_space<vmem>>, vector<1x6xf32>
    %17 = vector.broadcast %16 : vector<1x6xf32> to vector<272x6xf32>
    %18 = arith.mulf %15, %17 : vector<272x6xf32>
    %c0_9 = arith.constant 0 : index
    %c0_10 = arith.constant 0 : index
    %19 = vector.load %arg5[%c0_9, %c0_10] : memref<1x6xf32, #tpu.memory_space<vmem>>, vector<1x6xf32>
    %20 = vector.broadcast %19 : vector<1x6xf32> to vector<272x6xf32>
    %21 = arith.addf %18, %20 : vector<272x6xf32>
    %cst_11 = arith.constant 0.000000e+00 : f32
    %22 = vector.broadcast %cst_11 : f32 to vector<272x6xf32>
    %23 = arith.maximumf %21, %22 : vector<272x6xf32>
    %c0_12 = arith.constant 0 : index
    %c0_13 = arith.constant 0 : index
    %24 = vector.load %arg6[%c0_12, %c0_13] : memref<272x6xf32, #tpu.memory_space<vmem>>, vector<272x6xf32>
    tpu.vector_store %arg6[%c0_12, %c0_13], %23 {strides = array<i32>} : memref<272x6xf32, #tpu.memory_space<vmem>>, vector<272x6xf32>,
    return
  }
  func.func @transform_0(%arg0: i32) -> (i32, i32) {
    %c0_i32 = arith.constant 0 : i32
    %c0_i32_0 = arith.constant 0 : i32
    return %arg0, %c0_i32 : i32, i32
  }
  func.func @transform_1(%arg0: i32) -> (i32, i32) {
    %c0_i32 = arith.constant 0 : i32
    %c0_i32_0 = arith.constant 0 : i32
    %c0_i32_1 = arith.constant 0 : i32
    return %c0_i32, %c0_i32_0 : i32, i32
  }
  func.func @transform_2(%arg0: i32) -> (i32, i32) {
    %c0_i32 = arith.constant 0 : i32
    %c0_i32_0 = arith.constant 0 : i32
    %c0_i32_1 = arith.constant 0 : i32
    return %c0_i32, %c0_i32_0 : i32, i32
  }
  func.func @transform_3(%arg0: i32) -> (i32, i32) {
    %c0_i32 = arith.constant 0 : i32
    %c0_i32_0 = arith.constant 0 : i32
    %c0_i32_1 = arith.constant 0 : i32
    return %c0_i32, %c0_i32_0 : i32, i32
  }
  func.func @transform_4(%arg0: i32) -> (i32, i32) {
    %c0_i32 = arith.constant 0 : i32
    %c0_i32_0 = arith.constant 0 : i32
    %c0_i32_1 = arith.constant 0 : i32
    return %c0_i32, %c0_i32_0 : i32, i32
  }
  func.func @transform_5(%arg0: i32) -> (i32, i32) {
    %c0_i32 = arith.constant 0 : i32
    %c0_i32_0 = arith.constant 0 : i32
    return %arg0, %c0_i32 : i32, i32
  }
}

module attributes {stable_mosaic.version = 11 : i64} {
  func.func @_ffc_out_kernel(%arg0: i32, %arg1: i32, %arg2: memref<512x72xbf16, #tpu.memory_space<vmem>>, %arg3: memref<512x3xbf16, #tpu.memory_space<vmem>>, %arg4: memref<72x128xbf16, #tpu.memory_space<vmem>>, %arg5: memref<3x128xbf16, #tpu.memory_space<vmem>>, %arg6: memref<512x128xf32, #tpu.memory_space<vmem>>) attributes {dimension_semantics = [#tpu.dimension_semantics<parallel>, #tpu.dimension_semantics<arbitrary>], iteration_bounds = array<i64: 4, 1>, scalar_prefetch = 0 : i64, scratch_operands = 0 : i64, tpu.core_type = #tpu.core_type<tc>, window_params = [{transform_indices = @transform_0, window_bounds = array<i64: 512, 72>}, {transform_indices = @transform_1, window_bounds = array<i64: 512, 3>}, {transform_indices = @transform_2, window_bounds = array<i64: 72, 128>}, {pipeline_mode = #tpu.pipeline_mode<synchronous>, transform_indices = @transform_3, window_bounds = array<i64: 3, 128>}, {transform_indices = @transform_4, window_bounds = array<i64: 512, 128>}]} {
    %c0_i32 = arith.constant 0 : i32
    %0 = arith.cmpi eq, %arg1, %c0_i32 : i32
    %1 = arith.extui %0 : i1 to i32
    %c0_i32_0 = arith.constant 0 : i32
    %2 = arith.cmpi ne, %1, %c0_i32_0 : i32
    scf.if %2 {
      %c0_8 = arith.constant 0 : index
      %c0_9 = arith.constant 0 : index
      %9 = vector.load %arg3[%c0_8, %c0_9] : memref<512x3xbf16, #tpu.memory_space<vmem>>, vector<512x3xbf16>
      %c0_10 = arith.constant 0 : index
      %c0_11 = arith.constant 0 : index
      %10 = vector.load %arg5[%c0_10, %c0_11] : memref<3x128xbf16, #tpu.memory_space<vmem>>, vector<3x128xbf16>
      %cst_12 = arith.constant dense<0.000000e+00> : vector<512x128xf32>
      %11 = tpu.matmul %9, %10, %cst_12 {dimension_numbers = #tpu.dot_dimension_numbers<[1], [0], [0], [1], [0, 0, 1, 1], [], []>} : vector<512x3xbf16>, vector<3x128xbf16>, vector<512x128xf32> -> vector<512x128xf32>
      %c0_13 = arith.constant 0 : index
      %c0_14 = arith.constant 0 : index
      %12 = vector.load %arg6[%c0_13, %c0_14] : memref<512x128xf32, #tpu.memory_space<vmem>>, vector<512x128xf32>
      tpu.vector_store %arg6[%c0_13, %c0_14], %11 {strides = array<i32>} : memref<512x128xf32, #tpu.memory_space<vmem>>, vector<512x128xf32>,
    } else {
    }
    %c0 = arith.constant 0 : index
    %c0_1 = arith.constant 0 : index
    %3 = vector.load %arg6[%c0, %c0_1] : memref<512x128xf32, #tpu.memory_space<vmem>>, vector<512x128xf32>
    %c0_2 = arith.constant 0 : index
    %c0_3 = arith.constant 0 : index
    %4 = vector.load %arg2[%c0_2, %c0_3] : memref<512x72xbf16, #tpu.memory_space<vmem>>, vector<512x72xbf16>
    %c0_4 = arith.constant 0 : index
    %c0_5 = arith.constant 0 : index
    %5 = vector.load %arg4[%c0_4, %c0_5] : memref<72x128xbf16, #tpu.memory_space<vmem>>, vector<72x128xbf16>
    %cst = arith.constant dense<0.000000e+00> : vector<512x128xf32>
    %6 = tpu.matmul %4, %5, %cst {dimension_numbers = #tpu.dot_dimension_numbers<[1], [0], [0], [1], [0, 0, 1, 1], [], []>} : vector<512x72xbf16>, vector<72x128xbf16>, vector<512x128xf32> -> vector<512x128xf32>
    %7 = arith.addf %3, %6 : vector<512x128xf32>
    %c0_6 = arith.constant 0 : index
    %c0_7 = arith.constant 0 : index
    %8 = vector.load %arg6[%c0_6, %c0_7] : memref<512x128xf32, #tpu.memory_space<vmem>>, vector<512x128xf32>
    tpu.vector_store %arg6[%c0_6, %c0_7], %7 {strides = array<i32>} : memref<512x128xf32, #tpu.memory_space<vmem>>, vector<512x128xf32>,
    return
  }
  func.func @transform_0(%arg0: i32, %arg1: i32) -> (i32, i32) {
    %c0_i32 = arith.constant 0 : i32
    return %arg0, %arg1 : i32, i32
  }
  func.func @transform_1(%arg0: i32, %arg1: i32) -> (i32, i32) {
    %c0_i32 = arith.constant 0 : i32
    %c0_i32_0 = arith.constant 0 : i32
    return %arg0, %c0_i32 : i32, i32
  }
  func.func @transform_2(%arg0: i32, %arg1: i32) -> (i32, i32) {
    %c0_i32 = arith.constant 0 : i32
    %c0_i32_0 = arith.constant 0 : i32
    return %arg1, %c0_i32 : i32, i32
  }
  func.func @transform_3(%arg0: i32, %arg1: i32) -> (i32, i32) {
    %c0_i32 = arith.constant 0 : i32
    %c0_i32_0 = arith.constant 0 : i32
    %c0_i32_1 = arith.constant 0 : i32
    return %c0_i32, %c0_i32_0 : i32, i32
  }
  func.func @transform_4(%arg0: i32, %arg1: i32) -> (i32, i32) {
    %c0_i32 = arith.constant 0 : i32
    %c0_i32_0 = arith.constant 0 : i32
    return %arg0, %c0_i32 : i32, i32
  }
}

</mosaic_0001>

<bundles_post_ra>
// kernel: ffc_layer_forward.5
= control target key start
LH: loop header
LB: loop body
LE: loop exit
PB: predicated region body
PF: predicated region fallthrough
CT: control target
= control target key end

     0   :  { %s1543_s15 = smov 0   ;;  %s2299_s0 = inlined_call_operand.vmem [shape: bf16[2048,6], index: 0, kind: input, shape index: {}]   ;;  %s2300_s1 = inlined_call_operand.vmem [shape: bf16[6,3], index: 1, kind: input, shape index: {}]   ;;  %s2301_s2 = inlined_call_operand.vmem [shape: f32[2048,3], index: 2, kind: output, shape index: {0}]   ;;  %s2302_s3 = inlined_call_operand.vmem [shape: f32[1,3], index: 3, kind: output, shape index: {1}]   ;;  %s2303_s4 = inlined_call_operand.vmem [shape: f32[1,3], index: 4, kind: output, shape index: {2}]  }
   0x1 LB: > { %s1289_s16 = sadd.s32 4294967295, %s1515_s15   ;;  %p1293_p0 = scmp.ge.s32.totalorder %s1515_s15, 1  ;;  %s1515_s15 = sphi %s1543_s15, %s15_s15  }
   0x2   : > { %p158_p1 = scmp.lt.s32.totalorder %s1515_s15, 5 }
   0x4   : > { %p159_p2 = pnand %p1293_p0, %p158_p1 }
   0x6   : > { %162 = sbr.rel (%p159_p2) target bundleno = 473 (0x1d9), region = 28 }
   0xd   : > { %v261_v0 = vld [vmem:[%s2300_s1] sm:$0x7]  ;;  %vm519_vm0 = vcmask 1042432   ;;  %s1294_s19 = sshll.u32 %s1289_s16, 6  ;;  %vm422_vm1 = vcmask 48128   ;;  %vm812_vm2 = vcmask 23552  }
   0xe   : > { %1466 = vmatprep.subr.msk.bf16.mxu0 %vm519_vm0, %v261_v0  ;;  %1467 = vmatprep.subr.msk.bf16.mxu1 %vm519_vm0, %v261_v0  ;;  %v521_v1 = vsel %vm519_vm0, %v261_v0, 0  ;;  %p185_p3 = scmp.lt.s32.totalorder %s1294_s19, 255  ;;  %p1362_p4 = scmp.ne.s32.totalorder %s1289_s16, 0 }
   0xf   : > { %1399 = vmatpush3.bf16.msra.mxu0 %v521_v1  ;;  %1465 = vmatpush3.bf16.msra.mxu1 %v521_v1  ;;  %vm881_vm3 = vcmask (!%p1362_p4), 16384  }
  0x10   : > { %s2357_s19 = smov (!%p185_p3, %s1294_s19), 255 }
  0x11   : > { %s1295_s20 = sshll.u32 %s2357_s19, 2  ;;  %s1297_s24 = sshll.u32 %s2357_s19, 3 }
  0x12   : > { %s1562_s23 = scalar_lea.vmem %s2299_s0, %s1295_s20  ;;  %s1632_s27 = scalar_lea.vmem %s2301_s2, %s1297_s24 }
  0x13   : > { %v1477_v2 = vld [vmem:[%s1562_s23] sm:$0xff]   ;;  %v1479_v4 = vld [vmem:[%s1562_s23 + $0x8] sm:$0xff]   ;;  %v1481_v6 = vld [vmem:[%s1562_s23 + $0x10] sm:$0xff]  }
  0x14   : > { %v1478_v3 = vld [vmem:[%s1562_s23 + $0x80] sm:$0xff]   ;;  %1400 = vmatprep.mubr.msk.bf16.mxu0 %vm422_vm1, %v1477_v2  ;;  %v1480_v5 = vld [vmem:[%s1562_s23 + $0x88] sm:$0xff]   ;;  %v1482_v7 = vld [vmem:[%s1562_s23 + $0x90] sm:$0xff]  }
  0x15   : > { %1432 = vmatprep.mubr.msk.bf16.mxu1 %vm422_vm1, %v1478_v3  ;;  %1401 = vmatmul.mubr.msk.bf16.vlgmr.msra.gmra.mrb[0].mxu0 %vm422_vm1, %v1479_v4  ;;  %v1483_v8 = vld [vmem:[%s1562_s23 + $0x18] sm:$0xff]   ;;  %v1485_v10 = vld [vmem:[%s1562_s23 + $0x20] sm:$0xff]   ;;  %v1487_v12 = vld [vmem:[%s1562_s23 + $0x28] sm:$0xff]  }
  0x16   : > { %1433 = vmatmul.mubr.msk.bf16.vlgmr.msra.gmra.mrb[0].mxu1 %vm422_vm1, %v1480_v5  ;;  %1404 = vmatprep.mubr.msk.bf16.mxu0 %vm422_vm1, %v1481_v6  ;;  %v1484_v9 = vld [vmem:[%s1562_s23 + $0x98] sm:$0xff]   ;;  %v1486_v11 = vld [vmem:[%s1562_s23 + $0xa0] sm:$0xff]   ;;  %v1488_v13 = vld [vmem:[%s1562_s23 + $0xa8] sm:$0xff]  }
  0x17   : > { %1436 = vmatprep.mubr.msk.bf16.mxu1 %vm422_vm1, %v1482_v7  ;;  %v1489_v14 = vld [vmem:[%s1562_s23 + $0x30] sm:$0xff]   ;;  %v1491_v16 = vld [vmem:[%s1562_s23 + $0x38] sm:$0xff]   ;;  %v1493_v18 = vld [vmem:[%s1562_s23 + $0x40] sm:$0xff]  }
  0x18   : > { %v1490_v15 = vld [vmem:[%s1562_s23 + $0xb0] sm:$0xff]   ;;  %v1492_v17 = vld [vmem:[%s1562_s23 + $0xb8] sm:$0xff]   ;;  %v1494_v19 = vld [vmem:[%s1562_s23 + $0xc0] sm:$0xff]  }
  0x19   : > { %v1495_v20 = vld [vmem:[%s1562_s23 + $0x48] sm:$0xff]   ;;  %v1497_v22 = vld [vmem:[%s1562_s23 + $0x50] sm:$0xff]   ;;  %v1499_v24 = vld [vmem:[%s1562_s23 + $0x58] sm:$0xff]  }
  0x1a   : > { %v1496_v21 = vld [vmem:[%s1562_s23 + $0xc8] sm:$0xff]   ;;  %v1498_v23 = vld [vmem:[%s1562_s23 + $0xd0] sm:$0xff]   ;;  %v1500_v25 = vld [vmem:[%s1562_s23 + $0xd8] sm:$0xff]  }
  0x1b   : > { %v1501_v26 = vld [vmem:[%s1562_s23 + $0x60] sm:$0xff]   ;;  %v1503_v28 = vld [vmem:[%s1562_s23 + $0x68] sm:$0xff]   ;;  %v1505_v30 = vld [vmem:[%s1562_s23 + $0x70] sm:$0xff]  }
  0x1c   : > { %v1502_v27 = vld [vmem:[%s1562_s23 + $0xe0] sm:$0xff]   ;;  %v1504_v29 = vld [vmem:[%s1562_s23 + $0xe8] sm:$0xff]   ;;  %v1506_v31 = vld [vmem:[%s1562_s23 + $0xf0] sm:$0xff]  }
  0x1d   : > { %1405 = vmatmul.mubr.msk.bf16.gmra.mrb[4].mxu0 %vm422_vm1, %v1483_v8  ;;  %v1507_v32 = vld [vmem:[%s1562_s23 + $0x78] sm:$0xff]  }
  0x1e   : > { %1437 = vmatmul.mubr.msk.bf16.gmra.mrb[4].mxu1 %vm422_vm1, %v1484_v9  ;;  %1408 = vmatprep.mubr.msk.bf16.mxu0 %vm422_vm1, %v1485_v10  ;;  %v1508_v33 = vld [vmem:[%s1562_s23 + $0xf8] sm:$0xff]  }
  0x1f   : > { %1440 = vmatprep.mubr.msk.bf16.mxu1 %vm422_vm1, %v1486_v11 }
  0x25   : > { %1409 = vmatmul.mubr.msk.bf16.gmra.mrb[8].mxu0 %vm422_vm1, %v1487_v12 }
  0x26   : > { %1441 = vmatmul.mubr.msk.bf16.gmra.mrb[8].mxu1 %vm422_vm1, %v1488_v13  ;;  %1412 = vmatprep.mubr.msk.bf16.mxu0 %vm422_vm1, %v1489_v14 }
  0x27   : > { %1444 = vmatprep.mubr.msk.bf16.mxu1 %vm422_vm1, %v1490_v15 }
  0x2d   : > { %1413 = vmatmul.mubr.msk.bf16.gmra.mrb[12].mxu0 %vm422_vm1, %v1491_v16 }
  0x2e   : > { %1445 = vmatmul.mubr.msk.bf16.gmra.mrb[12].mxu1 %vm422_vm1, %v1492_v17  ;;  %1416 = vmatprep.mubr.msk.bf16.mxu0 %vm422_vm1, %v1493_v18 }
  0x2f   : > { %1448 = vmatprep.mubr.msk.bf16.mxu1 %vm422_vm1, %v1494_v19 }
  0x35   : > { %1417 = vmatmul.mubr.msk.bf16.gmra.mrb[16].mxu0 %vm422_vm1, %v1495_v20 }
  0x36   : > { %1449 = vmatmul.mubr.msk.bf16.gmra.mrb[16].mxu1 %vm422_vm1, %v1496_v21  ;;  %1420 = vmatprep.mubr.msk.bf16.mxu0 %vm422_vm1, %v1497_v22 }
  0x37   : > { %1452 = vmatprep.mubr.msk.bf16.mxu1 %vm422_vm1, %v1498_v23 }
  0x3d   : > { %1421 = vmatmul.mubr.msk.bf16.gmra.mrb[20].mxu0 %vm422_vm1, %v1499_v24 }
  0x3e   : > { %1453 = vmatmul.mubr.msk.bf16.gmra.mrb[20].mxu1 %vm422_vm1, %v1500_v25  ;;  %1424 = vmatprep.mubr.msk.bf16.mxu0 %vm422_vm1, %v1501_v26 }
  0x3f   : > { %1456 = vmatprep.mubr.msk.bf16.mxu1 %vm422_vm1, %v1502_v27 }
  0x45   : > { %1425 = vmatmul.mubr.msk.bf16.gmra.mrb[24].mxu0 %vm422_vm1, %v1503_v28 }
  0x46   : > { %1457 = vmatmul.mubr.msk.bf16.gmra.mrb[24].mxu1 %vm422_vm1, %v1504_v29  ;;  %1428 = vmatprep.mubr.msk.bf16.mxu0 %vm422_vm1, %v1505_v30 }
  0x47   : > { %1460 = vmatprep.mubr.msk.bf16.mxu1 %vm422_vm1, %v1506_v31 }
  0x4d   : > { %1429 = vmatmul.mubr.msk.bf16.gmra.mrb[28].mxu0 %vm422_vm1, %v1507_v32 }
  0x4e   : > { %1461 = vmatmul.mubr.msk.bf16.gmra.mrb[28].mxu1 %vm422_vm1, %v1508_v33 }
  0xe8   : > { %v1634_v34 = vpop.f32.mrb[0].mxu0 }
  0xe9   : > { %815 = vst.msk [vmem:[%s1632_s27 + $0x10] sm:$0xff] %vm812_vm2, %v1634_v34  ;;  %v1639_v35 = vpop.f32.mrb[0].mxu1  ;;  %v1641_v36 = vpop.f32.mrb[1].mxu0 }
  0xea   : > { %847 = vst.msk [vmem:[%s1632_s27 + $0x110] sm:$0xff] %vm812_vm2, %v1639_v35  ;;  %813 = vst.msk [vmem:[%s1632_s27] sm:$0xff] %vm812_vm2, %v1641_v36  ;;  %v1649_v37 = vpop.f32.mrb[1].mxu1  ;;  %v1651_v38 = vpop.f32.mrb[2].mxu0 }
  0xeb   : > { %845 = vst.msk [vmem:[%s1632_s27 + $0x100] sm:$0xff] %vm812_vm2, %v1649_v37  ;;  %816 = vst.msk [vmem:[%s1632_s27 + $0x18] sm:$0xff] %vm812_vm2, %v1651_v38  ;;  %v1659_v39 = vpop.f32.mrb[2].mxu1  ;;  %v1661_v40 = vpop.f32.mrb[3].mxu0 }
  0xec   : > { %848 = vst.msk [vmem:[%s1632_s27 + $0x118] sm:$0xff] %vm812_vm2, %v1659_v39  ;;  %814 = vst.msk [vmem:[%s1632_s27 + $0x8] sm:$0xff] %vm812_vm2, %v1661_v40  ;;  %v1669_v41 = vpop.f32.mrb[3].mxu1 }
  0xed   : > { %846 = vst.msk [vmem:[%s1632_s27 + $0x108] sm:$0xff] %vm812_vm2, %v1669_v41 }
  0xf0   : > { %v1674_v42 = vpop.f32.mrb[4].mxu0 }
  0xf1   : > { %819 = vst.msk [vmem:[%s1632_s27 + $0x30] sm:$0xff] %vm812_vm2, %v1674_v42  ;;  %v1679_v43 = vpop.f32.mrb[4].mxu1  ;;  %v1681_v44 = vpop.f32.mrb[5].mxu0 }
  0xf2   : > { %851 = vst.msk [vmem:[%s1632_s27 + $0x130] sm:$0xff] %vm812_vm2, %v1679_v43  ;;  %817 = vst.msk [vmem:[%s1632_s27 + $0x20] sm:$0xff] %vm812_vm2, %v1681_v44  ;;  %v1689_v45 = vpop.f32.mrb[5].mxu1  ;;  %v1691_v46 = vpop.f32.mrb[6].mxu0 }
  0xf3   : > { %849 = vst.msk [vmem:[%s1632_s27 + $0x120] sm:$0xff] %vm812_vm2, %v1689_v45  ;;  %820 = vst.msk [vmem:[%s1632_s27 + $0x38] sm:$0xff] %vm812_vm2, %v1691_v46  ;;  %v1699_v47 = vpop.f32.mrb[6].mxu1  ;;  %v1701_v48 = vpop.f32.mrb[7].mxu0 }
  0xf4   : > { %852 = vst.msk [vmem:[%s1632_s27 + $0x138] sm:$0xff] %vm812_vm2, %v1699_v47  ;;  %818 = vst.msk [vmem:[%s1632_s27 + $0x28] sm:$0xff] %vm812_vm2, %v1701_v48  ;;  %v1709_v49 = vpop.f32.mrb[7].mxu1 }
  0xf5   : > { %850 = vst.msk [vmem:[%s1632_s27 + $0x128] sm:$0xff] %vm812_vm2, %v1709_v49 }
  0xf8   : > { %v1714_v50 = vpop.f32.mrb[8].mxu0 }
  0xf9   : > { %823 = vst.msk [vmem:[%s1632_s27 + $0x50] sm:$0xff] %vm812_vm2, %v1714_v50  ;;  %v1719_v51 = vpop.f32.mrb[8].mxu1  ;;  %v1721_v52 = vpop.f32.mrb[9].mxu0 }
  0xfa   : > { %855 = vst.msk [vmem:[%s1632_s27 + $0x150] sm:$0xff] %vm812_vm2, %v1719_v51  ;;  %821 = vst.msk [vmem:[%s1632_s27 + $0x40] sm:$0xff] %vm812_vm2, %v1721_v52  ;;  %v1729_v53 = vpop.f32.mrb[9].mxu1  ;;  %v1731_v54 = vpop.f32.mrb[10].mxu0 }
  0xfb   : > { %853 = vst.msk [vmem:[%s1632_s27 + $0x140] sm:$0xff] %vm812_vm2, %v1729_v53  ;;  %824 = vst.msk [vmem:[%s1632_s27 + $0x58] sm:$0xff] %vm812_vm2, %v1731_v54  ;;  %v1739_v55 = vpop.f32.mrb[10].mxu1  ;;  %v1741_v56 = vpop.f32.mrb[11].mxu0 }
  0xfc   : > { %856 = vst.msk [vmem:[%s1632_s27 + $0x158] sm:$0xff] %vm812_vm2, %v1739_v55  ;;  %822 = vst.msk [vmem:[%s1632_s27 + $0x48] sm:$0xff] %vm812_vm2, %v1741_v56  ;;  %v1749_v57 = vpop.f32.mrb[11].mxu1 }
  0xfd   : > { %854 = vst.msk [vmem:[%s1632_s27 + $0x148] sm:$0xff] %vm812_vm2, %v1749_v57 }
 0x100   : > { %v1754_v58 = vpop.f32.mrb[12].mxu0 }
 0x101   : > { %827 = vst.msk [vmem:[%s1632_s27 + $0x70] sm:$0xff] %vm812_vm2, %v1754_v58  ;;  %v1759_v59 = vpop.f32.mrb[12].mxu1  ;;  %v1761_v60 = vpop.f32.mrb[13].mxu0 }
 0x102   : > { %859 = vst.msk [vmem:[%s1632_s27 + $0x170] sm:$0xff] %vm812_vm2, %v1759_v59  ;;  %825 = vst.msk [vmem:[%s1632_s27 + $0x60] sm:$0xff] %vm812_vm2, %v1761_v60  ;;  %v1769_v61 = vpop.f32.mrb[13].mxu1  ;;  %v1771_v62 = vpop.f32.mrb[14].mxu0 }
 0x103   : > { %857 = vst.msk [vmem:[%s1632_s27 + $0x160] sm:$0xff] %vm812_vm2, %v1769_v61  ;;  %828 = vst.msk [vmem:[%s1632_s27 + $0x78] sm:$0xff] %vm812_vm2, %v1771_v62  ;;  %v1779_v63 = vpop.f32.mrb[14].mxu1  ;;  %v1781_v0 = vpop.f32.mrb[15].mxu0 }
 0x104   : > { %860 = vst.msk [vmem:[%s1632_s27 + $0x178] sm:$0xff] %vm812_vm2, %v1779_v63  ;;  %826 = vst.msk [vmem:[%s1632_s27 + $0x68] sm:$0xff] %vm812_vm2, %v1781_v0  ;;  %v1789_v1 = vpop.f32.mrb[15].mxu1 }
 0x105   : > { %858 = vst.msk [vmem:[%s1632_s27 + $0x168] sm:$0xff] %vm812_vm2, %v1789_v1 }
 0x108   : > { %v1794_v2 = vpop.f32.mrb[16].mxu0 }
 0x109   : > { %831 = vst.msk [vmem:[%s1632_s27 + $0x90] sm:$0xff] %vm812_vm2, %v1794_v2  ;;  %v1799_v3 = vpop.f32.mrb[16].mxu1  ;;  %v1801_v4 = vpop.f32.mrb[17].mxu0 }
 0x10a   : > { %863 = vst.msk [vmem:[%s1632_s27 + $0x190] sm:$0xff] %vm812_vm2, %v1799_v3  ;;  %829 = vst.msk [vmem:[%s1632_s27 + $0x80] sm:$0xff] %vm812_vm2, %v1801_v4  ;;  %v1809_v5 = vpop.f32.mrb[17].mxu1  ;;  %v1811_v6 = vpop.f32.mrb[18].mxu0 }
 0x10b   : > { %861 = vst.msk [vmem:[%s1632_s27 + $0x180] sm:$0xff] %vm812_vm2, %v1809_v5  ;;  %832 = vst.msk [vmem:[%s1632_s27 + $0x98] sm:$0xff] %vm812_vm2, %v1811_v6  ;;  %v1819_v7 = vpop.f32.mrb[18].mxu1  ;;  %v1821_v8 = vpop.f32.mrb[19].mxu0 }
 0x10c   : > { %2330 = vst [vmem:[#allocation2_spill] sm:$0xff] %v1819_v7  ;;  %864 = vst.msk [vmem:[%s1632_s27 + $0x198] sm:$0xff] %vm812_vm2, %v1819_v7  ;;  %v1829_v9 = vpop.f32.mrb[19].mxu1 }
 0x10d   : > { %830 = vst.msk [vmem:[%s1632_s27 + $0x88] sm:$0xff] %vm812_vm2, %v1821_v8  ;;  %862 = vst.msk [vmem:[%s1632_s27 + $0x188] sm:$0xff] %vm812_vm2, %v1829_v9 }
 0x110   : > { %v1834_v10 = vpop.f32.mrb[20].mxu0 }
 0x111   : > { %835 = vst.msk [vmem:[%s1632_s27 + $0xb0] sm:$0xff] %vm812_vm2, %v1834_v10  ;;  %v1839_v11 = vpop.f32.mrb[20].mxu1  ;;  %v1841_v12 = vpop.f32.mrb[21].mxu0 }
 0x112   : > { %2331 = vst [vmem:[#allocation3_spill] sm:$0xff] %v1839_v11  ;;  %867 = vst.msk [vmem:[%s1632_s27 + $0x1b0] sm:$0xff] %vm812_vm2, %v1839_v11  ;;  %v1849_v13 = vpop.f32.mrb[21].mxu1  ;;  %v1851_v14 = vpop.f32.mrb[22].mxu0 }
 0x113   : > { %833 = vst.msk [vmem:[%s1632_s27 + $0xa0] sm:$0xff] %vm812_vm2, %v1841_v12  ;;  %2332 = vst [vmem:[#allocation4_spill] sm:$0xff] %v1849_v13  ;;  %v1859_v15 = vpop.f32.mrb[22].mxu1  ;;  %v1861_v16 = vpop.f32.mrb[23].mxu0 }
 0x114   : > { %865 = vst.msk [vmem:[%s1632_s27 + $0x1a0] sm:$0xff] %vm812_vm2, %v1849_v13  ;;  %836 = vst.msk [vmem:[%s1632_s27 + $0xb8] sm:$0xff] %vm812_vm2, %v1851_v14  ;;  %v1869_v17 = vpop.f32.mrb[23].mxu1 }
 0x115   : > { %2333 = vst [vmem:[#allocation5_spill] sm:$0xff] %v1859_v15  ;;  %868 = vst.msk [vmem:[%s1632_s27 + $0x1b8] sm:$0xff] %vm812_vm2, %v1859_v15 }
 0x116   : > { %834 = vst.msk [vmem:[%s1632_s27 + $0xa8] sm:$0xff] %vm812_vm2, %v1861_v16  ;;  %2334 = vst [vmem:[#allocation6_spill] sm:$0xff] %v1869_v17 }
 0x117   : > { %866 = vst.msk [vmem:[%s1632_s27 + $0x1a8] sm:$0xff] %vm812_vm2, %v1869_v17 }
 0x118   : > { %v1874_v18 = vpop.f32.mrb[24].mxu0 }
 0x119   : > { %839 = vst.msk [vmem:[%s1632_s27 + $0xd0] sm:$0xff] %vm812_vm2, %v1874_v18  ;;  %v1879_v19 = vpop.f32.mrb[24].mxu1  ;;  %v1881_v20 = vpop.f32.mrb[25].mxu0 }
 0x11a   : > { %2335 = vst [vmem:[#allocation7_spill] sm:$0xff] %v1879_v19  ;;  %871 = vst.msk [vmem:[%s1632_s27 + $0x1d0] sm:$0xff] %vm812_vm2, %v1879_v19  ;;  %v1889_v21 = vpop.f32.mrb[25].mxu1  ;;  %v1891_v22 = vpop.f32.mrb[26].mxu0 }
 0x11b   : > { %837 = vst.msk [vmem:[%s1632_s27 + $0xc0] sm:$0xff] %vm812_vm2, %v1881_v20  ;;  %2336 = vst [vmem:[#allocation8_spill] sm:$0xff] %v1889_v21  ;;  %v1899_v23 = vpop.f32.mrb[26].mxu1  ;;  %v1901_v24 = vpop.f32.mrb[27].mxu0 }
 0x11c   : > { %869 = vst.msk [vmem:[%s1632_s27 + $0x1c0] sm:$0xff] %vm812_vm2, %v1889_v21  ;;  %840 = vst.msk [vmem:[%s1632_s27 + $0xd8] sm:$0xff] %vm812_vm2, %v1891_v22  ;;  %v1909_v25 = vpop.f32.mrb[27].mxu1 }
 0x11d   : > { %2337 = vst [vmem:[#allocation9_spill] sm:$0xff] %v1899_v23  ;;  %872 = vst.msk [vmem:[%s1632_s27 + $0x1d8] sm:$0xff] %vm812_vm2, %v1899_v23 }
 0x11e   : > { %838 = vst.msk [vmem:[%s1632_s27 + $0xc8] sm:$0xff] %vm812_vm2, %v1901_v24  ;;  %2338 = vst [vmem:[#allocation10_spill] sm:$0xff] %v1909_v25 }
 0x11f   : > { %870 = vst.msk [vmem:[%s1632_s27 + $0x1c8] sm:$0xff] %vm812_vm2, %v1909_v25 }
 0x120   : > { %v1914_v26 = vpop.f32.mrb[28].mxu0 }
 0x121   : > { %843 = vst.msk [vmem:[%s1632_s27 + $0xf0] sm:$0xff] %vm812_vm2, %v1914_v26  ;;  %v1919_v27 = vpop.f32.mrb[28].mxu1  ;;  %v1921_v28 = vpop.f32.mrb[29].mxu0  ;;  %880 = sbr.rel (%p1362_p4) target bundleno = 297 (0x129), region = 32 }
 0x122   : > { %2339 = vst [vmem:[#allocation11_spill] sm:$0xff] %v1919_v27  ;;  %875 = vst.msk [vmem:[%s1632_s27 + $0x1f0] sm:$0xff] %vm812_vm2, %v1919_v27  ;;  %v1929_v29 = vpop.f32.mrb[29].mxu1  ;;  %v1931_v30 = vpop.f32.mrb[30].mxu0  ;;  %v1517_v27 = vmov (!%p1362_p4), 0.0  }
 0x123   : > { %841 = vst.msk [vmem:[%s1632_s27 + $0xe0] sm:$0xff] %vm812_vm2, %v1921_v28  ;;  %2340 = vst [vmem:[#allocation12_spill] sm:$0xff] %v1929_v29  ;;  %v1939_v31 = vpop.f32.mrb[30].mxu1  ;;  %v1941_v32 = vpop.f32.mrb[31].mxu0 }
 0x124   : > { %873 = vst.msk [vmem:[%s1632_s27 + $0x1e0] sm:$0xff] %vm812_vm2, %v1929_v29  ;;  %844 = vst.msk [vmem:[%s1632_s27 + $0xf8] sm:$0xff] %vm812_vm2, %v1931_v30  ;;  %v1949_v33 = vpop.f32.mrb[31].mxu1 }
 0x125   : > { %2341 = vst [vmem:[#allocation13_spill] sm:$0xff] %v1939_v31  ;;  %876 = vst.msk [vmem:[%s1632_s27 + $0x1f8] sm:$0xff] %vm812_vm2, %v1939_v31 }
 0x126   : > { %842 = vst.msk [vmem:[%s1632_s27 + $0xe8] sm:$0xff] %vm812_vm2, %v1941_v32  ;;  %2342 = vst [vmem:[#allocation14_spill] sm:$0xff] %v1949_v33 }
 0x127   : > { %874 = vst.msk [vmem:[%s1632_s27 + $0x1e8] sm:$0xff] %vm812_vm2, %v1949_v33 }
 0x128   : > { %882 = vst.msk [vmem:[%s2302_s3] sm:$0x1] %vm881_vm3, %v1517_v27  ;;  %883 = vst.msk [vmem:[%s2303_s4] sm:$0x1] %vm881_vm3, %v1517_v27 }
 0x129 PF: > { %v885_v31 = vsel %vm812_vm2, %v1641_v36, 0.0  ;;  %v886_v33 = vsel %vm812_vm2, %v1661_v40, 0.0  ;;  %v888_v29 = vsel %vm812_vm2, %v1634_v34, 0.0  ;;  %v890_v19 = vsel %vm812_vm2, %v1651_v38, 0.0 }
 0x12a   : > { %v887_v23 = vadd.f32 %v886_v33, %v885_v31  ;;  %v892_v21 = vsel %vm812_vm2, %v1681_v44, 0.0  ;;  %v894_v27 = vsel %vm812_vm2, %v1701_v48, 0.0  ;;  %v896_v17 = vsel %vm812_vm2, %v1674_v42, 0.0 }
 0x12b   : > { %v898_v7 = vsel %vm812_vm2, %v1691_v46, 0.0  ;;  %v900_v33 = vsel %vm812_vm2, %v1721_v52, 0.0  ;;  %vm1019_vm4 = vcmask 16384  }
 0x12c   : > { %v889_v25 = vadd.f32 %v888_v29, %v887_v23  ;;  %v902_v29 = vsel %vm812_vm2, %v1741_v56, 0.0 }
 0x12e   : > { %v891_v15 = vadd.f32 %v890_v19, %v889_v25  ;;  %v904_v25 = vsel %vm812_vm2, %v1714_v50, 0.0 }
 0x130   : > { %v893_v11 = vadd.f32 %v892_v21, %v891_v15  ;;  %v906_v21 = vsel %vm812_vm2, %v1731_v54, 0.0 }
 0x132   : > { %v895_v13 = vadd.f32 %v894_v27, %v893_v11  ;;  %v908_v27 = vsel %vm812_vm2, %v1761_v60, 0.0 }
 0x134   : > { %v897_v31 = vadd.f32 %v896_v17, %v895_v13  ;;  %v910_v17 = vsel %vm812_vm2, %v1781_v0, 0.0 }
 0x136   : > { %v899_v23 = vadd.f32 %v898_v7, %v897_v31  ;;  %v912_v31 = vsel %vm812_vm2, %v1754_v58, 0.0 }
 0x138   : > { %v901_v19 = vadd.f32 %v900_v33, %v899_v23  ;;  %v914_v23 = vsel %vm812_vm2, %v1771_v62, 0.0 }
 0x13a   : > { %v903_v15 = vadd.f32 %v902_v29, %v901_v19  ;;  %v916_v19 = vsel %vm812_vm2, %v1801_v4, 0.0 }
 0x13c   : > { %v905_v11 = vadd.f32 %v904_v25, %v903_v15  ;;  %v918_v15 = vsel %vm812_vm2, %v1821_v8, 0.0 }
 0x13e   : > { %v907_v13 = vadd.f32 %v906_v21, %v905_v11  ;;  %v920_v11 = vsel %vm812_vm2, %v1794_v2, 0.0 }
 0x140   : > { %v909_v7 = vadd.f32 %v908_v27, %v907_v13  ;;  %v1022_v27 = vmul.f32 %v1641_v36, %v1641_v36 }
 0x142   : > { %v911_v33 = vadd.f32 %v910_v17, %v909_v7  ;;  %v1023_v17 = vmul.f32 %v1661_v40, %v1661_v40  ;;  %v1024_v7 = vmul.f32 %v1634_v34, %v1634_v34 }
 0x144   : > { %v913_v29 = vadd.f32 %v912_v31, %v911_v33  ;;  %v922_v31 = vsel %vm812_vm2, %v1811_v6, 0.0  ;;  %v1087_v40 = vsel %vm812_vm2, %v1023_v17, 0.0  ;;  %v1089_v34 = vsel %vm812_vm2, %v1024_v7, 0.0 }
 0x145   : > { %v930_v7 = vsel %vm812_vm2, %v1851_v14, 0.0 }
 0x146   : > { %v915_v25 = vadd.f32 %v914_v23, %v913_v29  ;;  %v1025_v23 = vmul.f32 %v1651_v38, %v1651_v38  ;;  %v924_v29 = vsel %vm812_vm2, %v1841_v12, 0.0  ;;  %v1027_v38 = vmul.f32 %v1701_v48, %v1701_v48 }
 0x147   : > { %v1029_v48 = vmul.f32 %v1691_v46, %v1691_v46  ;;  %v1031_v46 = vmul.f32 %v1741_v56, %v1741_v56  ;;  %v1033_v56 = vmul.f32 %v1731_v54, %v1731_v54  ;;  %v1035_v54 = vmul.f32 %v1781_v0, %v1781_v0 }
 0x148   : > { %v917_v21 = vadd.f32 %v916_v19, %v915_v25  ;;  %v1086_v19 = vsel %vm812_vm2, %v1022_v27, 0.0  ;;  %v1026_v25 = vmul.f32 %v1681_v44, %v1681_v44  ;;  %v928_v27 = vsel %vm812_vm2, %v1834_v10, 0.0 }
 0x149   : > { %v1028_v44 = vmul.f32 %v1674_v42, %v1674_v42  ;;  %v1030_v42 = vmul.f32 %v1721_v52, %v1721_v52  ;;  %v1032_v52 = vmul.f32 %v1714_v50, %v1714_v50  ;;  %v1034_v50 = vmul.f32 %v1761_v60, %v1761_v60 }
 0x14a   : > { %v919_v13 = vadd.f32 %v918_v15, %v917_v21  ;;  %v926_v15 = vsel %vm812_vm2, %v1861_v16, 0.0  ;;  %v1088_v21 = vadd.f32 %v1087_v40, %v1086_v19  ;;  %v1093_v17 = vsel %vm812_vm2, %v1026_v25, 0.0 }
 0x14b   : > { %v1097_v25 = vsel %vm812_vm2, %v1028_v44, 0.0  ;;  %v938_v44 = vsel %vm812_vm2, %v1891_v22, 0.0  ;;  %v1036_v60 = vmul.f32 %v1754_v58, %v1754_v58  ;;  %v1037_v0 = vmul.f32 %v1771_v62, %v1771_v62 }
 0x14c   : > { %v921_v33 = vadd.f32 %v920_v11, %v919_v13  ;;  %v1091_v13 = vsel %vm812_vm2, %v1025_v23, 0.0  ;;  %v1095_v23 = vsel %vm812_vm2, %v1027_v38, 0.0  ;;  %v1099_v38 = vsel %vm812_vm2, %v1029_v48, 0.0 }
 0x14d   : > { %v1038_v58 = vmul.f32 %v1801_v4, %v1801_v4  ;;  %v1039_v62 = vmul.f32 %v1821_v8, %v1821_v8  ;;  %v1040_v4 = vmul.f32 %v1794_v2, %v1794_v2  ;;  %v1041_v8 = vmul.f32 %v1811_v6, %v1811_v6 }
 0x14e   : > { %v923_v36 = vadd.f32 %v922_v31, %v921_v33  ;;  %v1090_v31 = vadd.f32 %v1089_v34, %v1088_v21  ;;  %v1042_v2 = vmul.f32 %v1841_v12, %v1841_v12  ;;  %v1043_v6 = vmul.f32 %v1861_v16, %v1861_v16 }
 0x14f   : > { %v1044_v12 = vmul.f32 %v1834_v10, %v1834_v10  ;;  %v1045_v16 = vmul.f32 %v1851_v14, %v1851_v14  ;;  %v1046_v10 = vmul.f32 %v1881_v20, %v1881_v20  ;;  %v1047_v14 = vmul.f32 %v1901_v24, %v1901_v24 }
 0x150   : > { %v925_v11 = vadd.f32 %v924_v29, %v923_v36  ;;  %v1092_v19 = vadd.f32 %v1091_v13, %v1090_v31  ;;  %v932_v36 = vsel %vm812_vm2, %v1881_v20, 0.0  ;;  %v936_v13 = vsel %vm812_vm2, %v1874_v18, 0.0 }
 0x151   : > { %v1048_v20 = vmul.f32 %v1874_v18, %v1874_v18  ;;  %v1050_v18 = vmul.f32 %v1921_v28, %v1921_v28 }
 0x152   : > { %v927_v33 = vadd.f32 %v926_v15, %v925_v11  ;;  %v1094_v40 = vadd.f32 %v1093_v17, %v1092_v19  ;;  %v934_v15 = vsel %vm812_vm2, %v1901_v24, 0.0  ;;  %v1103_v19 = vsel %vm812_vm2, %v1031_v46, 0.0 }
 0x153   : > { %v1109_v46 = vsel %vm812_vm2, %v1034_v50, 0.0  ;;  %v1049_v24 = vmul.f32 %v1891_v22, %v1891_v22  ;;  %v1051_v22 = vmul.f32 %v1941_v32, %v1941_v32 }
 0x154   : > { %v929_v29 = vadd.f32 %v928_v27, %v927_v33  ;;  %v1096_v21 = vadd.f32 %v1095_v23, %v1094_v40  ;;  %v1101_v33 = vsel %vm812_vm2, %v1030_v42, 0.0  ;;  %v942_v40 = vsel %vm812_vm2, %v1941_v32, 0.0 }
 0x155   : > { %v1053_v32 = vmul.f32 %v1931_v30, %v1931_v30 }
 0x156   : > { %v931_v34 = vadd.f32 %v930_v7, %v929_v29  ;;  %v1098_v27 = vadd.f32 %v1097_v25, %v1096_v21  ;;  %v940_v29 = vsel %vm812_vm2, %v1921_v28, 0.0  ;;  %v1107_v25 = vsel %vm812_vm2, %v1033_v56, 0.0 }
 0x157   : > { %v1052_v28 = vmul.f32 %v1914_v26, %v1914_v26 }
 0x158   : > { %v933_v11 = vadd.f32 %v932_v36, %v931_v34  ;;  %v1100_v17 = vadd.f32 %v1099_v38, %v1098_v27  ;;  %v1105_v36 = vsel %vm812_vm2, %v1032_v52, 0.0  ;;  %v946_v38 = vsel %vm812_vm2, %v1931_v30, 0.0 }
 0x159   : > { %v948_v52 = vsel %vm812_vm2, %v1649_v37, 0.0  ;;  %v1055_v30 = vmul.f32 %v1669_v41, %v1669_v41 }
 0x15a   : > { %v935_v31 = vadd.f32 %v934_v15, %v933_v11  ;;  %v1102_v48 = vadd.f32 %v1101_v33, %v1100_v17  ;;  %v944_v15 = vsel %vm812_vm2, %v1914_v26, 0.0  ;;  %v1113_v17 = vsel %vm812_vm2, %v1036_v60, 0.0 }
 0x15b   : > { %v958_v60 = vsel %vm812_vm2, %v1709_v49, 0.0  ;;  %v1054_v26 = vmul.f32 %v1649_v37, %v1649_v37  ;;  %v1056_v37 = vmul.f32 %v1639_v35, %v1639_v35 }
 0x15c   : > { %v937_v7 = vadd.f32 %v936_v13, %v935_v31  ;;  %v1104_v34 = vadd.f32 %v1103_v19, %v1102_v48  ;;  %v1111_v31 = vsel %vm812_vm2, %v1035_v54, 0.0  ;;  %v952_v48 = vsel %vm812_vm2, %v1639_v35, 0.0 }
 0x15d   : > { %v1119_v54 = vsel %vm812_vm2, %v1039_v62, 0.0  ;;  %v1129_v62 = vsel %vm812_vm2, %v1044_v12, 0.0  ;;  %v978_v12 = vsel %vm812_vm2, %v1779_v63, 0.0  ;;  %v1058_v35 = vmul.f32 %v1689_v45, %v1689_v45 }
 0x15e   : > { %v939_v23 = vadd.f32 %v938_v44, %v937_v7  ;;  %v1106_v21 = vadd.f32 %v1105_v36, %v1104_v34  ;;  %v950_v7 = vsel %vm812_vm2, %v1669_v41, 0.0  ;;  %v1117_v36 = vsel %vm812_vm2, %v1038_v58, 0.0 }
 0x15f   : > { %v1057_v41 = vmul.f32 %v1659_v39, %v1659_v39 }
 0x160   : > { %v941_v42 = vadd.f32 %v940_v29, %v939_v23  ;;  %v1108_v13 = vadd.f32 %v1107_v25, %v1106_v21  ;;  %v1115_v29 = vsel %vm812_vm2, %v1037_v0, 0.0  ;;  %v956_v25 = vsel %vm812_vm2, %v1689_v45, 0.0 }
 0x161   : > { %v1060_v45 = vmul.f32 %v1679_v43, %v1679_v43 }
 0x162   : > { %v943_v11 = vadd.f32 %v942_v40, %v941_v42  ;;  %v1110_v33 = vadd.f32 %v1109_v46, %v1108_v13  ;;  %v954_v40 = vsel %vm812_vm2, %v1659_v39, 0.0  ;;  %v1123_v13 = vsel %vm812_vm2, %v1041_v8, 0.0 }
 0x163   : > { %v1059_v39 = vmul.f32 %v1709_v49, %v1709_v49  ;;  %v1061_v49 = vmul.f32 %v1699_v47, %v1699_v47 }
 0x164   : > { %v945_v27 = vadd.f32 %v944_v15, %v943_v11  ;;  %v1112_v56 = vadd.f32 %v1111_v31, %v1110_v33  ;;  %v1121_v11 = vsel %vm812_vm2, %v1040_v4, 0.0  ;;  %v962_v33 = vsel %vm812_vm2, %v1699_v47, 0.0 }
 0x165   : > { %v968_v4 = vsel %vm812_vm2, %v1719_v51, 0.0  ;;  %v1063_v47 = vmul.f32 %v1749_v57, %v1749_v57 }
 0x166   : > { %v947_v44 = vadd.f32 %v946_v38, %v945_v27  ;;  %v1114_v23 = vadd.f32 %v1113_v17, %v1112_v56  ;;  %v960_v27 = vsel %vm812_vm2, %v1679_v43, 0.0  ;;  %v1127_v17 = vsel %vm812_vm2, %v1043_v6, 0.0 }
 0x167   : > { %v1139_v6 = vsel %vm812_vm2, %v1049_v24, 0.0  ;;  %v1153_v24 = vsel %vm812_vm2, %v1056_v37, 0.0  ;;  %v1062_v43 = vmul.f32 %v1729_v53, %v1729_v53  ;;  %v1167_v37 = vsel %vm812_vm2, %v1063_v47, 0.0 }
 0x168   : > { %v949_v19 = vadd.f32 %v948_v52, %v947_v44  ;;  %v1116_v34 = vadd.f32 %v1115_v29, %v1114_v23  ;;  %v1125_v52 = vsel %vm812_vm2, %v1042_v2, 0.0  ;;  %v966_v29 = vsel %vm812_vm2, %v1749_v57, 0.0 }
 0x169   : > { %v1065_v57 = vmul.f32 %v1739_v55, %v1739_v55 }
 0x16a   : > { %v951_v50 = vadd.f32 %v950_v7, %v949_v19  ;;  %v1118_v15 = vadd.f32 %v1117_v36, %v1116_v34  ;;  %v964_v7 = vsel %vm812_vm2, %v1729_v53, 0.0  ;;  %v1133_v34 = vsel %vm812_vm2, %v1046_v10, 0.0 }
 0x16b   : > { %v1064_v53 = vmul.f32 %v1719_v51, %v1719_v51  ;;  %v1066_v51 = vmul.f32 %v1769_v61, %v1769_v61 }
 0x16c   : > { %v953_v42 = vadd.f32 %v952_v48, %v951_v50  ;;  %v1120_v46 = vadd.f32 %v1119_v54, %v1118_v15  ;;  %v1131_v50 = vsel %vm812_vm2, %v1045_v16, 0.0  ;;  %v972_v15 = vsel %vm812_vm2, %v1769_v61, 0.0 }
 0x16d   : > { %v1068_v61 = vmul.f32 %v1759_v59, %v1759_v59 }
 0x16e   : > { %v955_v21 = vadd.f32 %v954_v40, %v953_v42  ;;  %v1122_v0 = vadd.f32 %v1121_v11, %v1120_v46  ;;  %v970_v42 = vsel %vm812_vm2, %v1739_v55, 0.0  ;;  %v1137_v11 = vsel %vm812_vm2, %v1048_v20, 0.0 }
 0x16f   : > { %v1151_v20 = vsel %vm812_vm2, %v1055_v30, 0.0  ;;  %v1165_v30 = vsel %vm812_vm2, %v1062_v43, 0.0  ;;  %v1067_v55 = vmul.f32 %v1789_v1, %v1789_v1 }
 0x170   : > { %v957_v38 = vadd.f32 %v956_v25, %v955_v21  ;;  %v1124_v44 = vadd.f32 %v1123_v13, %v1122_v0  ;;  %v1135_v25 = vsel %vm812_vm2, %v1047_v14, 0.0  ;;  %v976_v13 = vsel %vm812_vm2, %v1759_v59, 0.0 }
 0x171   : > { %v1149_v14 = vsel %vm812_vm2, %v1054_v26, 0.0  ;;  %v1163_v26 = vsel %vm812_vm2, %v1061_v49, 0.0 }
 0x172   : > { %v959_v31 = vadd.f32 %v958_v60, %v957_v38  ;;  %v1126_v56 = vadd.f32 %v1125_v52, %v1124_v44  ;;  %v974_v60 = vsel %vm812_vm2, %v1789_v1, 0.0  ;;  %v1143_v44 = vsel %vm812_vm2, %v1051_v22, 0.0 }
 0x173   : > { %v1157_v22 = vsel %vm812_vm2, %v1058_v35, 0.0  ;;  %v1171_v35 = vsel %vm812_vm2, %v1065_v57, 0.0  ;;  %v1069_v1 = vmul.f32 %v1779_v63, %v1779_v63  ;;  %v1072_v63 = vmul.f32 %v1799_v3, %v1799_v3 }
 0x174   : > { %v961_v58 = vadd.f32 %v960_v27, %v959_v31  ;;  %v1128_v48 = vadd.f32 %v1127_v17, %v1126_v56  ;;  %v1141_v31 = vsel %vm812_vm2, %v1050_v18, 0.0  ;;  %v982_v56 = vsel %vm812_vm2, %v1829_v9, 0.0 }
 0x175   : > { %v1155_v18 = vsel %vm812_vm2, %v1057_v41, 0.0  ;;  %v1169_v41 = vsel %vm812_vm2, %v1064_v53, 0.0 }
 0x176   : > { %v963_v19 = vadd.f32 %v962_v33, %v961_v58  ;;  %v1130_v36 = vadd.f32 %v1129_v62, %v1128_v48  ;;  %v980_v58 = vsel %vm812_vm2, %v1809_v5, 0.0  ;;  %v1147_v62 = vsel %vm812_vm2, %v1053_v32, 0.0 }
 0x177   : > { %v1161_v32 = vsel %vm812_vm2, %v1060_v45, 0.0  ;;  %v1175_v45 = vsel %vm812_vm2, %v1067_v55, 0.0 }
 0x178   : > { %v965_v23 = vadd.f32 %v964_v7, %v963_v19  ;;  %v1132_v8 = vadd.f32 %v1131_v50, %v1130_v36  ;;  %v1145_v7 = vsel %vm812_vm2, %v1052_v28, 0.0  ;;  %v2343_v50 = vld [vmem:[#allocation2_spill] sm:$0xff]  ;;  %v1159_v28 = vsel %vm812_vm2, %v1059_v39, 0.0 }
 0x179   : > { %v1173_v39 = vsel %vm812_vm2, %v1066_v51, 0.0 }
 0x17a   : > { %v967_v40 = vadd.f32 %v966_v29, %v965_v23  ;;  %v1134_v21 = vadd.f32 %v1133_v34, %v1132_v8  ;;  %v984_v29 = vsel %vm812_vm2, %v1799_v3, 0.0  ;;  %v2344_v34 = vld [vmem:[#allocation4_spill] sm:$0xff] }
 0x17c   : > { %v969_v54 = vadd.f32 %v968_v4, %v967_v40  ;;  %v1136_v46 = vadd.f32 %v1135_v25, %v1134_v21  ;;  %v986_v4 = vsel %vm812_vm2, %v2343_v50, 0.0  ;;  %v2345_v25 = vld [vmem:[#allocation6_spill] sm:$0xff] }
 0x17d   : > { %v1075_v3 = vmul.f32 %v2345_v25, %v2345_v25 }
 0x17e   : > { %v971_v2 = vadd.f32 %v970_v42, %v969_v54  ;;  %v1138_v27 = vadd.f32 %v1137_v11, %v1136_v46  ;;  %v988_v42 = vsel %vm812_vm2, %v2344_v34, 0.0  ;;  %v2346_v11 = vld [vmem:[#allocation3_spill] sm:$0xff] }
 0x180   : > { %v973_v38 = vadd.f32 %v972_v15, %v971_v2  ;;  %v1140_v52 = vadd.f32 %v1139_v6, %v1138_v27  ;;  %v990_v15 = vsel %vm812_vm2, %v2345_v25, 0.0  ;;  %v2347_v6 = vld [vmem:[#allocation5_spill] sm:$0xff]  ;;  %v1191_v25 = vsel %vm812_vm2, %v1075_v3, 0.0 }
 0x181   : > { %v1077_v57 = vmul.f32 %v2347_v6, %v2347_v6 }
 0x182   : > { %v975_v0 = vadd.f32 %v974_v60, %v973_v38  ;;  %v1142_v16 = vadd.f32 %v1141_v31, %v1140_v52  ;;  %v992_v60 = vsel %vm812_vm2, %v2346_v11, 0.0  ;;  %v2348_v31 = vld [vmem:[#allocation8_spill] sm:$0xff] }
 0x183   : > { %v1195_v51 = vsel %vm812_vm2, %v1077_v57, 0.0 }
 0x184   : > { %v977_v33 = vadd.f32 %v976_v13, %v975_v0  ;;  %v1144_v19 = vadd.f32 %v1143_v44, %v1142_v16  ;;  %v994_v13 = vsel %vm812_vm2, %v2347_v6, 0.0  ;;  %v2349_v44 = vld [vmem:[#allocation10_spill] sm:$0xff] }
 0x186   : > { %v979_v17 = vadd.f32 %v978_v12, %v977_v33  ;;  %v1146_v48 = vadd.f32 %v1145_v7, %v1144_v19  ;;  %v996_v12 = vsel %vm812_vm2, %v2348_v31, 0.0  ;;  %v2350_v7 = vld [vmem:[#allocation7_spill] sm:$0xff] }
 0x188   : > { %v981_v10 = vadd.f32 %v980_v58, %v979_v17  ;;  %v1148_v36 = vadd.f32 %v1147_v62, %v1146_v48  ;;  %v998_v58 = vsel %vm812_vm2, %v2349_v44, 0.0  ;;  %v2351_v62 = vld [vmem:[#allocation9_spill] sm:$0xff] }
 0x18a   : > { %v983_v23 = vadd.f32 %v982_v56, %v981_v10  ;;  %v1150_v8 = vadd.f32 %v1149_v14, %v1148_v36  ;;  %v1000_v56 = vsel %vm812_vm2, %v2350_v7, 0.0  ;;  %v2352_v14 = vld [vmem:[#allocation12_spill] sm:$0xff] }
 0x18c   : > { %v985_v40 = vadd.f32 %v984_v29, %v983_v23  ;;  %v1152_v21 = vadd.f32 %v1151_v20, %v1150_v8  ;;  %v1002_v29 = vsel %vm812_vm2, %v2351_v62, 0.0  ;;  %v2353_v20 = vld [vmem:[#allocation14_spill] sm:$0xff] }
 0x18e   : > { %v987_v54 = vadd.f32 %v986_v4, %v985_v40  ;;  %v1154_v46 = vadd.f32 %v1153_v24, %v1152_v21  ;;  %v1004_v4 = vsel %vm812_vm2, %v2352_v14, 0.0  ;;  %v2354_v24 = vld [vmem:[#allocation11_spill] sm:$0xff] }
 0x190   : > { %v989_v2 = vadd.f32 %v988_v42, %v987_v54  ;;  %v1156_v27 = vadd.f32 %v1155_v18, %v1154_v46  ;;  %v1006_v42 = vsel %vm812_vm2, %v2353_v20, 0.0  ;;  %v2355_v18 = vld [vmem:[#allocation13_spill] sm:$0xff] }
 0x192   : > { %v991_v38 = vadd.f32 %v990_v15, %v989_v2  ;;  %v1158_v52 = vadd.f32 %v1157_v22, %v1156_v27  ;;  %v1008_v15 = vsel %vm812_vm2, %v2354_v24, 0.0  ;;  %v1070_v27 = vmul.f32 %v1809_v5, %v1809_v5 }
 0x193   : > { %v1073_v5 = vmul.f32 %v2343_v50, %v2343_v50  ;;  %v884_v50 = vld [vmem:[%s2302_s3] sm:$0x1] }
 0x194   : > { %v993_v0 = vadd.f32 %v992_v60, %v991_v38  ;;  %v1160_v16 = vadd.f32 %v1159_v28, %v1158_v52  ;;  %v1010_v60 = vsel %vm812_vm2, %v2355_v18, 0.0  ;;  %v1071_v28 = vmul.f32 %v1829_v9, %v1829_v9 }
 0x195   : > { %v1181_v43 = vsel %vm812_vm2, %v1070_v27, 0.0  ;;  %v1074_v9 = vmul.f32 %v2344_v34, %v2344_v34 }
 0x196   : > { %v995_v33 = vadd.f32 %v994_v13, %v993_v0  ;;  %v1162_v19 = vadd.f32 %v1161_v32, %v1160_v16  ;;  %v1177_v0 = vsel %vm812_vm2, %v1068_v61, 0.0  ;;  %v1183_v16 = vsel %vm812_vm2, %v1071_v28, 0.0 }
 0x197   : > { %v1189_v34 = vsel %vm812_vm2, %v1074_v9, 0.0  ;;  %v1084_v61 = vmul.f32 %v2354_v24, %v2354_v24 }
 0x198   : > { %v997_v17 = vadd.f32 %v996_v12, %v995_v33  ;;  %v1164_v48 = vadd.f32 %v1163_v26, %v1162_v19  ;;  %v1179_v12 = vsel %vm812_vm2, %v1069_v1, 0.0  ;;  %v1185_v26 = vsel %vm812_vm2, %v1072_v63, 0.0 }
 0x19a   : > { %v999_v10 = vadd.f32 %v998_v58, %v997_v17  ;;  %v1166_v36 = vadd.f32 %v1165_v30, %v1164_v48 }
 0x19c   : > { %v1001_v23 = vadd.f32 %v1000_v56, %v999_v10  ;;  %v1168_v8 = vadd.f32 %v1167_v37, %v1166_v36  ;;  %v1187_v10 = vsel %vm812_vm2, %v1073_v5, 0.0 }
 0x19e   : > { %v1003_v40 = vadd.f32 %v1002_v29, %v1001_v23  ;;  %v1170_v21 = vadd.f32 %v1169_v41, %v1168_v8  ;;  %v1076_v29 = vmul.f32 %v2346_v11, %v2346_v11  ;;  %v1080_v41 = vmul.f32 %v2350_v7, %v2350_v7 }
 0x1a0   : > { %v1005_v54 = vadd.f32 %v1004_v4, %v1003_v40  ;;  %v1172_v46 = vadd.f32 %v1171_v35, %v1170_v21  ;;  %v1078_v4 = vmul.f32 %v2348_v31, %v2348_v31  ;;  %v1193_v11 = vsel %vm812_vm2, %v1076_v29, 0.0 }
 0x1a1   : > { %v1079_v40 = vmul.f32 %v2349_v44, %v2349_v44  ;;  %v1082_v35 = vmul.f32 %v2352_v14, %v2352_v14  ;;  %v1201_v44 = vsel %vm812_vm2, %v1080_v41, 0.0  ;;  %v1083_v21 = vmul.f32 %v2353_v20, %v2353_v20 }
 0x1a2   : > { %v1007_v2 = vadd.f32 %v1006_v42, %v1005_v54  ;;  %v1174_v22 = vadd.f32 %v1173_v39, %v1172_v46  ;;  %v1197_v42 = vsel %vm812_vm2, %v1078_v4, 0.0  ;;  %v1081_v54 = vmul.f32 %v2351_v62, %v2351_v62 }
 0x1a3   : > { %v1199_v31 = vsel %vm812_vm2, %v1079_v40, 0.0  ;;  %v1205_v62 = vsel %vm812_vm2, %v1082_v35, 0.0  ;;  %v1207_v14 = vsel %vm812_vm2, %v1083_v21, 0.0 }
 0x1a4   : > { %v1009_v38 = vadd.f32 %v1008_v15, %v1007_v2  ;;  %v1176_v59 = vadd.f32 %v1175_v45, %v1174_v22  ;;  %v1203_v7 = vsel %vm812_vm2, %v1081_v54, 0.0 }
 0x1a6   : > { %v1011_v13 = vadd.f32 %v1010_v60, %v1009_v38  ;;  %v1178_v52 = vadd.f32 %v1177_v0, %v1176_v59  ;;  %v1085_v60 = vmul.f32 %v2355_v18, %v2355_v18  ;;  %v1209_v38 = vsel %vm812_vm2, %v1084_v61, 0.0 }
 0x1a8   : > { %v1012_v49 = vrot.slane %v1011_v13, 4  ;;  %v1180_v32 = vadd.f32 %v1179_v12, %v1178_v52  ;;  %v1211_v20 = vsel %vm812_vm2, %v1085_v60, 0.0 }
 0x1aa   : > { %v1013_v33 = vadd.f32 %v1012_v49, %v1011_v13  ;;  %v1182_v17 = vadd.f32 %v1181_v43, %v1180_v32  ;;  %v1021_v49 = vld [vmem:[%s2303_s4] sm:$0x1] }
 0x1ac   : > { %v1014_v58 = vrot.slane %v1013_v33, 2  ;;  %v1184_v56 = vadd.f32 %v1183_v16, %v1182_v17 }
 0x1ae   : > { %v1015_v47 = vadd.f32 %v1014_v58, %v1013_v33  ;;  %v1186_v53 = vadd.f32 %v1185_v26, %v1184_v56 }
 0x1b0   : > { %v1016_v19 = vrot.slane %v1015_v47, 1  ;;  %v1188_v48 = vadd.f32 %v1187_v10, %v1186_v53 }
 0x1b2   : > { %v1017_v30 = vadd.f32 %v1016_v19, %v1015_v47  ;;  %v1190_v37 = vadd.f32 %v1189_v34, %v1188_v48 }
 0x1b4   : > { %v1018_v23 = vadd.f32 %v1017_v30, %v884_v50  ;;  %v1192_v36 = vadd.f32 %v1191_v25, %v1190_v37 }
 0x1b6   : > { %1020 = vst.msk [vmem:[%s2302_s3] sm:$0x1] %vm1019_vm4, %v1018_v23  ;;  %v1194_v6 = vadd.f32 %v1193_v11, %v1192_v36 }
 0x1b8   : > { %v1196_v8 = vadd.f32 %v1195_v51, %v1194_v6 }
 0x1ba   : > { %v1198_v55 = vadd.f32 %v1197_v42, %v1196_v8 }
 0x1bc   : > { %v1200_v15 = vadd.f32 %v1199_v31, %v1198_v55 }
 0x1be   : > { %v1202_v2 = vadd.f32 %v1201_v44, %v1200_v15 }
 0x1c0   : > { %v1204_v39 = vadd.f32 %v1203_v7, %v1202_v2 }
 0x1c2   : > { %v1206_v46 = vadd.f32 %v1205_v62, %v1204_v39 }
 0x1c4   : > { %v1208_v1 = vadd.f32 %v1207_v14, %v1206_v46 }
 0x1c6   : > { %v1210_v45 = vadd.f32 %v1209_v38, %v1208_v1 }
 0x1c8   : > { %v1212_v22 = vadd.f32 %v1211_v20, %v1210_v45 }
 0x1ca   : > { %v1213_v13 = vrot.slane %v1212_v22, 4 }
 0x1cc   : > { %v1214_v27 = vadd.f32 %v1213_v13, %v1212_v22 }
 0x1ce   : > { %v1215_v0 = vrot.slane %v1214_v27, 2 }
 0x1d0   : > { %v1216_v24 = vadd.f32 %v1215_v0, %v1214_v27 }
 0x1d2   : > { %v1217_v59 = vrot.slane %v1216_v24, 1 }
 0x1d4   : > { %v1218_v18 = vadd.f32 %v1217_v59, %v1216_v24 }
 0x1d6   : > { %v1219_v28 = vadd.f32 %v1218_v18, %v1021_v49 }
 0x1d8   : > { %1220 = vst.msk [vmem:[%s2303_s4] sm:$0x1] %vm1019_vm4, %v1219_v28 }
 0x1d9 PF: > { %s15_s15 = sadd.s32 1, %s1515_s15  }
 0x1da   : > { %p12_p5 = scmp.ge.s32.totalorder %s15_s15, 6  }
 0x1dc   :  { %14 = sbr.rel (!%p12_p5) target bundleno = 1 (0x1), region = 78 }

// kernel: ffc_layer_forward.6
= control target key start
LH: loop header
LB: loop body
LE: loop exit
PB: predicated region body
PF: predicated region fallthrough
CT: control target
= control target key end

     0   :  { %s828_s18 = smov 0   ;;  %s1583_s0 = inlined_call_operand.vmem [shape: f32[2048,3], index: 0, kind: input, shape index: {}]   ;;  %s1584_s1 = inlined_call_operand.vmem [shape: f32[1,3], index: 1, kind: input, shape index: {}]   ;;  %s1585_s2 = inlined_call_operand.vmem [shape: f32[1,3], index: 2, kind: input, shape index: {}]   ;;  %s1586_s3 = inlined_call_operand.vmem [shape: f32[1,3], index: 3, kind: input, shape index: {}]   ;;  %s1587_s4 = inlined_call_operand.vmem [shape: f32[1,3], index: 4, kind: input, shape index: {}]   ;;  %s1588_s5 = inlined_call_operand.vmem [shape: f32[2048,3], index: 5, kind: output, shape index: {}]  }
   0x1 LB: > { %s767_s19 = sadd.s32 4294967295, %s796_s18   ;;  %p771_p0 = scmp.ge.s32.totalorder %s796_s18, 1  ;;  %s796_s18 = sphi %s828_s18, %s15_s18  }
   0x2   : > { %p188_p1 = scmp.lt.s32.totalorder %s796_s18, 5 }
   0x4   : > { %p189_p2 = pnand %p771_p0, %p188_p1 }
   0x5   : > { %s772_s20 = sshll.u32 (!%p189_p2), %s767_s19, 6  ;;  %v292_v0 = vld [vmem:[%s1584_s1] sm:$0x1] (!%p189_p2)  ;;  %v301_v2 = vlaneseq (!%p189_p2)  ;;  %vm646_vm0 = vcmask (!%p189_p2), 23552  }
   0x6   : > { %192 = sbr.rel (%p189_p2) target bundleno = 111 (0x6f), region = 40  ;;  %v294_v1 = vld [vmem:[%s1585_s2] sm:$0x1] (!%p189_p2)  ;;  %p217_p3 = scmp.lt.s32.totalorder (!%p189_p2), %s772_s20, 255  ;;  %v293_v3 = vmul.f32 (!%p189_p2), 0.00048828125, %v292_v0 }
   0x7   : > { %v295_v4 = vmul.f32 (!%p189_p2), 0.00048828125, %v294_v1  ;;  %v842_v5 = vshrl.u32 (!%p189_p2), %v301_v2, 7 }
   0x8   : > { %v296_v6 = vmul.f32 (!%p189_p2), %v293_v3, %v293_v3 }
   0x9   : > { %v303_v7 = vsub.s32 (!%p189_p2), 0, %v842_v5  ;;  %v1068_v5 = vld [vmem:[%s1586_s3] ss:$0 sm:$0xff] (!%p189_p2) }
   0xa   : > { %v297_v8 = vsub.f32 (!%p189_p2), %v295_v4, %v296_v6 }
   0xb   : > { %v860_v11 = vrot.slane (!%p189_p2), %v293_v3, %v303_v7 }
   0xc   : > { %v298_v10 = vadd.f32 (!%p189_p2), 1e-05, %v297_v8 }
   0xd   : > { %s1618_s20 = smov (!%p217_p3, %s772_s20), 255 }
   0xe   : > { %s773_s25 = sshll.u32 %s1618_s20, 3  ;;  %788 = vrsqrt.f32 %v298_v10 }
   0xf   : > { %s853_s28 = scalar_lea.vmem %s1583_s0, %s773_s25  ;;  %s1132_s10 = scalar_lea.vmem %s1588_s5, %s773_s25 }
  0x10   : > { %v856_v9 = vld [vmem:[%s853_s28] sm:$0xff]  ;;  %v863_v12 = vld [vmem:[%s853_s28 + $0x8] sm:$0xff]  ;;  %v866_v13 = vld [vmem:[%s853_s28 + $0x10] sm:$0xff] }
  0x11   : > { %v869_v14 = vld [vmem:[%s853_s28 + $0x18] sm:$0xff]  ;;  %v872_v15 = vld [vmem:[%s853_s28 + $0x20] sm:$0xff]  ;;  %v875_v16 = vld [vmem:[%s853_s28 + $0x28] sm:$0xff]  ;;  %v306_v23 = vsub.f32 %v856_v9, %v860_v11  ;;  %v307_v24 = vsub.f32 %v863_v12, %v860_v11  ;;  %v308_v25 = vsub.f32 %v866_v13, %v860_v11 }
  0x12   : > { %v878_v17 = vld [vmem:[%s853_s28 + $0x30] sm:$0xff]  ;;  %v881_v18 = vld [vmem:[%s853_s28 + $0x38] sm:$0xff]  ;;  %v884_v19 = vld [vmem:[%s853_s28 + $0x40] sm:$0xff]  ;;  %v309_v29 = vsub.f32 %v869_v14, %v860_v11  ;;  %v310_v30 = vsub.f32 %v872_v15, %v860_v11  ;;  %v311_v31 = vsub.f32 %v875_v16, %v860_v11 }
  0x13   : > { %v887_v20 = vld [vmem:[%s853_s28 + $0x48] sm:$0xff]  ;;  %v890_v21 = vld [vmem:[%s853_s28 + $0x50] sm:$0xff]  ;;  %v893_v22 = vld [vmem:[%s853_s28 + $0x58] sm:$0xff]  ;;  %v312_v32 = vsub.f32 %v878_v17, %v860_v11  ;;  %v313_v36 = vsub.f32 %v881_v18, %v860_v11  ;;  %v314_v37 = vsub.f32 %v884_v19, %v860_v11 }
  0x14   : > { %v902_v26 = vld [vmem:[%s853_s28 + $0x60] sm:$0xff]  ;;  %v905_v27 = vld [vmem:[%s853_s28 + $0x68] sm:$0xff]  ;;  %v908_v28 = vld [vmem:[%s853_s28 + $0x70] sm:$0xff]  ;;  %v315_v38 = vsub.f32 %v887_v20, %v860_v11  ;;  %v316_v39 = vsub.f32 %v890_v21, %v860_v11  ;;  %v317_v43 = vsub.f32 %v893_v22, %v860_v11 }
  0x15   : > { %v919_v33 = vld [vmem:[%s853_s28 + $0x78] sm:$0xff]  ;;  %v922_v34 = vld [vmem:[%s853_s28 + $0x80] sm:$0xff]  ;;  %v925_v35 = vld [vmem:[%s853_s28 + $0x88] sm:$0xff]  ;;  %v318_v44 = vsub.f32 %v902_v26, %v860_v11  ;;  %v1589_v20 = vsub.f32 %v905_v27, %v860_v11  ;;  %v1590_v22 = vsub.f32 %v908_v28, %v860_v11 }
  0x16   : > { %v936_v40 = vld [vmem:[%s853_s28 + $0x90] sm:$0xff]  ;;  %v939_v41 = vld [vmem:[%s853_s28 + $0x98] sm:$0xff]  ;;  %v942_v42 = vld [vmem:[%s853_s28 + $0xa0] sm:$0xff] }
  0x17   : > { %v953_v47 = vld [vmem:[%s853_s28 + $0xa8] sm:$0xff]  ;;  %v956_v48 = vld [vmem:[%s853_s28 + $0xb0] sm:$0xff]  ;;  %v959_v49 = vld [vmem:[%s853_s28 + $0xb8] sm:$0xff] }
  0x18   : > { %v970_v54 = vld [vmem:[%s853_s28 + $0xc0] sm:$0xff]  ;;  %v973_v55 = vld [vmem:[%s853_s28 + $0xc8] sm:$0xff]  ;;  %v976_v56 = vld [vmem:[%s853_s28 + $0xd0] sm:$0xff]  ;;  %v789_v58 = vpop.eup %788 }
  0x19   : > { %v987_v61 = vld [vmem:[%s853_s28 + $0xd8] sm:$0xff]  ;;  %v990_v62 = vld [vmem:[%s853_s28 + $0xe0] sm:$0xff]  ;;  %v993_v63 = vld [vmem:[%s853_s28 + $0xe8] sm:$0xff]  ;;  %v1048_v51 = vrot.slane %v789_v58, %v303_v7 }
  0x1a   : > { %v1004_v4 = vld [vmem:[%s853_s28 + $0xf0] sm:$0xff]  ;;  %v1007_v6 = vld [vmem:[%s853_s28 + $0xf8] sm:$0xff]  ;;  %v1010_v8 = vld [vmem:[%s853_s28 + $0x100] sm:$0xff] }
  0x1b   : > { %v1021_v0 = vld [vmem:[%s853_s28 + $0x108] sm:$0xff]  ;;  %v1024_v60 = vld [vmem:[%s853_s28 + $0x110] sm:$0xff]  ;;  %v1027_v59 = vld [vmem:[%s853_s28 + $0x118] sm:$0xff]  ;;  %v376_v1 = vmul.f32 %v1048_v51, %v306_v23  ;;  %v377_v45 = vmul.f32 %v1048_v51, %v307_v24  ;;  %v378_v58 = vmul.f32 %v1048_v51, %v308_v25  ;;  %v379_v2 = vmul.f32 %v1048_v51, %v309_v29 }
  0x1c   : > { %v1038_v57 = vld [vmem:[%s853_s28 + $0x120] sm:$0xff]  ;;  %v1041_v53 = vld [vmem:[%s853_s28 + $0x128] sm:$0xff]  ;;  %v1044_v52 = vld [vmem:[%s853_s28 + $0x130] sm:$0xff]  ;;  %v380_v12 = vmul.f32 %v1048_v51, %v310_v30  ;;  %v381_v13 = vmul.f32 %v1048_v51, %v311_v31  ;;  %v382_v14 = vmul.f32 %v1048_v51, %v312_v32  ;;  %v383_v23 = vmul.f32 %v1048_v51, %v313_v36 }
  0x1d   : > { %v1057_v10 = vld [vmem:[%s853_s28 + $0x138] sm:$0xff]  ;;  %v1060_v50 = vld [vmem:[%s853_s28 + $0x140] sm:$0xff]  ;;  %v1063_v46 = vld [vmem:[%s853_s28 + $0x148] sm:$0xff]  ;;  %v344_v7 = vsub.f32 %v1044_v52, %v860_v11  ;;  %v447_v15 = vmul.f32 %v1068_v5, %v376_v1  ;;  %v448_v24 = vmul.f32 %v1068_v5, %v377_v45  ;;  %v449_v25 = vmul.f32 %v1068_v5, %v378_v58 }
  0x1e   : > { %v1097_v9 = vld [vmem:[%s1587_s4] ss:$0 sm:$0xff]  ;;  %v450_v16 = vmul.f32 %v1068_v5, %v379_v2  ;;  %v451_v29 = vmul.f32 %v1068_v5, %v380_v12  ;;  %v452_v30 = vmul.f32 %v1068_v5, %v381_v13  ;;  %v453_v17 = vmul.f32 %v1068_v5, %v382_v14 }
  0x1f   : > { %v454_v31 = vmul.f32 %v1068_v5, %v383_v23  ;;  %v518_v18 = vadd.f32 %v1097_v9, %v447_v15  ;;  %v519_v32 = vadd.f32 %v1097_v9, %v448_v24  ;;  %v520_v36 = vadd.f32 %v1097_v9, %v449_v25 }
  0x20   : > { %v521_v45 = vadd.f32 %v1097_v9, %v450_v16  ;;  %v522_v1 = vadd.f32 %v1097_v9, %v451_v29  ;;  %v523_v2 = vadd.f32 %v1097_v9, %v452_v30  ;;  %v524_v58 = vadd.f32 %v1097_v9, %v453_v17 }
  0x21   : > { %v525_v12 = vadd.f32 %v1097_v9, %v454_v31  ;;  %v582_v13 = vmax.f32 %v518_v18, 0.0  ;;  %v583_v14 = vmax.f32 %v519_v32, 0.0  ;;  %v584_v23 = vmax.f32 %v520_v36, 0.0 }
  0x22   : > { %v585_v15 = vmax.f32 %v521_v45, 0.0  ;;  %v586_v24 = vmax.f32 %v522_v1, 0.0  ;;  %v587_v25 = vmax.f32 %v523_v2, 0.0  ;;  %v588_v16 = vmax.f32 %v524_v58, 0.0 }
  0x23   : > { %v589_v3 = vmax.f32 %v525_v12, 0.0  ;;  %647 = vst.msk [vmem:[%s1132_s10] sm:$0xff] %vm646_vm0, %v582_v13  ;;  %648 = vst.msk [vmem:[%s1132_s10 + $0x8] sm:$0xff] %vm646_vm0, %v583_v14  ;;  %v384_v29 = vmul.f32 %v1048_v51, %v314_v37  ;;  %v385_v30 = vmul.f32 %v1048_v51, %v315_v38  ;;  %v386_v17 = vmul.f32 %v1048_v51, %v316_v39 }
  0x24   : > { %649 = vst.msk [vmem:[%s1132_s10 + $0x10] sm:$0xff] %vm646_vm0, %v584_v23  ;;  %650 = vst.msk [vmem:[%s1132_s10 + $0x18] sm:$0xff] %vm646_vm0, %v585_v15  ;;  %v387_v31 = vmul.f32 %v1048_v51, %v317_v43  ;;  %v388_v19 = vmul.f32 %v1048_v51, %v318_v44  ;;  %v389_v21 = vmul.f32 %v1048_v51, %v1589_v20 }
  0x25   : > { %651 = vst.msk [vmem:[%s1132_s10 + $0x20] sm:$0xff] %vm646_vm0, %v586_v24  ;;  %652 = vst.msk [vmem:[%s1132_s10 + $0x28] sm:$0xff] %vm646_vm0, %v587_v25  ;;  %v390_v37 = vmul.f32 %v1048_v51, %v1590_v22  ;;  %v1591_v38 = vsub.f32 %v919_v33, %v860_v11  ;;  %v455_v43 = vmul.f32 %v1068_v5, %v384_v29 }
  0x26   : > { %653 = vst.msk [vmem:[%s1132_s10 + $0x30] sm:$0xff] %vm646_vm0, %v588_v16  ;;  %654 = vst.msk [vmem:[%s1132_s10 + $0x38] sm:$0xff] %vm646_vm0, %v589_v3  ;;  %v456_v26 = vmul.f32 %v1068_v5, %v385_v30  ;;  %v457_v44 = vmul.f32 %v1068_v5, %v386_v17  ;;  %v458_v27 = vmul.f32 %v1068_v5, %v387_v31 }
  0x27   : > { %v391_v39 = vmul.f32 %v1048_v51, %v1591_v38  ;;  %v459_v3 = vmul.f32 %v1068_v5, %v388_v19  ;;  %v460_v18 = vmul.f32 %v1068_v5, %v389_v21  ;;  %v461_v28 = vmul.f32 %v1068_v5, %v390_v37 }
  0x28   : > { %v526_v33 = vadd.f32 %v1097_v9, %v455_v43  ;;  %v527_v36 = vadd.f32 %v1097_v9, %v456_v26  ;;  %v528_v45 = vadd.f32 %v1097_v9, %v457_v44  ;;  %v529_v1 = vadd.f32 %v1097_v9, %v458_v27 }
  0x29   : > { %v462_v32 = vmul.f32 %v1068_v5, %v391_v39  ;;  %v530_v2 = vadd.f32 %v1097_v9, %v459_v3  ;;  %v531_v58 = vadd.f32 %v1097_v9, %v460_v18  ;;  %v532_v12 = vadd.f32 %v1097_v9, %v461_v28 }
  0x2a   : > { %v590_v14 = vmax.f32 %v526_v33, 0.0  ;;  %v591_v23 = vmax.f32 %v527_v36, 0.0  ;;  %v592_v15 = vmax.f32 %v528_v45, 0.0  ;;  %v593_v24 = vmax.f32 %v529_v1, 0.0 }
  0x2b   : > { %v533_v13 = vadd.f32 %v1097_v9, %v462_v32  ;;  %v594_v25 = vmax.f32 %v530_v2, 0.0  ;;  %v595_v16 = vmax.f32 %v531_v58, 0.0  ;;  %v596_v29 = vmax.f32 %v532_v12, 0.0 }
  0x2c   : > { %655 = vst.msk [vmem:[%s1132_s10 + $0x40] sm:$0xff] %vm646_vm0, %v590_v14  ;;  %656 = vst.msk [vmem:[%s1132_s10 + $0x48] sm:$0xff] %vm646_vm0, %v591_v23  ;;  %v1592_v17 = vsub.f32 %v922_v34, %v860_v11  ;;  %v1593_v19 = vsub.f32 %v925_v35, %v860_v11  ;;  %v1594_v21 = vsub.f32 %v936_v40, %v860_v11 }
  0x2d   : > { %v597_v30 = vmax.f32 %v533_v13, 0.0  ;;  %657 = vst.msk [vmem:[%s1132_s10 + $0x50] sm:$0xff] %vm646_vm0, %v592_v15  ;;  %658 = vst.msk [vmem:[%s1132_s10 + $0x58] sm:$0xff] %vm646_vm0, %v593_v24  ;;  %v1595_v37 = vsub.f32 %v939_v41, %v860_v11  ;;  %v1596_v34 = vsub.f32 %v942_v42, %v860_v11  ;;  %v1597_v40 = vsub.f32 %v953_v47, %v860_v11 }
  0x2e   : > { %v392_v31 = vmul.f32 %v1048_v51, %v1592_v17  ;;  %v393_v20 = vmul.f32 %v1048_v51, %v1593_v19  ;;  %v394_v22 = vmul.f32 %v1048_v51, %v1594_v21  ;;  %659 = vst.msk [vmem:[%s1132_s10 + $0x60] sm:$0xff] %vm646_vm0, %v594_v25  ;;  %660 = vst.msk [vmem:[%s1132_s10 + $0x68] sm:$0xff] %vm646_vm0, %v595_v16 }
  0x2f   : > { %v395_v38 = vmul.f32 %v1048_v51, %v1595_v37  ;;  %661 = vst.msk [vmem:[%s1132_s10 + $0x70] sm:$0xff] %vm646_vm0, %v596_v29  ;;  %662 = vst.msk [vmem:[%s1132_s10 + $0x78] sm:$0xff] %vm646_vm0, %v597_v30  ;;  %v396_v35 = vmul.f32 %v1048_v51, %v1596_v34  ;;  %v397_v41 = vmul.f32 %v1048_v51, %v1597_v40 }
  0x30   : > { %v1598_v39 = vsub.f32 %v956_v48, %v860_v11  ;;  %v1599_v26 = vsub.f32 %v959_v49, %v860_v11  ;;  %v463_v27 = vmul.f32 %v1068_v5, %v392_v31  ;;  %v464_v42 = vmul.f32 %v1068_v5, %v393_v20 }
  0x31   : > { %v465_v3 = vmul.f32 %v1068_v5, %v394_v22  ;;  %v466_v47 = vmul.f32 %v1068_v5, %v395_v38  ;;  %v467_v18 = vmul.f32 %v1068_v5, %v396_v35  ;;  %v468_v28 = vmul.f32 %v1068_v5, %v397_v41 }
  0x32   : > { %v398_v43 = vmul.f32 %v1048_v51, %v1598_v39  ;;  %v399_v44 = vmul.f32 %v1048_v51, %v1599_v26  ;;  %v534_v49 = vadd.f32 %v1097_v9, %v463_v27  ;;  %v535_v33 = vadd.f32 %v1097_v9, %v464_v42 }
  0x33   : > { %v536_v36 = vadd.f32 %v1097_v9, %v465_v3  ;;  %v537_v45 = vadd.f32 %v1097_v9, %v466_v47  ;;  %v538_v1 = vadd.f32 %v1097_v9, %v467_v18  ;;  %v539_v2 = vadd.f32 %v1097_v9, %v468_v28 }
  0x34   : > { %v469_v48 = vmul.f32 %v1068_v5, %v398_v43  ;;  %v470_v32 = vmul.f32 %v1068_v5, %v399_v44  ;;  %v598_v13 = vmax.f32 %v534_v49, 0.0  ;;  %v599_v14 = vmax.f32 %v535_v33, 0.0 }
  0x35   : > { %v600_v23 = vmax.f32 %v536_v36, 0.0  ;;  %v601_v15 = vmax.f32 %v537_v45, 0.0  ;;  %v602_v24 = vmax.f32 %v538_v1, 0.0  ;;  %v603_v25 = vmax.f32 %v539_v2, 0.0 }
  0x36   : > { %v540_v58 = vadd.f32 %v1097_v9, %v469_v48  ;;  %v541_v12 = vadd.f32 %v1097_v9, %v470_v32  ;;  %663 = vst.msk [vmem:[%s1132_s10 + $0x80] sm:$0xff] %vm646_vm0, %v598_v13  ;;  %664 = vst.msk [vmem:[%s1132_s10 + $0x88] sm:$0xff] %vm646_vm0, %v599_v14  ;;  %v1600_v30 = vsub.f32 %v970_v54, %v860_v11 }
  0x37   : > { %665 = vst.msk [vmem:[%s1132_s10 + $0x90] sm:$0xff] %vm646_vm0, %v600_v23  ;;  %666 = vst.msk [vmem:[%s1132_s10 + $0x98] sm:$0xff] %vm646_vm0, %v601_v15  ;;  %v1601_v31 = vsub.f32 %v973_v55, %v860_v11  ;;  %v1602_v20 = vsub.f32 %v976_v56, %v860_v11  ;;  %v1603_v22 = vsub.f32 %v987_v61, %v860_v11 }
  0x38   : > { %v604_v16 = vmax.f32 %v540_v58, 0.0  ;;  %v605_v29 = vmax.f32 %v541_v12, 0.0  ;;  %v400_v17 = vmul.f32 %v1048_v51, %v1600_v30  ;;  %667 = vst.msk [vmem:[%s1132_s10 + $0xa0] sm:$0xff] %vm646_vm0, %v602_v24  ;;  %668 = vst.msk [vmem:[%s1132_s10 + $0xa8] sm:$0xff] %vm646_vm0, %v603_v25  ;;  %v1604_v54 = vsub.f32 %v990_v62, %v860_v11 }
  0x39   : > { %v401_v19 = vmul.f32 %v1048_v51, %v1601_v31  ;;  %v402_v21 = vmul.f32 %v1048_v51, %v1602_v20  ;;  %v403_v37 = vmul.f32 %v1048_v51, %v1603_v22  ;;  %v1605_v56 = vsub.f32 %v993_v63, %v860_v11 }
  0x3a   : > { %669 = vst.msk [vmem:[%s1132_s10 + $0xb0] sm:$0xff] %vm646_vm0, %v604_v16  ;;  %670 = vst.msk [vmem:[%s1132_s10 + $0xb8] sm:$0xff] %vm646_vm0, %v605_v29  ;;  %v404_v55 = vmul.f32 %v1048_v51, %v1604_v54  ;;  %v1606_v38 = vsub.f32 %v1004_v4, %v860_v11  ;;  %v1607_v35 = vsub.f32 %v1007_v6, %v860_v11 }
  0x3b   : > { %v405_v61 = vmul.f32 %v1048_v51, %v1605_v56  ;;  %v471_v41 = vmul.f32 %v1068_v5, %v400_v17  ;;  %v472_v62 = vmul.f32 %v1068_v5, %v401_v19  ;;  %v473_v39 = vmul.f32 %v1068_v5, %v402_v21 }
  0x3c   : > { %v406_v34 = vmul.f32 %v1048_v51, %v1606_v38  ;;  %v407_v40 = vmul.f32 %v1048_v51, %v1607_v35  ;;  %v474_v63 = vmul.f32 %v1068_v5, %v403_v37  ;;  %v475_v43 = vmul.f32 %v1068_v5, %v404_v55  ;;  %v270_v55 = vld [vmem:[%s853_s28 + $0x150] sm:$0xff]  ;;  %v271_v35 = vld [vmem:[%s853_s28 + $0x158] sm:$0xff] }
  0x3d   : > { %v476_v26 = vmul.f32 %v1068_v5, %v405_v61  ;;  %v542_v6 = vadd.f32 %v1097_v9, %v471_v41  ;;  %v543_v27 = vadd.f32 %v1097_v9, %v472_v62  ;;  %v544_v42 = vadd.f32 %v1097_v9, %v473_v39  ;;  %v273_v41 = vld [vmem:[%s853_s28 + $0x168] sm:$0xff] }
  0x3e   : > { %v477_v4 = vmul.f32 %v1068_v5, %v406_v34  ;;  %v478_v44 = vmul.f32 %v1068_v5, %v407_v40  ;;  %v545_v3 = vadd.f32 %v1097_v9, %v474_v63  ;;  %v546_v47 = vadd.f32 %v1097_v9, %v475_v43  ;;  %v272_v40 = vld [vmem:[%s853_s28 + $0x160] sm:$0xff] }
  0x3f   : > { %v547_v18 = vadd.f32 %v1097_v9, %v476_v26  ;;  %v606_v32 = vmax.f32 %v542_v6, 0.0  ;;  %v607_v49 = vmax.f32 %v543_v27, 0.0  ;;  %v608_v33 = vmax.f32 %v544_v42, 0.0  ;;  %v274_v26 = vld [vmem:[%s853_s28 + $0x170] sm:$0xff] }
  0x40   : > { %v548_v28 = vadd.f32 %v1097_v9, %v477_v4  ;;  %v549_v48 = vadd.f32 %v1097_v9, %v478_v44  ;;  %v609_v36 = vmax.f32 %v545_v3, 0.0  ;;  %v610_v45 = vmax.f32 %v546_v47, 0.0  ;;  %v275_v4 = vld [vmem:[%s853_s28 + $0x178] sm:$0xff] }
  0x41   : > { %v611_v1 = vmax.f32 %v547_v18, 0.0  ;;  %671 = vst.msk [vmem:[%s1132_s10 + $0xc0] sm:$0xff] %vm646_vm0, %v606_v32  ;;  %672 = vst.msk [vmem:[%s1132_s10 + $0xc8] sm:$0xff] %vm646_vm0, %v607_v49  ;;  %v1608_v12 = vsub.f32 %v1010_v8, %v860_v11  ;;  %v1609_v14 = vsub.f32 %v1021_v0, %v860_v11  ;;  %v1610_v15 = vsub.f32 %v1024_v60, %v860_v11 }
  0x42   : > { %v612_v2 = vmax.f32 %v548_v28, 0.0  ;;  %v613_v58 = vmax.f32 %v549_v48, 0.0  ;;  %673 = vst.msk [vmem:[%s1132_s10 + $0xd0] sm:$0xff] %vm646_vm0, %v608_v33  ;;  %674 = vst.msk [vmem:[%s1132_s10 + $0xd8] sm:$0xff] %vm646_vm0, %v609_v36  ;;  %v1611_v25 = vsub.f32 %v1027_v59, %v860_v11  ;;  %v1612_v0 = vsub.f32 %v1038_v57, %v860_v11 }
  0x43   : > { %v408_v13 = vmul.f32 %v1048_v51, %v1608_v12  ;;  %v409_v23 = vmul.f32 %v1048_v51, %v1609_v14  ;;  %v410_v24 = vmul.f32 %v1048_v51, %v1610_v15  ;;  %675 = vst.msk [vmem:[%s1132_s10 + $0xe0] sm:$0xff] %vm646_vm0, %v610_v45  ;;  %676 = vst.msk [vmem:[%s1132_s10 + $0xe8] sm:$0xff] %vm646_vm0, %v611_v1 }
  0x44   : > { %v411_v16 = vmul.f32 %v1048_v51, %v1611_v25  ;;  %677 = vst.msk [vmem:[%s1132_s10 + $0xf0] sm:$0xff] %vm646_vm0, %v612_v2  ;;  %678 = vst.msk [vmem:[%s1132_s10 + $0xf8] sm:$0xff] %vm646_vm0, %v613_v58  ;;  %v412_v60 = vmul.f32 %v1048_v51, %v1612_v0  ;;  %v1613_v8 = vsub.f32 %v1041_v53, %v860_v11 }
  0x45   : > { %v414_v29 = vmul.f32 %v1048_v51, %v344_v7  ;;  %v1614_v30 = vsub.f32 %v1057_v10, %v860_v11  ;;  %v479_v57 = vmul.f32 %v1068_v5, %v408_v13  ;;  %v480_v31 = vmul.f32 %v1068_v5, %v409_v23 }
  0x46   : > { %v413_v59 = vmul.f32 %v1048_v51, %v1613_v8  ;;  %v481_v53 = vmul.f32 %v1068_v5, %v410_v24  ;;  %v482_v19 = vmul.f32 %v1068_v5, %v411_v16  ;;  %v483_v52 = vmul.f32 %v1068_v5, %v412_v60 }
  0x47   : > { %v415_v17 = vmul.f32 %v1048_v51, %v1614_v30  ;;  %v485_v20 = vmul.f32 %v1068_v5, %v414_v29  ;;  %v550_v21 = vadd.f32 %v1097_v9, %v479_v57  ;;  %v551_v22 = vadd.f32 %v1097_v9, %v480_v31  ;;  %v277_v29 = vld [vmem:[%s853_s28 + $0x188] sm:$0xff] }
  0x48   : > { %v484_v7 = vmul.f32 %v1068_v5, %v413_v59  ;;  %v552_v37 = vadd.f32 %v1097_v9, %v481_v53  ;;  %v553_v54 = vadd.f32 %v1097_v9, %v482_v19  ;;  %v554_v56 = vadd.f32 %v1097_v9, %v483_v52  ;;  %v276_v59 = vld [vmem:[%s853_s28 + $0x180] sm:$0xff] }
  0x49   : > { %v486_v10 = vmul.f32 %v1068_v5, %v415_v17  ;;  %v556_v38 = vadd.f32 %v1097_v9, %v485_v20  ;;  %v614_v62 = vmax.f32 %v550_v21, 0.0  ;;  %v615_v39 = vmax.f32 %v551_v22, 0.0  ;;  %v278_v20 = vld [vmem:[%s853_s28 + $0x190] sm:$0xff]  ;;  %v280_v21 = vld [vmem:[%s853_s28 + $0x1a0] sm:$0xff] }
  0x4a   : > { %v555_v61 = vadd.f32 %v1097_v9, %v484_v7  ;;  %v616_v63 = vmax.f32 %v552_v37, 0.0  ;;  %v617_v43 = vmax.f32 %v553_v54, 0.0  ;;  %v618_v44 = vmax.f32 %v554_v56, 0.0  ;;  %v281_v56 = vld [vmem:[%s853_s28 + $0x1a8] sm:$0xff] }
  0x4b   : > { %v557_v34 = vadd.f32 %v1097_v9, %v486_v10  ;;  %v620_v27 = vmax.f32 %v556_v38, 0.0  ;;  %679 = vst.msk [vmem:[%s1132_s10 + $0x100] sm:$0xff] %vm646_vm0, %v614_v62  ;;  %680 = vst.msk [vmem:[%s1132_s10 + $0x108] sm:$0xff] %vm646_vm0, %v615_v39  ;;  %v1615_v3 = vsub.f32 %v1060_v50, %v860_v11  ;;  %v1616_v18 = vsub.f32 %v1063_v46, %v860_v11  ;;  %v279_v10 = vld [vmem:[%s853_s28 + $0x198] sm:$0xff] }
  0x4c   : > { %v619_v6 = vmax.f32 %v555_v61, 0.0  ;;  %681 = vst.msk [vmem:[%s1132_s10 + $0x110] sm:$0xff] %vm646_vm0, %v616_v63  ;;  %682 = vst.msk [vmem:[%s1132_s10 + $0x118] sm:$0xff] %vm646_vm0, %v617_v43  ;;  %v348_v48 = vsub.f32 %v270_v55, %v860_v11  ;;  %v349_v32 = vsub.f32 %v271_v35, %v860_v11  ;;  %v350_v50 = vsub.f32 %v272_v40, %v860_v11  ;;  %v282_v61 = vld [vmem:[%s853_s28 + $0x1b0] sm:$0xff]  ;;  %v283_v38 = vld [vmem:[%s853_s28 + $0x1b8] sm:$0xff] }
  0x4d   : > { %v621_v42 = vmax.f32 %v557_v34, 0.0  ;;  %v416_v47 = vmul.f32 %v1048_v51, %v1615_v3  ;;  %v417_v28 = vmul.f32 %v1048_v51, %v1616_v18  ;;  %683 = vst.msk [vmem:[%s1132_s10 + $0x120] sm:$0xff] %vm646_vm0, %v618_v44  ;;  %685 = vst.msk [vmem:[%s1132_s10 + $0x130] sm:$0xff] %vm646_vm0, %v620_v27  ;;  %v351_v49 = vsub.f32 %v273_v41, %v860_v11 }
  0x4e   : > { %684 = vst.msk [vmem:[%s1132_s10 + $0x128] sm:$0xff] %vm646_vm0, %v619_v6  ;;  %v352_v46 = vsub.f32 %v274_v26, %v860_v11  ;;  %v353_v33 = vsub.f32 %v275_v4, %v860_v11  ;;  %v418_v1 = vmul.f32 %v1048_v51, %v348_v48  ;;  %v419_v2 = vmul.f32 %v1048_v51, %v349_v32 }
  0x4f   : > { %686 = vst.msk [vmem:[%s1132_s10 + $0x138] sm:$0xff] %vm646_vm0, %v621_v42  ;;  %v487_v36 = vmul.f32 %v1068_v5, %v416_v47  ;;  %v488_v45 = vmul.f32 %v1068_v5, %v417_v28  ;;  %v420_v58 = vmul.f32 %v1048_v51, %v350_v50  ;;  %v421_v12 = vmul.f32 %v1048_v51, %v351_v49 }
  0x50   : > { %v422_v13 = vmul.f32 %v1048_v51, %v352_v46  ;;  %v423_v14 = vmul.f32 %v1048_v51, %v353_v33  ;;  %v489_v24 = vmul.f32 %v1068_v5, %v418_v1  ;;  %v490_v25 = vmul.f32 %v1068_v5, %v419_v2 }
  0x51   : > { %v558_v23 = vadd.f32 %v1097_v9, %v487_v36  ;;  %v559_v15 = vadd.f32 %v1097_v9, %v488_v45  ;;  %v491_v16 = vmul.f32 %v1068_v5, %v420_v58  ;;  %v492_v0 = vmul.f32 %v1068_v5, %v421_v12  ;;  %v284_v58 = vld [vmem:[%s853_s28 + $0x1c0] sm:$0xff]  ;;  %v285_v12 = vld [vmem:[%s853_s28 + $0x1c8] sm:$0xff] }
  0x52   : > { %v493_v60 = vmul.f32 %v1068_v5, %v422_v13  ;;  %v494_v8 = vmul.f32 %v1068_v5, %v423_v14  ;;  %v560_v57 = vadd.f32 %v1097_v9, %v489_v24  ;;  %v561_v31 = vadd.f32 %v1097_v9, %v490_v25 }
  0x53   : > { %v622_v30 = vmax.f32 %v558_v23, 0.0  ;;  %v623_v17 = vmax.f32 %v559_v15, 0.0  ;;  %v562_v53 = vadd.f32 %v1097_v9, %v491_v16  ;;  %v563_v19 = vadd.f32 %v1097_v9, %v492_v0 }
  0x54   : > { %v564_v52 = vadd.f32 %v1097_v9, %v493_v60  ;;  %v565_v7 = vadd.f32 %v1097_v9, %v494_v8  ;;  %v624_v22 = vmax.f32 %v560_v57, 0.0  ;;  %v625_v37 = vmax.f32 %v561_v31, 0.0  ;;  %v286_v60 = vld [vmem:[%s853_s28 + $0x1d0] sm:$0xff]  ;;  %v287_v8 = vld [vmem:[%s853_s28 + $0x1d8] sm:$0xff]  ;;  %v289_v31 = vld [vmem:[%s853_s28 + $0x1e8] sm:$0xff] }
  0x55   : > { %687 = vst.msk [vmem:[%s1132_s10 + $0x140] sm:$0xff] %vm646_vm0, %v622_v30  ;;  %688 = vst.msk [vmem:[%s1132_s10 + $0x148] sm:$0xff] %vm646_vm0, %v623_v17  ;;  %v354_v54 = vsub.f32 %v276_v59, %v860_v11  ;;  %v355_v55 = vsub.f32 %v277_v29, %v860_v11  ;;  %v626_v34 = vmax.f32 %v562_v53, 0.0  ;;  %v627_v35 = vmax.f32 %v563_v19, 0.0  ;;  %v288_v59 = vld [vmem:[%s853_s28 + $0x1e0] sm:$0xff]  ;;  %v290_v53 = vld [vmem:[%s853_s28 + $0x1f0] sm:$0xff] }
  0x56   : > { %v628_v40 = vmax.f32 %v564_v52, 0.0  ;;  %v629_v41 = vmax.f32 %v565_v7, 0.0  ;;  %689 = vst.msk [vmem:[%s1132_s10 + $0x150] sm:$0xff] %vm646_vm0, %v624_v22  ;;  %690 = vst.msk [vmem:[%s1132_s10 + $0x158] sm:$0xff] %vm646_vm0, %v625_v37  ;;  %v356_v63 = vsub.f32 %v278_v20, %v860_v11  ;;  %v357_v43 = vsub.f32 %v279_v10, %v860_v11  ;;  %v291_v19 = vld [vmem:[%s853_s28 + $0x1f8] sm:$0xff] }
  0x57   : > { %v424_v62 = vmul.f32 %v1048_v51, %v354_v54  ;;  %v425_v39 = vmul.f32 %v1048_v51, %v355_v55  ;;  %691 = vst.msk [vmem:[%s1132_s10 + $0x160] sm:$0xff] %vm646_vm0, %v626_v34  ;;  %692 = vst.msk [vmem:[%s1132_s10 + $0x168] sm:$0xff] %vm646_vm0, %v627_v35  ;;  %v358_v26 = vsub.f32 %v280_v21, %v860_v11 }
  0x58   : > { %693 = vst.msk [vmem:[%s1132_s10 + $0x170] sm:$0xff] %vm646_vm0, %v628_v40  ;;  %694 = vst.msk [vmem:[%s1132_s10 + $0x178] sm:$0xff] %vm646_vm0, %v629_v41  ;;  %v359_v4 = vsub.f32 %v281_v56, %v860_v11  ;;  %v360_v44 = vsub.f32 %v282_v61, %v860_v11  ;;  %v361_v6 = vsub.f32 %v283_v38, %v860_v11 }
  0x59   : > { %v495_v27 = vmul.f32 %v1068_v5, %v424_v62  ;;  %v496_v42 = vmul.f32 %v1068_v5, %v425_v39  ;;  %v426_v3 = vmul.f32 %v1048_v51, %v356_v63  ;;  %v427_v47 = vmul.f32 %v1048_v51, %v357_v43 }
  0x5a   : > { %v428_v18 = vmul.f32 %v1048_v51, %v358_v26  ;;  %v429_v28 = vmul.f32 %v1048_v51, %v359_v4  ;;  %v430_v48 = vmul.f32 %v1048_v51, %v360_v44  ;;  %v431_v32 = vmul.f32 %v1048_v51, %v361_v6 }
  0x5b   : > { %v566_v50 = vadd.f32 %v1097_v9, %v495_v27  ;;  %v567_v49 = vadd.f32 %v1097_v9, %v496_v42  ;;  %v497_v46 = vmul.f32 %v1068_v5, %v426_v3  ;;  %v498_v33 = vmul.f32 %v1068_v5, %v427_v47 }
  0x5c   : > { %v499_v36 = vmul.f32 %v1068_v5, %v428_v18  ;;  %v500_v45 = vmul.f32 %v1068_v5, %v429_v28  ;;  %v501_v1 = vmul.f32 %v1068_v5, %v430_v48  ;;  %v502_v2 = vmul.f32 %v1068_v5, %v431_v32 }
  0x5d   : > { %v630_v13 = vmax.f32 %v566_v50, 0.0  ;;  %v631_v14 = vmax.f32 %v567_v49, 0.0  ;;  %v568_v23 = vadd.f32 %v1097_v9, %v497_v46  ;;  %v569_v15 = vadd.f32 %v1097_v9, %v498_v33 }
  0x5e   : > { %v570_v24 = vadd.f32 %v1097_v9, %v499_v36  ;;  %v571_v25 = vadd.f32 %v1097_v9, %v500_v45  ;;  %v572_v16 = vadd.f32 %v1097_v9, %v501_v1  ;;  %v573_v0 = vadd.f32 %v1097_v9, %v502_v2 }
  0x5f   : > { %695 = vst.msk [vmem:[%s1132_s10 + $0x180] sm:$0xff] %vm646_vm0, %v630_v13  ;;  %696 = vst.msk [vmem:[%s1132_s10 + $0x188] sm:$0xff] %vm646_vm0, %v631_v14  ;;  %v632_v29 = vmax.f32 %v568_v23, 0.0  ;;  %v633_v30 = vmax.f32 %v569_v15, 0.0  ;;  %v362_v17 = vsub.f32 %v284_v58, %v860_v11  ;;  %v363_v57 = vsub.f32 %v285_v12, %v860_v11 }
  0x60   : > { %v634_v52 = vmax.f32 %v570_v24, 0.0  ;;  %v635_v7 = vmax.f32 %v571_v25, 0.0  ;;  %v636_v20 = vmax.f32 %v572_v16, 0.0  ;;  %v637_v10 = vmax.f32 %v573_v0, 0.0 }
  0x61   : > { %697 = vst.msk [vmem:[%s1132_s10 + $0x190] sm:$0xff] %vm646_vm0, %v632_v29  ;;  %698 = vst.msk [vmem:[%s1132_s10 + $0x198] sm:$0xff] %vm646_vm0, %v633_v30  ;;  %v432_v21 = vmul.f32 %v1048_v51, %v362_v17  ;;  %v433_v22 = vmul.f32 %v1048_v51, %v363_v57  ;;  %v364_v37 = vsub.f32 %v286_v60, %v860_v11 }
  0x62   : > { %v365_v54 = vsub.f32 %v287_v8, %v860_v11  ;;  %699 = vst.msk [vmem:[%s1132_s10 + $0x1a0] sm:$0xff] %vm646_vm0, %v634_v52  ;;  %700 = vst.msk [vmem:[%s1132_s10 + $0x1a8] sm:$0xff] %vm646_vm0, %v635_v7  ;;  %v366_v55 = vsub.f32 %v288_v59, %v860_v11  ;;  %v367_v56 = vsub.f32 %v289_v31, %v860_v11 }
  0x63   : > { %701 = vst.msk [vmem:[%s1132_s10 + $0x1b0] sm:$0xff] %vm646_vm0, %v636_v20  ;;  %702 = vst.msk [vmem:[%s1132_s10 + $0x1b8] sm:$0xff] %vm646_vm0, %v637_v10  ;;  %v368_v61 = vsub.f32 %v290_v53, %v860_v11  ;;  %v369_v38 = vsub.f32 %v291_v19, %v860_v11  ;;  %v503_v34 = vmul.f32 %v1068_v5, %v432_v21 }
  0x64   : > { %v504_v35 = vmul.f32 %v1068_v5, %v433_v22  ;;  %v434_v40 = vmul.f32 %v1048_v51, %v364_v37  ;;  %v435_v41 = vmul.f32 %v1048_v51, %v365_v54  ;;  %v436_v62 = vmul.f32 %v1048_v51, %v366_v55 }
  0x65   : > { %v437_v39 = vmul.f32 %v1048_v51, %v367_v56  ;;  %v438_v63 = vmul.f32 %v1048_v51, %v368_v61  ;;  %v439_v43 = vmul.f32 %v1048_v51, %v369_v38  ;;  %v574_v26 = vadd.f32 %v1097_v9, %v503_v34 }
  0x66   : > { %v575_v11 = vadd.f32 %v1097_v9, %v504_v35  ;;  %v505_v4 = vmul.f32 %v1068_v5, %v434_v40  ;;  %v506_v44 = vmul.f32 %v1068_v5, %v435_v41  ;;  %v507_v6 = vmul.f32 %v1068_v5, %v436_v62 }
  0x67   : > { %v508_v27 = vmul.f32 %v1068_v5, %v437_v39  ;;  %v509_v42 = vmul.f32 %v1068_v5, %v438_v63  ;;  %v510_v3 = vmul.f32 %v1068_v5, %v439_v43  ;;  %v638_v47 = vmax.f32 %v574_v26, 0.0 }
  0x68   : > { %v639_v51 = vmax.f32 %v575_v11, 0.0  ;;  %v576_v18 = vadd.f32 %v1097_v9, %v505_v4  ;;  %v577_v28 = vadd.f32 %v1097_v9, %v506_v44  ;;  %v578_v48 = vadd.f32 %v1097_v9, %v507_v6 }
  0x69   : > { %v579_v32 = vadd.f32 %v1097_v9, %v508_v27  ;;  %v580_v50 = vadd.f32 %v1097_v9, %v509_v42  ;;  %v581_v5 = vadd.f32 %v1097_v9, %v510_v3  ;;  %703 = vst.msk [vmem:[%s1132_s10 + $0x1c0] sm:$0xff] %vm646_vm0, %v638_v47 }
  0x6a   : > { %704 = vst.msk [vmem:[%s1132_s10 + $0x1c8] sm:$0xff] %vm646_vm0, %v639_v51  ;;  %v640_v49 = vmax.f32 %v576_v18, 0.0  ;;  %v641_v46 = vmax.f32 %v577_v28, 0.0  ;;  %v642_v33 = vmax.f32 %v578_v48, 0.0 }
  0x6b   : > { %v643_v36 = vmax.f32 %v579_v32, 0.0  ;;  %v644_v45 = vmax.f32 %v580_v50, 0.0  ;;  %v645_v1 = vmax.f32 %v581_v5, 0.0 }
  0x6c   : > { %705 = vst.msk [vmem:[%s1132_s10 + $0x1d0] sm:$0xff] %vm646_vm0, %v640_v49  ;;  %706 = vst.msk [vmem:[%s1132_s10 + $0x1d8] sm:$0xff] %vm646_vm0, %v641_v46 }
  0x6d   : > { %707 = vst.msk [vmem:[%s1132_s10 + $0x1e0] sm:$0xff] %vm646_vm0, %v642_v33  ;;  %708 = vst.msk [vmem:[%s1132_s10 + $0x1e8] sm:$0xff] %vm646_vm0, %v643_v36 }
  0x6e   : > { %709 = vst.msk [vmem:[%s1132_s10 + $0x1f0] sm:$0xff] %vm646_vm0, %v644_v45  ;;  %710 = vst.msk [vmem:[%s1132_s10 + $0x1f8] sm:$0xff] %vm646_vm0, %v645_v1 }
  0x6f PF: > { %s15_s18 = sadd.s32 1, %s796_s18  }
  0x70   : > { %p12_p4 = scmp.ge.s32.totalorder %s15_s18, 6  }
  0x72   :  { %14 = sbr.rel (!%p12_p4) target bundleno = 1 (0x1), region = 70 }

// kernel: ffc_layer_forward.8
= control target key start
LH: loop header
LB: loop body
LE: loop exit
PB: predicated region body
PF: predicated region fallthrough
CT: control target
= control target key end

     0   :  { %s616_s18 = smov 0   ;;  %s1089_s0 = inlined_call_operand.vmem [shape: f32[1088,6], index: 0, kind: input, shape index: {}]   ;;  %s1090_s1 = inlined_call_operand.vmem [shape: f32[1,6], index: 1, kind: input, shape index: {}]   ;;  %s1091_s2 = inlined_call_operand.vmem [shape: f32[1,6], index: 2, kind: input, shape index: {}]   ;;  %s1092_s3 = inlined_call_operand.vmem [shape: f32[1,6], index: 3, kind: input, shape index: {}]   ;;  %s1093_s4 = inlined_call_operand.vmem [shape: f32[1,6], index: 4, kind: input, shape index: {}]   ;;  %s1094_s5 = inlined_call_operand.vmem [shape: f32[1088,6], index: 5, kind: output, shape index: {}]  }
   0x1 LB: > { %s557_s19 = sadd.s32 4294967295, %s584_s18   ;;  %p561_p0 = scmp.ge.s32.totalorder %s584_s18, 1  ;;  %s584_s18 = sphi %s616_s18, %s15_s18  }
   0x2   : > { %p188_p1 = scmp.lt.s32.totalorder %s584_s18, 5 }
   0x4   : > { %p189_p2 = pnand %p561_p0, %p188_p1 }
   0x5   : > { %s216_s20 = smul.u32 (!%p189_p2), 34, %s557_s19  ;;  %v262_v0 = vld [vmem:[%s1090_s1] sm:$0x1] (!%p189_p2)  ;;  %v271_v2 = vlaneseq (!%p189_p2)  ;;  %vm466_vm0 = vcmask (!%p189_p2), 48128  }
   0x6   : > { %192 = sbr.rel (%p189_p2) target bundleno = 75 (0x4b), region = 40  ;;  %v264_v1 = vld [vmem:[%s1091_s2] sm:$0x1] (!%p189_p2)  ;;  %v263_v3 = vmul.f32 (!%p189_p2), 0.00091911765, %v262_v0 }
   0x7   : > { %v265_v4 = vmul.f32 (!%p189_p2), 0.00091911765, %v264_v1  ;;  %p217_p3 = scmp.lt.s32.totalorder (!%p189_p2), %s216_s20, 135  ;;  %v630_v5 = vshrl.u32 (!%p189_p2), %v271_v2, 7 }
   0x8   : > { %v266_v6 = vmul.f32 (!%p189_p2), %v263_v3, %v263_v3 }
   0x9   : > { %v273_v8 = vsub.s32 (!%p189_p2), 0, %v630_v5 }
   0xa   : > { %v267_v7 = vsub.f32 (!%p189_p2), %v265_v4, %v266_v6 }
   0xb   : > { %v654_v13 = vrot.slane (!%p189_p2), %v263_v3, %v273_v8 }
   0xc   : > { %v268_v9 = vadd.f32 (!%p189_p2), 1e-05, %v267_v7 }
   0xd   : > { %s1108_s20 = smov (!%p217_p3, %s216_s20), 135 }
   0xe   : > { %s562_s25 = sshll.u32 %s1108_s20, 3  ;;  %576 = vrsqrt.f32 %v268_v9 }
   0xf   : > { %s641_s28 = scalar_lea.vmem %s1089_s0, %s562_s25  ;;  %s856_s10 = scalar_lea.vmem %s1094_s5, %s562_s25 }
  0x10   : > { %v644_v10 = vld [vmem:[%s641_s28] sm:$0xff]  ;;  %v647_v11 = vld [vmem:[%s641_s28 + $0x8] sm:$0xff]  ;;  %v650_v12 = vld [vmem:[%s641_s28 + $0x10] sm:$0xff] }
  0x11   : > { %v657_v14 = vld [vmem:[%s641_s28 + $0x18] sm:$0xff]  ;;  %v660_v15 = vld [vmem:[%s641_s28 + $0x20] sm:$0xff]  ;;  %v663_v16 = vld [vmem:[%s641_s28 + $0x28] sm:$0xff]  ;;  %v276_v26 = vsub.f32 %v644_v10, %v654_v13  ;;  %v277_v27 = vsub.f32 %v647_v11, %v654_v13  ;;  %v278_v28 = vsub.f32 %v650_v12, %v654_v13 }
  0x12   : > { %v666_v17 = vld [vmem:[%s641_s28 + $0x30] sm:$0xff]  ;;  %v669_v18 = vld [vmem:[%s641_s28 + $0x38] sm:$0xff]  ;;  %v672_v19 = vld [vmem:[%s641_s28 + $0x40] sm:$0xff]  ;;  %v279_v32 = vsub.f32 %v657_v14, %v654_v13  ;;  %v280_v33 = vsub.f32 %v660_v15, %v654_v13  ;;  %v281_v34 = vsub.f32 %v663_v16, %v654_v13 }
  0x13   : > { %v675_v20 = vld [vmem:[%s641_s28 + $0x48] sm:$0xff]  ;;  %v678_v21 = vld [vmem:[%s641_s28 + $0x50] sm:$0xff]  ;;  %v681_v22 = vld [vmem:[%s641_s28 + $0x58] sm:$0xff]  ;;  %v282_v35 = vsub.f32 %v666_v17, %v654_v13  ;;  %v283_v39 = vsub.f32 %v669_v18, %v654_v13  ;;  %v284_v40 = vsub.f32 %v672_v19, %v654_v13 }
  0x14   : > { %v684_v23 = vld [vmem:[%s641_s28 + $0x60] sm:$0xff]  ;;  %v687_v24 = vld [vmem:[%s641_s28 + $0x68] sm:$0xff]  ;;  %v690_v25 = vld [vmem:[%s641_s28 + $0x70] sm:$0xff]  ;;  %v285_v41 = vsub.f32 %v675_v20, %v654_v13  ;;  %v286_v42 = vsub.f32 %v678_v21, %v654_v13  ;;  %v287_v46 = vsub.f32 %v681_v22, %v654_v13 }
  0x15   : > { %v699_v29 = vld [vmem:[%s641_s28 + $0x78] sm:$0xff]  ;;  %v702_v30 = vld [vmem:[%s641_s28 + $0x80] sm:$0xff]  ;;  %v705_v31 = vld [vmem:[%s641_s28 + $0x88] sm:$0xff]  ;;  %v288_v47 = vsub.f32 %v684_v23, %v654_v13  ;;  %v289_v48 = vsub.f32 %v687_v24, %v654_v13  ;;  %v290_v49 = vsub.f32 %v690_v25, %v654_v13 }
  0x16   : > { %v716_v36 = vld [vmem:[%s641_s28 + $0x90] sm:$0xff]  ;;  %v719_v37 = vld [vmem:[%s641_s28 + $0x98] sm:$0xff]  ;;  %v722_v38 = vld [vmem:[%s641_s28 + $0xa0] sm:$0xff]  ;;  %v291_v53 = vsub.f32 %v699_v29, %v654_v13  ;;  %v292_v54 = vsub.f32 %v702_v30, %v654_v13  ;;  %v293_v55 = vsub.f32 %v705_v31, %v654_v13 }
  0x17   : > { %v733_v43 = vld [vmem:[%s641_s28 + $0xa8] sm:$0xff]  ;;  %v736_v44 = vld [vmem:[%s641_s28 + $0xb0] sm:$0xff]  ;;  %v739_v45 = vld [vmem:[%s641_s28 + $0xb8] sm:$0xff]  ;;  %v294_v56 = vsub.f32 %v716_v36, %v654_v13  ;;  %v295_v60 = vsub.f32 %v719_v37, %v654_v13  ;;  %v296_v61 = vsub.f32 %v722_v38, %v654_v13 }
  0x18   : > { %v750_v50 = vld [vmem:[%s641_s28 + $0xc0] sm:$0xff]  ;;  %v753_v51 = vld [vmem:[%s641_s28 + $0xc8] sm:$0xff]  ;;  %v756_v52 = vld [vmem:[%s641_s28 + $0xd0] sm:$0xff]  ;;  %v297_v62 = vsub.f32 %v733_v43, %v654_v13  ;;  %v577_v3 = vpop.eup %576  ;;  %v1095_v36 = vsub.f32 %v736_v44, %v654_v13 }
  0x19   : > { %v767_v57 = vld [vmem:[%s641_s28 + $0xd8] sm:$0xff]  ;;  %v770_v58 = vld [vmem:[%s641_s28 + $0xe0] sm:$0xff]  ;;  %v773_v59 = vld [vmem:[%s641_s28 + $0xe8] sm:$0xff]  ;;  %v805_v11 = vrot.slane %v577_v3, %v273_v8 }
  0x1a   : > { %v784_v0 = vld [vmem:[%s641_s28 + $0xf0] sm:$0xff]  ;;  %v787_v1 = vld [vmem:[%s641_s28 + $0xf8] sm:$0xff]  ;;  %v790_v2 = vld [vmem:[%s641_s28 + $0x100] sm:$0xff] }
  0x1b   : > { %v801_v10 = vld [vmem:[%s641_s28 + $0x108] sm:$0xff]  ;;  %v816_v16 = vld [vmem:[%s1092_s3] ss:$0 sm:$0xff]  ;;  %v316_v3 = vmul.f32 %v805_v11, %v276_v26  ;;  %v317_v15 = vmul.f32 %v805_v11, %v277_v27  ;;  %v318_v14 = vmul.f32 %v805_v11, %v278_v28  ;;  %v319_v12 = vmul.f32 %v805_v11, %v279_v32 }
  0x1c   : > { %v833_v17 = vld [vmem:[%s1093_s4] ss:$0 sm:$0xff]  ;;  %v320_v5 = vmul.f32 %v805_v11, %v280_v33  ;;  %v321_v8 = vmul.f32 %v805_v11, %v281_v34  ;;  %v322_v18 = vmul.f32 %v805_v11, %v282_v35  ;;  %v323_v26 = vmul.f32 %v805_v11, %v283_v39 }
  0x1d   : > { %v357_v27 = vmul.f32 %v816_v16, %v316_v3  ;;  %v358_v28 = vmul.f32 %v816_v16, %v317_v15  ;;  %v359_v32 = vmul.f32 %v816_v16, %v318_v14  ;;  %v360_v9 = vmul.f32 %v816_v16, %v319_v12 }
  0x1e   : > { %v361_v7 = vmul.f32 %v816_v16, %v320_v5  ;;  %v362_v6 = vmul.f32 %v816_v16, %v321_v8  ;;  %v363_v33 = vmul.f32 %v816_v16, %v322_v18  ;;  %v364_v34 = vmul.f32 %v816_v16, %v323_v26 }
  0x1f   : > { %v398_v35 = vadd.f32 %v833_v17, %v357_v27  ;;  %v399_v39 = vadd.f32 %v833_v17, %v358_v28  ;;  %v400_v3 = vadd.f32 %v833_v17, %v359_v32  ;;  %v401_v15 = vadd.f32 %v833_v17, %v360_v9 }
  0x20   : > { %v402_v12 = vadd.f32 %v833_v17, %v361_v7  ;;  %v403_v14 = vadd.f32 %v833_v17, %v362_v6  ;;  %v404_v5 = vadd.f32 %v833_v17, %v363_v33  ;;  %v405_v8 = vadd.f32 %v833_v17, %v364_v34 }
  0x21   : > { %v432_v18 = vmax.f32 %v398_v35, 0.0  ;;  %v433_v9 = vmax.f32 %v399_v39, 0.0  ;;  %v434_v26 = vmax.f32 %v400_v3, 0.0  ;;  %v435_v27 = vmax.f32 %v401_v15, 0.0 }
  0x22   : > { %v436_v28 = vmax.f32 %v402_v12, 0.0  ;;  %v437_v32 = vmax.f32 %v403_v14, 0.0  ;;  %v438_v4 = vmax.f32 %v404_v5, 0.0  ;;  %v439_v63 = vmax.f32 %v405_v8, 0.0 }
  0x23   : > { %467 = vst.msk [vmem:[%s856_s10] sm:$0xff] %vm466_vm0, %v432_v18  ;;  %468 = vst.msk [vmem:[%s856_s10 + $0x8] sm:$0xff] %vm466_vm0, %v433_v9  ;;  %v324_v6 = vmul.f32 %v805_v11, %v284_v40  ;;  %v325_v7 = vmul.f32 %v805_v11, %v285_v41  ;;  %v326_v33 = vmul.f32 %v805_v11, %v286_v42 }
  0x24   : > { %469 = vst.msk [vmem:[%s856_s10 + $0x10] sm:$0xff] %vm466_vm0, %v434_v26  ;;  %470 = vst.msk [vmem:[%s856_s10 + $0x18] sm:$0xff] %vm466_vm0, %v435_v27  ;;  %v327_v34 = vmul.f32 %v805_v11, %v287_v46  ;;  %v328_v19 = vmul.f32 %v805_v11, %v288_v47  ;;  %v329_v20 = vmul.f32 %v805_v11, %v289_v48 }
  0x25   : > { %471 = vst.msk [vmem:[%s856_s10 + $0x20] sm:$0xff] %vm466_vm0, %v436_v28  ;;  %472 = vst.msk [vmem:[%s856_s10 + $0x28] sm:$0xff] %vm466_vm0, %v437_v32  ;;  %v330_v21 = vmul.f32 %v805_v11, %v290_v49  ;;  %v331_v22 = vmul.f32 %v805_v11, %v291_v53  ;;  %v365_v40 = vmul.f32 %v816_v16, %v324_v6 }
  0x26   : > { %473 = vst.msk [vmem:[%s856_s10 + $0x30] sm:$0xff] %vm466_vm0, %v438_v4  ;;  %474 = vst.msk [vmem:[%s856_s10 + $0x38] sm:$0xff] %vm466_vm0, %v439_v63  ;;  %v366_v23 = vmul.f32 %v816_v16, %v325_v7  ;;  %v367_v41 = vmul.f32 %v816_v16, %v326_v33  ;;  %v368_v24 = vmul.f32 %v816_v16, %v327_v34 }
  0x27   : > { %v369_v42 = vmul.f32 %v816_v16, %v328_v19  ;;  %v370_v46 = vmul.f32 %v816_v16, %v329_v20  ;;  %v371_v25 = vmul.f32 %v816_v16, %v330_v21  ;;  %v372_v47 = vmul.f32 %v816_v16, %v331_v22 }
  0x28   : > { %v406_v29 = vadd.f32 %v833_v17, %v365_v40  ;;  %v407_v48 = vadd.f32 %v833_v17, %v366_v23  ;;  %v408_v49 = vadd.f32 %v833_v17, %v367_v41  ;;  %v409_v53 = vadd.f32 %v833_v17, %v368_v24 }
  0x29   : > { %v410_v63 = vadd.f32 %v833_v17, %v369_v42  ;;  %v411_v4 = vadd.f32 %v833_v17, %v370_v46  ;;  %v412_v35 = vadd.f32 %v833_v17, %v371_v25  ;;  %v413_v39 = vadd.f32 %v833_v17, %v372_v47 }
  0x2a   : > { %v440_v3 = vmax.f32 %v406_v29, 0.0  ;;  %v441_v15 = vmax.f32 %v407_v48, 0.0  ;;  %v442_v12 = vmax.f32 %v408_v49, 0.0  ;;  %v443_v14 = vmax.f32 %v409_v53, 0.0 }
  0x2b   : > { %v444_v5 = vmax.f32 %v410_v63, 0.0  ;;  %v445_v8 = vmax.f32 %v411_v4, 0.0  ;;  %v446_v18 = vmax.f32 %v412_v35, 0.0  ;;  %v447_v9 = vmax.f32 %v413_v39, 0.0 }
  0x2c   : > { %475 = vst.msk [vmem:[%s856_s10 + $0x40] sm:$0xff] %vm466_vm0, %v440_v3  ;;  %476 = vst.msk [vmem:[%s856_s10 + $0x48] sm:$0xff] %vm466_vm0, %v441_v15  ;;  %v332_v26 = vmul.f32 %v805_v11, %v292_v54  ;;  %v333_v27 = vmul.f32 %v805_v11, %v293_v55  ;;  %v334_v28 = vmul.f32 %v805_v11, %v294_v56 }
  0x2d   : > { %477 = vst.msk [vmem:[%s856_s10 + $0x50] sm:$0xff] %vm466_vm0, %v442_v12  ;;  %478 = vst.msk [vmem:[%s856_s10 + $0x58] sm:$0xff] %vm466_vm0, %v443_v14  ;;  %v335_v32 = vmul.f32 %v805_v11, %v295_v60  ;;  %v336_v30 = vmul.f32 %v805_v11, %v296_v61  ;;  %v337_v31 = vmul.f32 %v805_v11, %v297_v62 }
  0x2e   : > { %479 = vst.msk [vmem:[%s856_s10 + $0x60] sm:$0xff] %vm466_vm0, %v444_v5  ;;  %480 = vst.msk [vmem:[%s856_s10 + $0x68] sm:$0xff] %vm466_vm0, %v445_v8  ;;  %v338_v37 = vmul.f32 %v805_v11, %v1095_v36  ;;  %v1096_v54 = vsub.f32 %v739_v45, %v654_v13  ;;  %v373_v56 = vmul.f32 %v816_v16, %v332_v26 }
  0x2f   : > { %481 = vst.msk [vmem:[%s856_s10 + $0x70] sm:$0xff] %vm466_vm0, %v446_v18  ;;  %482 = vst.msk [vmem:[%s856_s10 + $0x78] sm:$0xff] %vm466_vm0, %v447_v9  ;;  %v374_v38 = vmul.f32 %v816_v16, %v333_v27  ;;  %v375_v60 = vmul.f32 %v816_v16, %v334_v28  ;;  %v376_v43 = vmul.f32 %v816_v16, %v335_v32 }
  0x30   : > { %v339_v55 = vmul.f32 %v805_v11, %v1096_v54  ;;  %v377_v61 = vmul.f32 %v816_v16, %v336_v30  ;;  %v378_v62 = vmul.f32 %v816_v16, %v337_v31  ;;  %v379_v44 = vmul.f32 %v816_v16, %v338_v37 }
  0x31   : > { %v414_v45 = vadd.f32 %v833_v17, %v373_v56  ;;  %v415_v7 = vadd.f32 %v833_v17, %v374_v38  ;;  %v416_v33 = vadd.f32 %v833_v17, %v375_v60  ;;  %v417_v34 = vadd.f32 %v833_v17, %v376_v43 }
  0x32   : > { %v380_v6 = vmul.f32 %v816_v16, %v339_v55  ;;  %v418_v19 = vadd.f32 %v833_v17, %v377_v61  ;;  %v419_v20 = vadd.f32 %v833_v17, %v378_v62  ;;  %v420_v21 = vadd.f32 %v833_v17, %v379_v44 }
  0x33   : > { %v448_v40 = vmax.f32 %v414_v45, 0.0  ;;  %v449_v23 = vmax.f32 %v415_v7, 0.0  ;;  %v450_v41 = vmax.f32 %v416_v33, 0.0  ;;  %v451_v24 = vmax.f32 %v417_v34, 0.0 }
  0x34   : > { %v421_v22 = vadd.f32 %v833_v17, %v380_v6  ;;  %v452_v42 = vmax.f32 %v418_v19, 0.0  ;;  %v453_v46 = vmax.f32 %v419_v20, 0.0  ;;  %v454_v25 = vmax.f32 %v420_v21, 0.0 }
  0x35   : > { %483 = vst.msk [vmem:[%s856_s10 + $0x80] sm:$0xff] %vm466_vm0, %v448_v40  ;;  %484 = vst.msk [vmem:[%s856_s10 + $0x88] sm:$0xff] %vm466_vm0, %v449_v23  ;;  %v1097_v29 = vsub.f32 %v750_v50, %v654_v13  ;;  %v1098_v49 = vsub.f32 %v753_v51, %v654_v13  ;;  %v1099_v63 = vsub.f32 %v756_v52, %v654_v13 }
  0x36   : > { %v455_v47 = vmax.f32 %v421_v22, 0.0  ;;  %485 = vst.msk [vmem:[%s856_s10 + $0x90] sm:$0xff] %vm466_vm0, %v450_v41  ;;  %486 = vst.msk [vmem:[%s856_s10 + $0x98] sm:$0xff] %vm466_vm0, %v451_v24  ;;  %v1100_v35 = vsub.f32 %v767_v57, %v654_v13  ;;  %v1101_v50 = vsub.f32 %v770_v58, %v654_v13  ;;  %v1102_v52 = vsub.f32 %v773_v59, %v654_v13 }
  0x37   : > { %v340_v48 = vmul.f32 %v805_v11, %v1097_v29  ;;  %v341_v53 = vmul.f32 %v805_v11, %v1098_v49  ;;  %v342_v4 = vmul.f32 %v805_v11, %v1099_v63  ;;  %487 = vst.msk [vmem:[%s856_s10 + $0xa0] sm:$0xff] %vm466_vm0, %v452_v42  ;;  %488 = vst.msk [vmem:[%s856_s10 + $0xa8] sm:$0xff] %vm466_vm0, %v453_v46 }
  0x38   : > { %v343_v39 = vmul.f32 %v805_v11, %v1100_v35  ;;  %489 = vst.msk [vmem:[%s856_s10 + $0xb0] sm:$0xff] %vm466_vm0, %v454_v25  ;;  %490 = vst.msk [vmem:[%s856_s10 + $0xb8] sm:$0xff] %vm466_vm0, %v455_v47  ;;  %v344_v51 = vmul.f32 %v805_v11, %v1101_v50  ;;  %v345_v57 = vmul.f32 %v805_v11, %v1102_v52 }
  0x39   : > { %v1103_v3 = vsub.f32 %v784_v0, %v654_v13  ;;  %v1104_v12 = vsub.f32 %v787_v1, %v654_v13  ;;  %v381_v5 = vmul.f32 %v816_v16, %v340_v48  ;;  %v382_v58 = vmul.f32 %v816_v16, %v341_v53 }
  0x3a   : > { %v383_v8 = vmul.f32 %v816_v16, %v342_v4  ;;  %v384_v59 = vmul.f32 %v816_v16, %v343_v39  ;;  %v385_v18 = vmul.f32 %v816_v16, %v344_v51  ;;  %v386_v9 = vmul.f32 %v816_v16, %v345_v57 }
  0x3b   : > { %v346_v15 = vmul.f32 %v805_v11, %v1103_v3  ;;  %v347_v14 = vmul.f32 %v805_v11, %v1104_v12  ;;  %v422_v1 = vadd.f32 %v833_v17, %v381_v5  ;;  %v423_v27 = vadd.f32 %v833_v17, %v382_v58 }
  0x3c   : > { %v424_v28 = vadd.f32 %v833_v17, %v383_v8  ;;  %v425_v32 = vadd.f32 %v833_v17, %v384_v59  ;;  %v426_v30 = vadd.f32 %v833_v17, %v385_v18  ;;  %v427_v31 = vadd.f32 %v833_v17, %v386_v9 }
  0x3d   : > { %v387_v0 = vmul.f32 %v816_v16, %v346_v15  ;;  %v388_v26 = vmul.f32 %v816_v16, %v347_v14  ;;  %v456_v54 = vmax.f32 %v422_v1, 0.0  ;;  %v457_v55 = vmax.f32 %v423_v27, 0.0 }
  0x3e   : > { %v458_v56 = vmax.f32 %v424_v28, 0.0  ;;  %v459_v38 = vmax.f32 %v425_v32, 0.0  ;;  %v460_v60 = vmax.f32 %v426_v30, 0.0  ;;  %v461_v43 = vmax.f32 %v427_v31, 0.0 }
  0x3f   : > { %v428_v36 = vadd.f32 %v833_v17, %v387_v0  ;;  %v429_v37 = vadd.f32 %v833_v17, %v388_v26  ;;  %491 = vst.msk [vmem:[%s856_s10 + $0xc0] sm:$0xff] %vm466_vm0, %v456_v54  ;;  %492 = vst.msk [vmem:[%s856_s10 + $0xc8] sm:$0xff] %vm466_vm0, %v457_v55  ;;  %v1105_v44 = vsub.f32 %v790_v2, %v654_v13 }
  0x40   : > { %493 = vst.msk [vmem:[%s856_s10 + $0xd0] sm:$0xff] %vm466_vm0, %v458_v56  ;;  %494 = vst.msk [vmem:[%s856_s10 + $0xd8] sm:$0xff] %vm466_vm0, %v459_v38  ;;  %v1106_v45 = vsub.f32 %v801_v10, %v654_v13 }
  0x41   : > { %v462_v61 = vmax.f32 %v428_v36, 0.0  ;;  %v463_v62 = vmax.f32 %v429_v37, 0.0  ;;  %v348_v6 = vmul.f32 %v805_v11, %v1105_v44  ;;  %495 = vst.msk [vmem:[%s856_s10 + $0xe0] sm:$0xff] %vm466_vm0, %v460_v60  ;;  %496 = vst.msk [vmem:[%s856_s10 + $0xe8] sm:$0xff] %vm466_vm0, %v461_v43 }
  0x42   : > { %v349_v7 = vmul.f32 %v805_v11, %v1106_v45 }
  0x43   : > { %497 = vst.msk [vmem:[%s856_s10 + $0xf0] sm:$0xff] %vm466_vm0, %v462_v61  ;;  %498 = vst.msk [vmem:[%s856_s10 + $0xf8] sm:$0xff] %vm466_vm0, %v463_v62  ;;  %v389_v33 = vmul.f32 %v816_v16, %v348_v6 }
  0x44   : > { %v390_v34 = vmul.f32 %v816_v16, %v349_v7 }
  0x45   : > { %v430_v2 = vadd.f32 %v833_v17, %v389_v33 }
  0x46   : > { %v431_v19 = vadd.f32 %v833_v17, %v390_v34 }
  0x47   : > { %v464_v20 = vmax.f32 %v430_v2, 0.0 }
  0x48   : > { %v465_v13 = vmax.f32 %v431_v19, 0.0 }
  0x49   : > { %499 = vst.msk [vmem:[%s856_s10 + $0x100] sm:$0xff] %vm466_vm0, %v464_v20 }
  0x4a   : > { %500 = vst.msk [vmem:[%s856_s10 + $0x108] sm:$0xff] %vm466_vm0, %v465_v13 }
  0x4b PF: > { %s15_s18 = sadd.s32 1, %s584_s18  }
  0x4c   : > { %p12_p4 = scmp.ge.s32.totalorder %s15_s18, 6  }
  0x4e   :  { %14 = sbr.rel (!%p12_p4) target bundleno = 1 (0x1), region = 70 }

// kernel: ffc_layer_forward.7
= control target key start
LH: loop header
LB: loop body
LE: loop exit
PB: predicated region body
PF: predicated region fallthrough
CT: control target
= control target key end

     0   :  { %s1036_s15 = smov 0   ;;  %s1479_s0 = inlined_call_operand.vmem [shape: bf16[1088,6], index: 0, kind: input, shape index: {}]   ;;  %s1480_s1 = inlined_call_operand.vmem [shape: bf16[6,6], index: 1, kind: input, shape index: {}]   ;;  %s1481_s2 = inlined_call_operand.vmem [shape: f32[1088,6], index: 2, kind: output, shape index: {0}]   ;;  %s1482_s3 = inlined_call_operand.vmem [shape: f32[1,6], index: 3, kind: output, shape index: {1}]   ;;  %s1483_s4 = inlined_call_operand.vmem [shape: f32[1,6], index: 4, kind: output, shape index: {2}]  }
   0x1 LB: > { %s838_s16 = sadd.s32 4294967295, %s1006_s15   ;;  %p842_p0 = scmp.ge.s32.totalorder %s1006_s15, 1  ;;  %s1006_s15 = sphi %s1036_s15, %s15_s15  }
   0x2   : > { %p158_p1 = scmp.lt.s32.totalorder %s1006_s15, 5 }
   0x4   : > { %p159_p2 = pnand %p842_p0, %p158_p1 }
   0x5   : > { %v231_v0 = vld [vmem:[%s1480_s1] sm:$0x7] (!%p159_p2)  ;;  %vm369_vm0 = vcmask (!%p159_p2), 1042432   ;;  %s184_s19 = smul.u32 (!%p159_p2), 34, %s838_s16  ;;  %v1008_v1 = vmov (!%p159_p2), 0.0   ;;  %vm1009_vm1 = vmmov (!%p159_p2), 0  }
   0x6   : > { %162 = sbr.rel (%p159_p2) target bundleno = 386 (0x182), region = 28  ;;  %900 = vmatprep.subr.bf16.mxu0 (!%p159_p2), %v1008_v1  ;;  %v371_v2 = vsel (!%p159_p2), %vm369_vm0, %v231_v0, 0  ;;  %902 = vmatprep.mubr.msk.bf16.mxu0 (!%p159_p2), %vm1009_vm1, %v1008_v1  ;;  %vm317_vm2 = vcmask (!%p159_p2), 48128   ;;  %p879_p4 = scmp.ne.s32.totalorder (!%p159_p2), %s838_s16, 0 }
   0x7   : > { %901 = vmatpush3.bf16.msra.mxu0 (!%p159_p2), %v371_v2  ;;  %p185_p3 = scmp.lt.s32.totalorder (!%p159_p2), %s184_s19, 135  ;;  %970 = vmatprep.subr.bf16.mxu1 (!%p159_p2), %v1008_v1 }
   0x8   : > { %971 = vmatpush3.bf16.msra.mxu1 (!%p159_p2), %v371_v2  ;;  %938 = vmatprep.mubr.msk.bf16.mxu1 (!%p159_p2), %vm1009_vm1, %v1008_v1 }
   0xd   : > { %s1485_s19 = smov (!%p185_p3, %s184_s19), 135  ;;  %vm580_vm3 = vcmask (!%p879_p4), 40960  }
   0xe   : > { %s843_s20 = sshll.u32 %s1485_s19, 2  ;;  %s844_s24 = sshll.u32 %s1485_s19, 3 }
   0xf   : > { %s1057_s23 = scalar_lea.vmem %s1479_s0, %s843_s20  ;;  %s1112_s27 = scalar_lea.vmem %s1481_s2, %s844_s24 }
  0x10   : > { %v983_v3 = vld [vmem:[%s1057_s23] sm:$0xff]   ;;  %v984_v4 = vld [vmem:[%s1057_s23 + $0x48] sm:$0xff]   ;;  %v986_v6 = vld [vmem:[%s1057_s23 + $0x50] sm:$0xff]  }
  0x11   : > { %903 = vmatmul.mubr.msk.bf16.vlgmr.msra.gmra.mrb[0].mxu0 %vm317_vm2, %v983_v3  ;;  %939 = vmatmul.mubr.msk.bf16.vlgmr.msra.gmra.mrb[0].mxu1 %vm317_vm2, %v984_v4  ;;  %v985_v5 = vld [vmem:[%s1057_s23 + $0x8] sm:$0xff]   ;;  %v987_v7 = vld [vmem:[%s1057_s23 + $0x10] sm:$0xff]   ;;  %v988_v8 = vld [vmem:[%s1057_s23 + $0x58] sm:$0xff]  }
  0x12   : > { %906 = vmatprep.mubr.msk.bf16.mxu0 %vm1009_vm1, %v1008_v1  ;;  %942 = vmatprep.mubr.msk.bf16.mxu1 %vm1009_vm1, %v1008_v1  ;;  %v989_v9 = vld [vmem:[%s1057_s23 + $0x18] sm:$0xff]   ;;  %v990_v10 = vld [vmem:[%s1057_s23 + $0x60] sm:$0xff]   ;;  %v992_v12 = vld [vmem:[%s1057_s23 + $0x68] sm:$0xff]  }
  0x13   : > { %v991_v11 = vld [vmem:[%s1057_s23 + $0x20] sm:$0xff]   ;;  %v993_v13 = vld [vmem:[%s1057_s23 + $0x28] sm:$0xff]   ;;  %v994_v14 = vld [vmem:[%s1057_s23 + $0x70] sm:$0xff]  }
  0x14   : > { %v995_v15 = vld [vmem:[%s1057_s23 + $0x30] sm:$0xff]   ;;  %v996_v16 = vld [vmem:[%s1057_s23 + $0x78] sm:$0xff]   ;;  %v998_v18 = vld [vmem:[%s1057_s23 + $0x80] sm:$0xff]  }
  0x15   : > { %v997_v17 = vld [vmem:[%s1057_s23 + $0x38] sm:$0xff]   ;;  %v999_v19 = vld [vmem:[%s1057_s23 + $0x40] sm:$0xff]  }
  0x19   : > { %907 = vmatmul.mubr.msk.bf16.gmra.mrb[4].mxu0 %vm317_vm2, %v985_v5  ;;  %943 = vmatmul.mubr.msk.bf16.gmra.mrb[4].mxu1 %vm317_vm2, %v986_v6 }
  0x1a   : > { %910 = vmatprep.mubr.msk.bf16.mxu0 %vm1009_vm1, %v1008_v1  ;;  %946 = vmatprep.mubr.msk.bf16.mxu1 %vm1009_vm1, %v1008_v1 }
  0x21   : > { %911 = vmatmul.mubr.msk.bf16.gmra.mrb[8].mxu0 %vm317_vm2, %v987_v7  ;;  %947 = vmatmul.mubr.msk.bf16.gmra.mrb[8].mxu1 %vm317_vm2, %v988_v8 }
  0x22   : > { %914 = vmatprep.mubr.msk.bf16.mxu0 %vm1009_vm1, %v1008_v1  ;;  %950 = vmatprep.mubr.msk.bf16.mxu1 %vm1009_vm1, %v1008_v1 }
  0x29   : > { %915 = vmatmul.mubr.msk.bf16.gmra.mrb[12].mxu0 %vm317_vm2, %v989_v9  ;;  %951 = vmatmul.mubr.msk.bf16.gmra.mrb[12].mxu1 %vm317_vm2, %v990_v10 }
  0x2a   : > { %918 = vmatprep.mubr.msk.bf16.mxu0 %vm1009_vm1, %v1008_v1  ;;  %954 = vmatprep.mubr.msk.bf16.mxu1 %vm1009_vm1, %v1008_v1 }
  0x31   : > { %919 = vmatmul.mubr.msk.bf16.gmra.mrb[16].mxu0 %vm317_vm2, %v991_v11  ;;  %955 = vmatmul.mubr.msk.bf16.gmra.mrb[16].mxu1 %vm317_vm2, %v992_v12 }
  0x32   : > { %922 = vmatprep.mubr.msk.bf16.mxu0 %vm1009_vm1, %v1008_v1  ;;  %958 = vmatprep.mubr.msk.bf16.mxu1 %vm1009_vm1, %v1008_v1 }
  0x39   : > { %923 = vmatmul.mubr.msk.bf16.gmra.mrb[20].mxu0 %vm317_vm2, %v993_v13  ;;  %959 = vmatmul.mubr.msk.bf16.gmra.mrb[20].mxu1 %vm317_vm2, %v994_v14 }
  0x3a   : > { %926 = vmatprep.mubr.msk.bf16.mxu0 %vm1009_vm1, %v1008_v1  ;;  %962 = vmatprep.mubr.msk.bf16.mxu1 %vm1009_vm1, %v1008_v1 }
  0x41   : > { %927 = vmatmul.mubr.msk.bf16.gmra.mrb[24].mxu0 %vm317_vm2, %v995_v15  ;;  %963 = vmatmul.mubr.msk.bf16.gmra.mrb[24].mxu1 %vm317_vm2, %v996_v16 }
  0x42   : > { %930 = vmatprep.mubr.msk.bf16.mxu0 %vm1009_vm1, %v1008_v1  ;;  %966 = vmatprep.mubr.msk.bf16.mxu1 %vm1009_vm1, %v1008_v1 }
  0x49   : > { %931 = vmatmul.mubr.msk.bf16.gmra.mrb[28].mxu0 %vm317_vm2, %v997_v17  ;;  %967 = vmatmul.mubr.msk.bf16.gmra.mrb[28].mxu1 %vm317_vm2, %v998_v18 }
  0x4a   : > { %934 = vmatprep.mubr.msk.bf16.mxu0 %vm1009_vm1, %v1008_v1 }
  0x51   : > { %935 = vmatmul.mubr.msk.bf16.gmra.mrb[32].mxu0 %vm317_vm2, %v999_v19 }
  0xe4   : > { %v1114_v20 = vpop.f32.mrb[0].mxu0  ;;  %v1119_v22 = vpop.f32.mrb[0].mxu1 }
  0xe5   : > { %542 = vst.msk [vmem:[%s1112_s27] sm:$0xff] %vm317_vm2, %v1114_v20  ;;  %v904_v21 = vpop.f32.mrb[1].mxu0  ;;  %560 = vst.msk [vmem:[%s1112_s27 + $0x90] sm:$0xff] %vm317_vm2, %v1119_v22  ;;  %v940_v24 = vpop.f32.mrb[1].mxu1 }
  0xe6   : > { %v1121_v23 = vpop.f32.mrb[2].mxu0  ;;  %v1129_v26 = vpop.f32.mrb[2].mxu1 }
  0xe7   : > { %543 = vst.msk [vmem:[%s1112_s27 + $0x8] sm:$0xff] %vm317_vm2, %v1121_v23  ;;  %v905_v25 = vpop.f32.mrb[3].mxu0  ;;  %561 = vst.msk [vmem:[%s1112_s27 + $0x98] sm:$0xff] %vm317_vm2, %v1129_v26  ;;  %v941_v27 = vpop.f32.mrb[3].mxu1 }
  0xec   : > { %v1134_v28 = vpop.f32.mrb[4].mxu0  ;;  %v1139_v30 = vpop.f32.mrb[4].mxu1 }
  0xed   : > { %544 = vst.msk [vmem:[%s1112_s27 + $0x10] sm:$0xff] %vm317_vm2, %v1134_v28  ;;  %v908_v29 = vpop.f32.mrb[5].mxu0  ;;  %562 = vst.msk [vmem:[%s1112_s27 + $0xa0] sm:$0xff] %vm317_vm2, %v1139_v30  ;;  %v944_v32 = vpop.f32.mrb[5].mxu1 }
  0xee   : > { %v1141_v31 = vpop.f32.mrb[6].mxu0  ;;  %v1149_v34 = vpop.f32.mrb[6].mxu1  ;;  %v1010_v29 = vmov (!%p879_p4), 0.0  }
  0xef   : > { %545 = vst.msk [vmem:[%s1112_s27 + $0x18] sm:$0xff] %vm317_vm2, %v1141_v31  ;;  %v909_v33 = vpop.f32.mrb[7].mxu0  ;;  %563 = vst.msk [vmem:[%s1112_s27 + $0xa8] sm:$0xff] %vm317_vm2, %v1149_v34  ;;  %v945_v35 = vpop.f32.mrb[7].mxu1 }
  0xf0   : > { %581 = vst.msk [vmem:[%s1482_s3] sm:$0x1] (!%p879_p4), %vm580_vm3, %v1010_v29  ;;  %582 = vst.msk [vmem:[%s1483_s4] sm:$0x1] (!%p879_p4), %vm580_vm3, %v1010_v29 }
  0xf4   : > { %v1154_v36 = vpop.f32.mrb[8].mxu0  ;;  %v1159_v38 = vpop.f32.mrb[8].mxu1 }
  0xf5   : > { %546 = vst.msk [vmem:[%s1112_s27 + $0x20] sm:$0xff] %vm317_vm2, %v1154_v36  ;;  %v912_v37 = vpop.f32.mrb[9].mxu0  ;;  %564 = vst.msk [vmem:[%s1112_s27 + $0xb0] sm:$0xff] %vm317_vm2, %v1159_v38  ;;  %v948_v40 = vpop.f32.mrb[9].mxu1 }
  0xf6   : > { %v1161_v39 = vpop.f32.mrb[10].mxu0  ;;  %v1169_v42 = vpop.f32.mrb[10].mxu1 }
  0xf7   : > { %547 = vst.msk [vmem:[%s1112_s27 + $0x28] sm:$0xff] %vm317_vm2, %v1161_v39  ;;  %v913_v41 = vpop.f32.mrb[11].mxu0  ;;  %565 = vst.msk [vmem:[%s1112_s27 + $0xb8] sm:$0xff] %vm317_vm2, %v1169_v42  ;;  %v949_v43 = vpop.f32.mrb[11].mxu1 }
  0xfc   : > { %v1174_v44 = vpop.f32.mrb[12].mxu0  ;;  %v1179_v46 = vpop.f32.mrb[12].mxu1 }
  0xfd   : > { %548 = vst.msk [vmem:[%s1112_s27 + $0x30] sm:$0xff] %vm317_vm2, %v1174_v44  ;;  %v916_v45 = vpop.f32.mrb[13].mxu0  ;;  %566 = vst.msk [vmem:[%s1112_s27 + $0xc0] sm:$0xff] %vm317_vm2, %v1179_v46  ;;  %v952_v48 = vpop.f32.mrb[13].mxu1 }
  0xfe   : > { %v1181_v47 = vpop.f32.mrb[14].mxu0  ;;  %v1189_v50 = vpop.f32.mrb[14].mxu1 }
  0xff   : > { %549 = vst.msk [vmem:[%s1112_s27 + $0x38] sm:$0xff] %vm317_vm2, %v1181_v47  ;;  %v917_v49 = vpop.f32.mrb[15].mxu0  ;;  %567 = vst.msk [vmem:[%s1112_s27 + $0xc8] sm:$0xff] %vm317_vm2, %v1189_v50  ;;  %v953_v51 = vpop.f32.mrb[15].mxu1 }
 0x104   : > { %v1194_v52 = vpop.f32.mrb[16].mxu0  ;;  %v1199_v54 = vpop.f32.mrb[16].mxu1 }
 0x105   : > { %550 = vst.msk [vmem:[%s1112_s27 + $0x40] sm:$0xff] %vm317_vm2, %v1194_v52  ;;  %v920_v53 = vpop.f32.mrb[17].mxu0  ;;  %568 = vst.msk [vmem:[%s1112_s27 + $0xd0] sm:$0xff] %vm317_vm2, %v1199_v54  ;;  %v956_v56 = vpop.f32.mrb[17].mxu1 }
 0x106   : > { %v1201_v55 = vpop.f32.mrb[18].mxu0  ;;  %v1209_v58 = vpop.f32.mrb[18].mxu1 }
 0x107   : > { %551 = vst.msk [vmem:[%s1112_s27 + $0x48] sm:$0xff] %vm317_vm2, %v1201_v55  ;;  %v921_v57 = vpop.f32.mrb[19].mxu0  ;;  %569 = vst.msk [vmem:[%s1112_s27 + $0xd8] sm:$0xff] %vm317_vm2, %v1209_v58  ;;  %v957_v59 = vpop.f32.mrb[19].mxu1 }
 0x10c   : > { %v1214_v60 = vpop.f32.mrb[20].mxu0  ;;  %v1219_v62 = vpop.f32.mrb[20].mxu1 }
 0x10d   : > { %552 = vst.msk [vmem:[%s1112_s27 + $0x50] sm:$0xff] %vm317_vm2, %v1214_v60  ;;  %v924_v61 = vpop.f32.mrb[21].mxu0  ;;  %570 = vst.msk [vmem:[%s1112_s27 + $0xe0] sm:$0xff] %vm317_vm2, %v1219_v62  ;;  %v960_v0 = vpop.f32.mrb[21].mxu1 }
 0x10e   : > { %v1221_v63 = vpop.f32.mrb[22].mxu0  ;;  %v1229_v2 = vpop.f32.mrb[22].mxu1 }
 0x10f   : > { %553 = vst.msk [vmem:[%s1112_s27 + $0x58] sm:$0xff] %vm317_vm2, %v1221_v63  ;;  %v925_v1 = vpop.f32.mrb[23].mxu0  ;;  %571 = vst.msk [vmem:[%s1112_s27 + $0xe8] sm:$0xff] %vm317_vm2, %v1229_v2  ;;  %v961_v3 = vpop.f32.mrb[23].mxu1 }
 0x114   : > { %v1234_v4 = vpop.f32.mrb[24].mxu0  ;;  %v1239_v6 = vpop.f32.mrb[24].mxu1 }
 0x115   : > { %554 = vst.msk [vmem:[%s1112_s27 + $0x60] sm:$0xff] %vm317_vm2, %v1234_v4  ;;  %v928_v5 = vpop.f32.mrb[25].mxu0  ;;  %572 = vst.msk [vmem:[%s1112_s27 + $0xf0] sm:$0xff] %vm317_vm2, %v1239_v6  ;;  %v964_v8 = vpop.f32.mrb[25].mxu1 }
 0x116   : > { %v1241_v7 = vpop.f32.mrb[26].mxu0  ;;  %v1249_v10 = vpop.f32.mrb[26].mxu1 }
 0x117   : > { %555 = vst.msk [vmem:[%s1112_s27 + $0x68] sm:$0xff] %vm317_vm2, %v1241_v7  ;;  %v929_v9 = vpop.f32.mrb[27].mxu0  ;;  %573 = vst.msk [vmem:[%s1112_s27 + $0xf8] sm:$0xff] %vm317_vm2, %v1249_v10  ;;  %v965_v11 = vpop.f32.mrb[27].mxu1 }
 0x11c   : > { %v1254_v12 = vpop.f32.mrb[28].mxu0  ;;  %v1259_v14 = vpop.f32.mrb[28].mxu1 }
 0x11d   : > { %556 = vst.msk [vmem:[%s1112_s27 + $0x70] sm:$0xff] %vm317_vm2, %v1254_v12  ;;  %v932_v13 = vpop.f32.mrb[29].mxu0  ;;  %574 = vst.msk [vmem:[%s1112_s27 + $0x100] sm:$0xff] %vm317_vm2, %v1259_v14  ;;  %v968_v16 = vpop.f32.mrb[29].mxu1 }
 0x11e   : > { %v1261_v15 = vpop.f32.mrb[30].mxu0  ;;  %v1269_v18 = vpop.f32.mrb[30].mxu1 }
 0x11f   : > { %557 = vst.msk [vmem:[%s1112_s27 + $0x78] sm:$0xff] %vm317_vm2, %v1261_v15  ;;  %v933_v17 = vpop.f32.mrb[31].mxu0  ;;  %575 = vst.msk [vmem:[%s1112_s27 + $0x108] sm:$0xff] %vm317_vm2, %v1269_v18  ;;  %v969_v19 = vpop.f32.mrb[31].mxu1 }
 0x121   : > { %579 = sbr.rel (%p879_p4) target bundleno = 296 (0x128), region = 32 }
 0x124   : > { %v1274_v21 = vpop.f32.mrb[32].mxu0 }
 0x125   : > { %558 = vst.msk [vmem:[%s1112_s27 + $0x80] sm:$0xff] %vm317_vm2, %v1274_v21  ;;  %v936_v24 = vpop.f32.mrb[33].mxu0 }
 0x126   : > { %v1279_v25 = vpop.f32.mrb[34].mxu0 }
 0x127   : > { %559 = vst.msk [vmem:[%s1112_s27 + $0x88] sm:$0xff] %vm317_vm2, %v1279_v25  ;;  %v937_v27 = vpop.f32.mrb[35].mxu0 }
 0x128 PF: > { %v584_v32 = vsel %vm317_vm2, %v1114_v20, 0.0  ;;  %v585_v33 = vsel %vm317_vm2, %v1121_v23, 0.0  ;;  %v587_v35 = vsel %vm317_vm2, %v1134_v28, 0.0  ;;  %v589_v40 = vsel %vm317_vm2, %v1141_v31, 0.0 }
 0x129   : > { %v586_v37 = vadd.f32 %v585_v33, %v584_v32  ;;  %v591_v43 = vsel %vm317_vm2, %v1154_v36, 0.0  ;;  %v593_v48 = vsel %vm317_vm2, %v1161_v39, 0.0  ;;  %v595_v51 = vsel %vm317_vm2, %v1174_v44, 0.0 }
 0x12a   : > { %v597_v56 = vsel %vm317_vm2, %v1181_v47, 0.0  ;;  %v599_v59 = vsel %vm317_vm2, %v1194_v52, 0.0  ;;  %v601_v0 = vsel %vm317_vm2, %v1201_v55, 0.0  ;;  %v661_v3 = vmul.f32 %v1114_v20, %v1114_v20 }
 0x12b   : > { %v588_v41 = vadd.f32 %v587_v35, %v586_v37  ;;  %v603_v5 = vsel %vm317_vm2, %v1214_v60, 0.0  ;;  %v662_v8 = vmul.f32 %v1121_v23, %v1121_v23  ;;  %v663_v9 = vmul.f32 %v1134_v28, %v1134_v28 }
 0x12c   : > { %v605_v13 = vsel %vm317_vm2, %v1221_v63, 0.0  ;;  %v664_v16 = vmul.f32 %v1141_v31, %v1141_v31  ;;  %v695_v19 = vsel %vm317_vm2, %v661_v3, 0.0  ;;  %v607_v20 = vsel %vm317_vm2, %v1234_v4, 0.0 }
 0x12d   : > { %v590_v45 = vadd.f32 %v589_v40, %v588_v41  ;;  %v665_v24 = vmul.f32 %v1154_v36, %v1154_v36  ;;  %v696_v23 = vsel %vm317_vm2, %v662_v8, 0.0  ;;  %v698_v28 = vsel %vm317_vm2, %v663_v9, 0.0 }
 0x12e   : > { %v697_v29 = vadd.f32 %v696_v23, %v695_v19  ;;  %v609_v32 = vsel %vm317_vm2, %v1241_v7, 0.0  ;;  %v666_v31 = vmul.f32 %v1161_v39, %v1161_v39  ;;  %v700_v33 = vsel %vm317_vm2, %v664_v16, 0.0 }
 0x12f   : > { %v592_v49 = vadd.f32 %v591_v43, %v590_v45  ;;  %v611_v40 = vsel %vm317_vm2, %v1254_v12, 0.0  ;;  %v667_v36 = vmul.f32 %v1174_v44, %v1174_v44  ;;  %v702_v41 = vsel %vm317_vm2, %v665_v24, 0.0 }
 0x130   : > { %v699_v37 = vadd.f32 %v698_v28, %v697_v29  ;;  %v668_v39 = vmul.f32 %v1181_v47, %v1181_v47  ;;  %v669_v44 = vmul.f32 %v1194_v52, %v1194_v52  ;;  %v670_v47 = vmul.f32 %v1201_v55, %v1201_v55 }
 0x131   : > { %v594_v53 = vadd.f32 %v593_v48, %v592_v49  ;;  %v613_v48 = vsel %vm317_vm2, %v1261_v15, 0.0  ;;  %v704_v49 = vsel %vm317_vm2, %v666_v31, 0.0  ;;  %v619_v8 = vsel %vm317_vm2, %v1119_v22, 0.0 }
 0x132   : > { %v701_v45 = vadd.f32 %v700_v33, %v699_v37  ;;  %v671_v52 = vmul.f32 %v1214_v60, %v1214_v60  ;;  %v710_v9 = vsel %vm317_vm2, %v669_v44, 0.0  ;;  %v621_v16 = vsel %vm317_vm2, %v1129_v26, 0.0 }
 0x133   : > { %v596_v57 = vadd.f32 %v595_v51, %v594_v53  ;;  %v672_v55 = vmul.f32 %v1221_v63, %v1221_v63  ;;  %v623_v24 = vsel %vm317_vm2, %v1139_v30, 0.0  ;;  %v673_v60 = vmul.f32 %v1234_v4, %v1234_v4 }
 0x134   : > { %v703_v53 = vadd.f32 %v702_v41, %v701_v45  ;;  %v714_v23 = vsel %vm317_vm2, %v671_v52, 0.0  ;;  %v625_v29 = vsel %vm317_vm2, %v1149_v34, 0.0  ;;  %v674_v63 = vmul.f32 %v1241_v7, %v1241_v7 }
 0x135   : > { %v598_v61 = vadd.f32 %v597_v56, %v596_v57  ;;  %v615_v56 = vsel %vm317_vm2, %v1274_v21, 0.0  ;;  %v706_v57 = vsel %vm317_vm2, %v667_v36, 0.0  ;;  %v675_v4 = vmul.f32 %v1254_v12, %v1254_v12 }
 0x136   : > { %v718_v37 = vsel %vm317_vm2, %v673_v60, 0.0  ;;  %v629_v41 = vsel %vm317_vm2, %v1169_v42, 0.0  ;;  %v676_v7 = vmul.f32 %v1261_v15, %v1261_v15  ;;  %v677_v12 = vmul.f32 %v1274_v21, %v1274_v21 }
 0x137   : > { %v600_v1 = vadd.f32 %v599_v59, %v598_v61  ;;  %v705_v61 = vadd.f32 %v704_v49, %v703_v53  ;;  %v722_v49 = vsel %vm317_vm2, %v675_v4, 0.0  ;;  %v678_v15 = vmul.f32 %v1279_v25, %v1279_v25 }
 0x138   : > { %v724_v44 = vsel %vm317_vm2, %v676_v7, 0.0  ;;  %v679_v21 = vmul.f32 %v1119_v22, %v1119_v22  ;;  %v681_v22 = vmul.f32 %v1139_v30, %v1139_v30  ;;  %v683_v30 = vmul.f32 %v1159_v38, %v1159_v38 }
 0x139   : > { %v602_v11 = vadd.f32 %v601_v0, %v600_v1  ;;  %v617_v0 = vsel %vm317_vm2, %v1279_v25, 0.0  ;;  %v708_v1 = vsel %vm317_vm2, %v668_v39, 0.0  ;;  %v631_v39 = vsel %vm317_vm2, %v1179_v46, 0.0 }
 0x13a   : > { %v680_v25 = vmul.f32 %v1129_v26, %v1129_v26  ;;  %v682_v26 = vmul.f32 %v1149_v34, %v1149_v34  ;;  %v734_v60 = vsel %vm317_vm2, %v681_v22, 0.0  ;;  %v684_v34 = vmul.f32 %v1169_v42, %v1169_v42 }
 0x13b   : > { %v604_v17 = vadd.f32 %v603_v5, %v602_v11  ;;  %v707_v5 = vadd.f32 %v706_v57, %v705_v61  ;;  %v635_v61 = vsel %vm317_vm2, %v1199_v54, 0.0  ;;  %v686_v42 = vmul.f32 %v1189_v50, %v1189_v50 }
 0x13c   : > { %v687_v7 = vmul.f32 %v1199_v54, %v1199_v54  ;;  %v690_v54 = vmul.f32 %v1229_v2, %v1229_v2  ;;  %vm658_vm4 = vcmask 40960  }
 0x13d   : > { %v606_v27 = vadd.f32 %v605_v13, %v604_v17  ;;  %v709_v13 = vadd.f32 %v708_v1, %v707_v5  ;;  %v712_v17 = vsel %vm317_vm2, %v670_v47, 0.0  ;;  %v728_v5 = vsel %vm317_vm2, %v678_v15, 0.0 }
 0x13f   : > { %v608_v35 = vadd.f32 %v607_v20, %v606_v27  ;;  %v711_v20 = vadd.f32 %v710_v9, %v709_v13  ;;  %v639_v9 = vsel %vm317_vm2, %v1219_v62, 0.0 }
 0x141   : > { %v610_v43 = vadd.f32 %v609_v32, %v608_v35  ;;  %v713_v27 = vadd.f32 %v712_v17, %v711_v20  ;;  %v716_v32 = vsel %vm317_vm2, %v672_v55, 0.0  ;;  %v627_v35 = vsel %vm317_vm2, %v1159_v38, 0.0 }
 0x142   : > { %v641_v55 = vsel %vm317_vm2, %v1229_v2, 0.0  ;;  %v732_v17 = vsel %vm317_vm2, %v680_v25, 0.0  ;;  %v685_v38 = vmul.f32 %v1179_v46, %v1179_v46  ;;  %v583_v2 = vld [vmem:[%s1482_s3] sm:$0x1] }
 0x143   : > { %v612_v51 = vadd.f32 %v611_v40, %v610_v43  ;;  %v715_v33 = vadd.f32 %v714_v23, %v713_v27  ;;  %v720_v43 = vsel %vm317_vm2, %v674_v63, 0.0  ;;  %v645_v27 = vsel %vm317_vm2, %v1249_v10, 0.0 }
 0x145   : > { %v614_v59 = vadd.f32 %v613_v48, %v612_v51  ;;  %v717_v36 = vadd.f32 %v716_v32, %v715_v33  ;;  %v738_v33 = vsel %vm317_vm2, %v683_v30, 0.0 }
 0x147   : > { %v616_v3 = vadd.f32 %v615_v56, %v614_v59  ;;  %v719_v48 = vadd.f32 %v718_v37, %v717_v36  ;;  %v633_v56 = vsel %vm317_vm2, %v1189_v50, 0.0  ;;  %v649_v37 = vsel %vm317_vm2, %v1269_v18, 0.0 }
 0x148   : > { %v689_v50 = vmul.f32 %v1219_v62, %v1219_v62  ;;  %v692_v62 = vmul.f32 %v1249_v10, %v1249_v10 }
 0x149   : > { %v618_v11 = vadd.f32 %v617_v0, %v616_v3  ;;  %v721_v53 = vadd.f32 %v720_v43, %v719_v48  ;;  %v726_v0 = vsel %vm317_vm2, %v677_v12, 0.0  ;;  %v637_v3 = vsel %vm317_vm2, %v1209_v58, 0.0 }
 0x14a   : > { %v742_v43 = vsel %vm317_vm2, %v685_v38, 0.0  ;;  %v688_v48 = vmul.f32 %v1209_v58, %v1209_v58  ;;  %v691_v58 = vmul.f32 %v1239_v6, %v1239_v6  ;;  %v756_v10 = vsel %vm317_vm2, %v692_v62, 0.0 }
 0x14b   : > { %v620_v19 = vadd.f32 %v619_v8, %v618_v11  ;;  %v723_v59 = vadd.f32 %v722_v49, %v721_v53  ;;  %v730_v11 = vsel %vm317_vm2, %v679_v21, 0.0 }
 0x14c   : > { %v748_v15 = vsel %vm317_vm2, %v688_v48, 0.0 }
 0x14d   : > { %v622_v28 = vadd.f32 %v621_v16, %v620_v19  ;;  %v725_v1 = vadd.f32 %v724_v44, %v723_v59  ;;  %v750_v59 = vsel %vm317_vm2, %v689_v50, 0.0 }
 0x14f   : > { %v624_v31 = vadd.f32 %v623_v24, %v622_v28  ;;  %v727_v52 = vadd.f32 %v726_v0, %v725_v1  ;;  %v643_v24 = vsel %vm317_vm2, %v1239_v6, 0.0  ;;  %v752_v0 = vsel %vm317_vm2, %v690_v54, 0.0 }
 0x150   : > { %v754_v6 = vsel %vm317_vm2, %v691_v58, 0.0 }
 0x151   : > { %v626_v40 = vadd.f32 %v625_v29, %v624_v31  ;;  %v729_v16 = vadd.f32 %v728_v5, %v727_v52  ;;  %v736_v29 = vsel %vm317_vm2, %v682_v26, 0.0  ;;  %v647_v31 = vsel %vm317_vm2, %v1259_v14, 0.0 }
 0x153   : > { %v628_v45 = vadd.f32 %v627_v35, %v626_v40  ;;  %v731_v20 = vadd.f32 %v730_v11, %v729_v16  ;;  %v740_v40 = vsel %vm317_vm2, %v684_v34, 0.0 }
 0x155   : > { %v630_v51 = vadd.f32 %v629_v41, %v628_v45  ;;  %v733_v28 = vadd.f32 %v732_v17, %v731_v20  ;;  %v660_v20 = vld [vmem:[%s1483_s4] sm:$0x1] }
 0x157   : > { %v632_v57 = vadd.f32 %v631_v39, %v630_v51  ;;  %v735_v32 = vadd.f32 %v734_v60, %v733_v28  ;;  %v744_v39 = vsel %vm317_vm2, %v686_v42, 0.0  ;;  %v746_v51 = vsel %vm317_vm2, %v687_v7, 0.0 }
 0x159   : > { %v634_v47 = vadd.f32 %v633_v56, %v632_v57  ;;  %v737_v4 = vadd.f32 %v736_v29, %v735_v32 }
 0x15b   : > { %v636_v8 = vadd.f32 %v635_v61, %v634_v47  ;;  %v739_v41 = vadd.f32 %v738_v33, %v737_v4 }
 0x15d   : > { %v638_v13 = vadd.f32 %v637_v3, %v636_v8  ;;  %v741_v45 = vadd.f32 %v740_v40, %v739_v41  ;;  %v693_v3 = vmul.f32 %v1259_v14, %v1259_v14  ;;  %v694_v8 = vmul.f32 %v1269_v18, %v1269_v18 }
 0x15f   : > { %v640_v19 = vadd.f32 %v639_v9, %v638_v13  ;;  %v743_v49 = vadd.f32 %v742_v43, %v741_v45  ;;  %v758_v22 = vsel %vm317_vm2, %v693_v3, 0.0  ;;  %v760_v11 = vsel %vm317_vm2, %v694_v8, 0.0 }
 0x161   : > { %v642_v23 = vadd.f32 %v641_v55, %v640_v19  ;;  %v745_v56 = vadd.f32 %v744_v39, %v743_v49 }
 0x163   : > { %v644_v63 = vadd.f32 %v643_v24, %v642_v23  ;;  %v747_v57 = vadd.f32 %v746_v51, %v745_v56 }
 0x165   : > { %v646_v35 = vadd.f32 %v645_v27, %v644_v63  ;;  %v749_v21 = vadd.f32 %v748_v15, %v747_v57 }
 0x167   : > { %v648_v36 = vadd.f32 %v647_v31, %v646_v35  ;;  %v751_v1 = vadd.f32 %v750_v59, %v749_v21 }
 0x169   : > { %v650_v46 = vadd.f32 %v649_v37, %v648_v36  ;;  %v753_v5 = vadd.f32 %v752_v0, %v751_v1 }
 0x16b   : > { %v651_v12 = vrot.slane %v650_v46, 4  ;;  %v755_v9 = vadd.f32 %v754_v6, %v753_v5 }
 0x16d   : > { %v652_v53 = vadd.f32 %v651_v12, %v650_v46  ;;  %v757_v14 = vadd.f32 %v756_v10, %v755_v9 }
 0x16f   : > { %v653_v44 = vrot.slane %v652_v53, 2  ;;  %v759_v13 = vadd.f32 %v758_v22, %v757_v14 }
 0x171   : > { %v654_v61 = vadd.f32 %v653_v44, %v652_v53  ;;  %v761_v16 = vadd.f32 %v760_v11, %v759_v13 }
 0x173   : > { %v655_v47 = vrot.slane %v654_v61, 1  ;;  %v762_v55 = vrot.slane %v761_v16, 4 }
 0x175   : > { %v656_v25 = vadd.f32 %v655_v47, %v654_v61  ;;  %v763_v26 = vadd.f32 %v762_v55, %v761_v16 }
 0x177   : > { %v657_v52 = vadd.f32 %v656_v25, %v583_v2  ;;  %v764_v17 = vrot.slane %v763_v26, 2 }
 0x179   : > { %659 = vst.msk [vmem:[%s1482_s3] sm:$0x1] %vm658_vm4, %v657_v52  ;;  %v765_v18 = vadd.f32 %v764_v17, %v763_v26 }
 0x17b   : > { %v766_v19 = vrot.slane %v765_v18, 1 }
 0x17d   : > { %v767_v24 = vadd.f32 %v766_v19, %v765_v18 }
 0x17f   : > { %v768_v30 = vadd.f32 %v767_v24, %v660_v20 }
 0x181   : > { %769 = vst.msk [vmem:[%s1483_s4] sm:$0x1] %vm658_vm4, %v768_v30 }
 0x182 PF: > { %s15_s15 = sadd.s32 1, %s1006_s15  }
 0x183   : > { %p12_p5 = scmp.ge.s32.totalorder %s15_s15, 6  }
 0x185   :  { %14 = sbr.rel (!%p12_p5) target bundleno = 1 (0x1), region = 78 }

// kernel: reverse.0
= control target key start
LH: loop header
LB: loop body
LE: loop exit
PB: predicated region body
PF: predicated region fallthrough
CT: control target
= control target key end

     0   :  { %v88_v3 = vlaneseq  ;;  %v94_v14 = vld [vmem:[#allocation0 + $0x7] ss:$-1 sm:$0xff]  ;;  %v122_v15 = vld [vmem:[#allocation0 + $0x1f] ss:$-1 sm:$0xff]  ;;  %v150_v18 = vld [vmem:[#allocation0 + $0x37] ss:$-1 sm:$0xff]  ;;  %s481_s0 = inlined_call_operand.vmem [shape: f32[2,3,32,15], index: 0, kind: input, shape index: {}]   ;;  %s482_s1 = inlined_call_operand.vmem [shape: f32[2,3,32,15], index: 1, kind: output, shape index: {}]  }
   0x1   :  { %v52_v0 = vld [vmem:[%s481_s0] sm:$0xff]  ;;  %v54_v1 = vld [vmem:[%s481_s0 + $0x8] sm:$0xff]  ;;  %v56_v2 = vld [vmem:[%s481_s0 + $0x10] sm:$0xff]  ;;  %v95_v16 = vrot.slane %v94_v14, 1  ;;  %v123_v17 = vrot.slane %v122_v15, 1  ;;  %v151_v20 = vrot.slane %v150_v18, 1 }
   0x2   :  { %53 = vst [vmem:[#allocation0 + $0x8] sm:$0xff] %v52_v0  ;;  %55 = vst [vmem:[#allocation0 + $0x10] sm:$0xff] %v54_v1  ;;  %v58_v4 = vld [vmem:[%s481_s0 + $0x18] sm:$0xff]  ;;  %v60_v5 = vld [vmem:[%s481_s0 + $0x20] sm:$0xff]  ;;  %v418_v13 = vshrl.u32 %v88_v3, 7 }
   0x3   :  { %57 = vst [vmem:[#allocation0 + $0x20] sm:$0xff] %v56_v2  ;;  %v62_v6 = vld [vmem:[%s481_s0 + $0x28] sm:$0xff]  ;;  %59 = vst [vmem:[#allocation0 + $0x28] sm:$0xff] %v58_v4  ;;  %v64_v7 = vld [vmem:[%s481_s0 + $0x30] sm:$0xff] }
   0x4   :  { %61 = vst [vmem:[#allocation0 + $0x38] sm:$0xff] %v60_v5  ;;  %63 = vst [vmem:[#allocation0 + $0x40] sm:$0xff] %v62_v6  ;;  %v66_v8 = vld [vmem:[%s481_s0 + $0x38] sm:$0xff]  ;;  %v68_v9 = vld [vmem:[%s481_s0 + $0x40] sm:$0xff]  ;;  %vm90_vm0 = vcmp.lt.s32.totalorder %v418_v13, 7 }
   0x5   :  { %65 = vst [vmem:[#allocation0 + $0x50] sm:$0xff] %v64_v7  ;;  %67 = vst [vmem:[#allocation0 + $0x58] sm:$0xff] %v66_v8  ;;  %v70_v10 = vld [vmem:[%s481_s0 + $0x48] sm:$0xff]  ;;  %v72_v11 = vld [vmem:[%s481_s0 + $0x50] sm:$0xff] }
   0x6   :  { %69 = vst [vmem:[#allocation0 + $0x68] sm:$0xff] %v68_v9  ;;  %v74_v12 = vld [vmem:[%s481_s0 + $0x58] sm:$0xff]  ;;  %71 = vst [vmem:[#allocation0 + $0x70] sm:$0xff] %v70_v10  ;;  %v178_v19 = vld [vmem:[#allocation0 + $0x4f] ss:$-1 sm:$0xff] }
   0x7   :  { %73 = vst [vmem:[#allocation0 + $0x80] sm:$0xff] %v72_v11  ;;  %75 = vst [vmem:[#allocation0 + $0x88] sm:$0xff] %v74_v12  ;;  %v179_v21 = vrot.slane %v178_v19, 1  ;;  %v206_v22 = vld [vmem:[#allocation0 + $0x67] ss:$-1 sm:$0xff] }
   0x8   :  { %v234_v23 = vld [vmem:[#allocation0 + $0x7f] ss:$-1 sm:$0xff]  ;;  %96 = vst [vmem:[#allocation1 + $0x8] sm:$0xff] %v95_v16  ;;  %124 = vst [vmem:[#allocation1 + $0x18] sm:$0xff] %v123_v17  ;;  %v207_v24 = vrot.slane %v206_v22, 1 }
   0x9   :  { %v235_v25 = vrot.slane %v234_v23, 1  ;;  %v81_v26 = vld [vmem:[#allocation0 + $0xf] ss:$-1 sm:$0xff]  ;;  %v86_v27 = vld [vmem:[#allocation0 + $0x17] ss:$-1 sm:$0xff]  ;;  %152 = vst [vmem:[#allocation1 + $0x28] sm:$0xff] %v151_v20 }
   0xa   :  { %v99_v28 = vld [vmem:[#allocation0 + $0xf] ss:$-1 sm:$0xff]  ;;  %180 = vst [vmem:[#allocation1 + $0x38] sm:$0xff] %v179_v21  ;;  %v82_v29 = vrot.slane %v81_v26, 1  ;;  %v87_v30 = vrot.slane %v86_v27, 1  ;;  %208 = vst [vmem:[#allocation1 + $0x48] sm:$0xff] %v207_v24 }
   0xb   :  { %v100_v31 = vrot.slane %v99_v28, 1  ;;  %v109_v32 = vld [vmem:[#allocation0 + $0x27] ss:$-1 sm:$0xff]  ;;  %236 = vst [vmem:[#allocation1 + $0x58] sm:$0xff] %v235_v25  ;;  %v114_v34 = vld [vmem:[#allocation0 + $0x2f] ss:$-1 sm:$0xff] }
   0xc   :  { %v110_v33 = vrot.slane %v109_v32, 1  ;;  %v127_v35 = vld [vmem:[#allocation0 + $0x27] ss:$-1 sm:$0xff]  ;;  %83 = vst [vmem:[#allocation1] sm:$0xff] %v82_v29  ;;  %v115_v36 = vrot.slane %v114_v34, 1 }
   0xd   :  { %104 = vst.msk [vmem:[#allocation1 + $0x8] sm:$0xff] %vm90_vm0, %v100_v31  ;;  %v128_v37 = vrot.slane %v127_v35, 1  ;;  %v137_v38 = vld [vmem:[#allocation0 + $0x3f] ss:$-1 sm:$0xff]  ;;  %v142_v39 = vld [vmem:[#allocation0 + $0x47] ss:$-1 sm:$0xff] }
   0xe   :  { %91 = vst.msk [vmem:[#allocation1] sm:$0xff] %vm90_vm0, %v87_v30  ;;  %111 = vst [vmem:[#allocation1 + $0x10] sm:$0xff] %v110_v33  ;;  %v138_v40 = vrot.slane %v137_v38, 1  ;;  %v143_v41 = vrot.slane %v142_v39, 1  ;;  %v155_v42 = vld [vmem:[#allocation0 + $0x3f] ss:$-1 sm:$0xff] }
   0xf   :  { %v165_v43 = vld [vmem:[#allocation0 + $0x57] ss:$-1 sm:$0xff]  ;;  %119 = vst.msk [vmem:[#allocation1 + $0x10] sm:$0xff] %vm90_vm0, %v115_v36  ;;  %132 = vst.msk [vmem:[#allocation1 + $0x18] sm:$0xff] %vm90_vm0, %v128_v37  ;;  %v156_v44 = vrot.slane %v155_v42, 1 }
  0x10   :  { %v166_v45 = vrot.slane %v165_v43, 1  ;;  %v170_v46 = vld [vmem:[#allocation0 + $0x5f] ss:$-1 sm:$0xff]  ;;  %v183_v47 = vld [vmem:[#allocation0 + $0x57] ss:$-1 sm:$0xff]  ;;  %139 = vst [vmem:[#allocation1 + $0x20] sm:$0xff] %v138_v40 }
  0x11   :  { %v171_v48 = vrot.slane %v170_v46, 1  ;;  %v184_v49 = vrot.slane %v183_v47, 1  ;;  %v193_v50 = vld [vmem:[#allocation0 + $0x6f] ss:$-1 sm:$0xff]  ;;  %v198_v51 = vld [vmem:[#allocation0 + $0x77] ss:$-1 sm:$0xff] }
  0x12   :  { %147 = vst.msk [vmem:[#allocation1 + $0x20] sm:$0xff] %vm90_vm0, %v143_v41  ;;  %160 = vst.msk [vmem:[#allocation1 + $0x28] sm:$0xff] %vm90_vm0, %v156_v44  ;;  %v194_v52 = vrot.slane %v193_v50, 1  ;;  %v199_v53 = vrot.slane %v198_v51, 1  ;;  %v211_v54 = vld [vmem:[#allocation0 + $0x6f] ss:$-1 sm:$0xff] }
  0x13   :  { %167 = vst [vmem:[#allocation1 + $0x30] sm:$0xff] %v166_v45  ;;  %v221_v55 = vld [vmem:[#allocation0 + $0x87] ss:$-1 sm:$0xff]  ;;  %188 = vst.msk [vmem:[#allocation1 + $0x38] sm:$0xff] %vm90_vm0, %v184_v49  ;;  %v212_v56 = vrot.slane %v211_v54, 1 }
  0x14   :  { %175 = vst.msk [vmem:[#allocation1 + $0x30] sm:$0xff] %vm90_vm0, %v171_v48  ;;  %v222_v57 = vrot.slane %v221_v55, 1  ;;  %v226_v58 = vld [vmem:[#allocation0 + $0x8f] ss:$-1 sm:$0xff]  ;;  %v239_v59 = vld [vmem:[#allocation0 + $0x87] ss:$-1 sm:$0xff] }
  0x15   :  { %195 = vst [vmem:[#allocation1 + $0x40] sm:$0xff] %v194_v52  ;;  %v227_v60 = vrot.slane %v226_v58, 1  ;;  %v240_v61 = vrot.slane %v239_v59, 1  ;;  %216 = vst.msk [vmem:[#allocation1 + $0x48] sm:$0xff] %vm90_vm0, %v212_v56  ;;  %v296_v62 = vld [vmem:[#allocation1 + $0x8] sm:$0xff]  ;;  %v294_v63 = vld [vmem:[#allocation1] sm:$0xff] }
  0x16   :  { %203 = vst.msk [vmem:[#allocation1 + $0x40] sm:$0xff] %vm90_vm0, %v199_v53  ;;  %223 = vst [vmem:[#allocation1 + $0x50] sm:$0xff] %v222_v57  ;;  %v298_v0 = vld [vmem:[#allocation1 + $0x10] sm:$0xff]  ;;  %v300_v1 = vld [vmem:[#allocation1 + $0x18] sm:$0xff] }
  0x17   :  { %231 = vst.msk [vmem:[#allocation1 + $0x50] sm:$0xff] %vm90_vm0, %v227_v60  ;;  %244 = vst.msk [vmem:[#allocation1 + $0x58] sm:$0xff] %vm90_vm0, %v240_v61 }
  0x18   :  { %297 = vst [vmem:[%s482_s1 + $0x8] sm:$0xff] %v296_v62  ;;  %295 = vst [vmem:[%s482_s1] sm:$0xff] %v294_v63 }
  0x19   :  { %299 = vst [vmem:[%s482_s1 + $0x10] sm:$0xff] %v298_v0  ;;  %301 = vst [vmem:[%s482_s1 + $0x18] sm:$0xff] %v300_v1  ;;  %v302_v2 = vld [vmem:[#allocation1 + $0x20] sm:$0xff]  ;;  %v304_v3 = vld [vmem:[#allocation1 + $0x28] sm:$0xff] }
  0x1a   :  { %303 = vst [vmem:[%s482_s1 + $0x20] sm:$0xff] %v302_v2  ;;  %305 = vst [vmem:[%s482_s1 + $0x28] sm:$0xff] %v304_v3  ;;  %v308_v5 = vld [vmem:[#allocation1 + $0x38] sm:$0xff] }
  0x1b   :  { %v306_v4 = vld [vmem:[#allocation1 + $0x30] sm:$0xff]  ;;  %309 = vst [vmem:[%s482_s1 + $0x38] sm:$0xff] %v308_v5 }
  0x1c   :  { %307 = vst [vmem:[%s482_s1 + $0x30] sm:$0xff] %v306_v4  ;;  %v312_v7 = vld [vmem:[#allocation1 + $0x48] sm:$0xff] }
  0x1d   :  { %v310_v6 = vld [vmem:[#allocation1 + $0x40] sm:$0xff]  ;;  %313 = vst [vmem:[%s482_s1 + $0x48] sm:$0xff] %v312_v7 }
  0x1e   :  { %311 = vst [vmem:[%s482_s1 + $0x40] sm:$0xff] %v310_v6  ;;  %v314_v8 = vld [vmem:[#allocation1 + $0x50] sm:$0xff]  ;;  %v316_v9 = vld [vmem:[#allocation1 + $0x58] sm:$0xff] }
  0x1f   :  { %315 = vst [vmem:[%s482_s1 + $0x50] sm:$0xff] %v314_v8  ;;  %317 = vst [vmem:[%s482_s1 + $0x58] sm:$0xff] %v316_v9 }

// kernel: ffc_layer_forward.9
= control target key start
LH: loop header
LB: loop body
LE: loop exit
PB: predicated region body
PF: predicated region fallthrough
CT: control target
= control target key end

     0   :  { %s2589_s15 = smov 0   ;;  %s2591_s16 = smov 0   ;;  %s2848_s0 = inlined_call_operand.vmem [shape: bf16[2048,72], index: 0, kind: input, shape index: {}]   ;;  %s2849_s1 = inlined_call_operand.vmem [shape: bf16[2048,3], index: 1, kind: input, shape index: {}]   ;;  %s2850_s2 = inlined_call_operand.vmem [shape: bf16[72,128], index: 2, kind: input, shape index: {}]   ;;  %s2851_s3 = inlined_call_operand.vmem [shape: bf16[3,128], index: 3, kind: input, shape index: {}]   ;;  %s2852_s4 = inlined_call_operand.vmem [shape: f32[2048,128], index: 4, kind: output, shape index: {}]  }
   0x1   :  { %s2593_s17 = smov 0  }
   0x2 LB: > { %s26_s18 = sadd.s32 1, %s2557_s16  ;;  %p1897_p0 = scmp.ge.s32.totalorder %s2561_s17, 1  ;;  %s2561_s17 = sphi %s2593_s17, %s14_s17   ;;  %s2557_s16 = sphi %s2591_s16, %s2854_s16   ;;  %s2553_s15 = sphi %s2589_s15, %s2853_s15  }
   0x3   : > { %p28_p1 = scmp.ge.s32.totalorder %s26_s18, 4  ;;  %p202_p2 = scmp.lt.s32.totalorder %s2561_s17, 5 }
   0x5   : > { %s2856_s18 = smov (%p28_p1, %s26_s18), 0  ;;  %p203_p3 = pnand %p1897_p0, %p202_p2 }
   0x6   : > { %v2470_v0 = vld [vmem:[%s2850_s2] sm:$0xff] (!%p203_p3)   ;;  %vm595_vm0 = vcmask (!%p203_p3), 1040384   ;;  %vm596_vm1 = vcmask (!%p203_p3), 1041408   ;;  %v2563_v2 = vmov (!%p203_p3), 65535   ;;  %v2471_v4 = vld [vmem:[%s2850_s2 + $0x8] sm:$0xff] (!%p203_p3)   ;;  %s1898_s25 = sshll.u32 (!%p203_p3), %s2553_s15, 6 }
   0x7   : > { %206 = sbr.rel (%p203_p3) target bundleno = 363 (0x16b), region = 36  ;;  %v337_v1 = vld [vmem:[%s2851_s3] sm:$0x3] (!%p203_p3)  ;;  %2249 = vmatprep.subr.bf16.mxu1 (!%p203_p3), %v2470_v0  ;;  %v597_v3 = vsel (!%p203_p3), %vm595_vm0, 4294967295, %v2563_v2  ;;  %p242_p4 = scmp.lt.s32.totalorder (!%p203_p3), %s1898_s25, 255  ;;  %v2474_v7 = vld [vmem:[%s2850_s2 + $0x10] sm:$0xff] (!%p203_p3)  }
   0x8   : > { %2254 = vmatpush3.bf16.msra.mxu1 (!%p203_p3), %v2470_v0  ;;  %v598_v5 = vsel (!%p203_p3), %vm596_vm1, %v597_v3, 0  ;;  %vm498_vm2 = vcmask (!%p203_p3), 23552   ;;  %v2475_v8 = vld [vmem:[%s2850_s2 + $0x18] sm:$0xff] (!%p203_p3)   ;;  %v2478_v11 = vld [vmem:[%s2850_s2 + $0x20] ss:$0 sps:$4 sm:$0xff] (!%p203_p3)   ;;  %vm1279_vm3 = vcmask (!%p203_p3), 588800  }
   0x9   : > { %v600_v6 = vand.u32 (!%p203_p3), %v598_v5, %v337_v1  ;;  %2250 = vmatprep.subr.bf16.mxu1 (!%p203_p3), %v2471_v4  ;;  %vm1376_vm4 = vcmask (!%p203_p3), 1043456  }
   0xa   : > { %v1378_v15 = vsel (!%p203_p3), %vm1376_vm4, %v2478_v11, 0 }
   0xb   : > { %2109 = vmatprep.subr.bf16.mxu0 (!%p203_p3), %v600_v6 }
   0xc   : > { %2110 = vmatpush3.bf16.msra.mxu0 (!%p203_p3), %v600_v6  ;;  %2255 = vmatpush3.bf16.msra.mxu1 (!%p203_p3), %v2471_v4 }
   0xd   : > { %2175 = vmatprep.subr.bf16.mxu0 (!%p203_p3), %v2470_v0  ;;  %2251 = vmatprep.subr.bf16.mxu1 (!%p203_p3), %v2474_v7 }
   0xe   : > { %s2858_s25 = smov (!%p242_p4, %s1898_s25), 255 }
   0xf   : > { %s1899_s28 = sshll.u32 %s2858_s25, 2  ;;  %s1903_s13 = sshll.u32 %s2858_s25, 3 }
  0x10   : > { %s2625_s5 = scalar_lea.vmem %s2849_s1, %s1899_s28  ;;  %s2638_s12 = scalar_lea.vmem %s2848_s0, %s1899_s28  ;;  %2256 = vmatpush3.bf16.msra.mxu1 %v2474_v7 }
  0x11   : > { %v2472_v9 = vld [vmem:[%s2625_s5] sm:$0xff]   ;;  %v2473_v10 = vld [vmem:[%s2625_s5 + $0x8] sm:$0xff]   ;;  %v2476_v12 = vld [vmem:[%s2625_s5 + $0x10] sm:$0xff]   ;;  %2252 = vmatprep.subr.bf16.mxu1 %v2475_v8  ;;  %s2773_s19 = scalar_lea.vmem %s2852_s4, %s1903_s13 }
  0x12   : > { %2111 = vmatprep.mubr.msk.bf16.mxu0 %vm498_vm2, %v2472_v9  ;;  %v2479_v13 = vld [vmem:[%s2638_s12 + $0x10] sm:$0xff]   ;;  %v2477_v14 = vld [vmem:[%s2625_s5 + $0x18] sm:$0xff]   ;;  %v2481_v16 = vld [vmem:[%s2625_s5 + $0x20] sm:$0xff]  }
  0x13   : > { %2112 = vmatmul.mubr.msk.bf16.vlgmr.msra.gmra.mrb[0].mxu0 %vm498_vm2, %v2473_v10  ;;  %2189 = vmatprep.mubr.msk.bf16.mxu1 %vm1279_vm3, %v2479_v13  ;;  %v2480_v17 = vld [vmem:[%s2638_s12 + $0x18] sm:$0xff]   ;;  %v2483_v18 = vld [vmem:[%s2638_s12 + $0x20] sm:$0xff]   ;;  %v2482_v19 = vld [vmem:[%s2625_s5 + $0x28] sm:$0xff]  }
  0x14   : > { %2176 = vmatpush3.bf16.msra.mxu0 %v2470_v0  ;;  %2115 = vmatprep.mubr.msk.bf16.mxu0 %vm498_vm2, %v2476_v12  ;;  %v2485_v20 = vld [vmem:[%s2625_s5 + $0x30] sm:$0xff]   ;;  %v2484_v21 = vld [vmem:[%s2638_s12 + $0x28] sm:$0xff]   ;;  %v2486_v23 = vld [vmem:[%s2625_s5 + $0x38] sm:$0xff]  }
  0x15   : > { %2177 = vmatprep.subr.bf16.mxu0 %v2471_v4  ;;  %2257 = vmatpush3.bf16.msra.mxu1 %v2475_v8  ;;  %v2487_v22 = vld [vmem:[%s2638_s12 + $0x30] sm:$0xff]   ;;  %v2489_v24 = vld [vmem:[%s2625_s5 + $0x40] sm:$0xff]   ;;  %v2488_v25 = vld [vmem:[%s2638_s12 + $0x38] sm:$0xff]  }
  0x16   : > { %2444 = vmatprep.subr.msk.bf16.mxu1 %vm1376_vm4, %v2478_v11  ;;  %v2491_v26 = vld [vmem:[%s2638_s12 + $0x40] sm:$0xff]   ;;  %v2490_v27 = vld [vmem:[%s2625_s5 + $0x48] sm:$0xff]   ;;  %v2493_v28 = vld [vmem:[%s2625_s5 + $0x50] sm:$0xff]  }
  0x17   : > { %v2492_v29 = vld [vmem:[%s2638_s12 + $0x48] sm:$0xff]   ;;  %v2495_v30 = vld [vmem:[%s2638_s12 + $0x50] sm:$0xff]   ;;  %v2494_v31 = vld [vmem:[%s2625_s5 + $0x58] sm:$0xff]  }
  0x18   : > { %2178 = vmatpush3.bf16.msra.mxu0 %v2471_v4  ;;  %v2497_v32 = vld [vmem:[%s2625_s5 + $0x60] sm:$0xff]   ;;  %v2496_v33 = vld [vmem:[%s2638_s12 + $0x58] sm:$0xff]   ;;  %v2498_v35 = vld [vmem:[%s2625_s5 + $0x68] sm:$0xff]  }
  0x19   : > { %2179 = vmatprep.subr.bf16.mxu0 %v2474_v7  ;;  %2258 = vmatpush3.bf16.msra.mxu1 %v1378_v15  ;;  %v2499_v34 = vld [vmem:[%s2638_s12 + $0x60] sm:$0xff]   ;;  %v2501_v36 = vld [vmem:[%s2625_s5 + $0x70] sm:$0xff]   ;;  %v2500_v37 = vld [vmem:[%s2638_s12 + $0x68] sm:$0xff]  }
  0x1a   : > { %v2503_v38 = vld [vmem:[%s2638_s12 + $0x70] sm:$0xff]   ;;  %v2502_v39 = vld [vmem:[%s2625_s5 + $0x78] sm:$0xff]   ;;  %v2505_v40 = vld [vmem:[%s2625_s5 + $0x80] sm:$0xff]  }
  0x1b   : > { %2116 = vmatmul.mubr.msk.bf16.gmra.mrb[4].mxu0 %vm498_vm2, %v2477_v14  ;;  %v2504_v41 = vld [vmem:[%s2638_s12 + $0x78] sm:$0xff]   ;;  %v2507_v42 = vld [vmem:[%s2638_s12 + $0x80] sm:$0xff]   ;;  %v2506_v43 = vld [vmem:[%s2625_s5 + $0x88] sm:$0xff]  }
  0x1c   : > { %2119 = vmatprep.mubr.msk.bf16.mxu0 %vm498_vm2, %v2481_v16  ;;  %2180 = vmatpush3.bf16.msra.mxu0 %v2474_v7  ;;  %v2509_v44 = vld [vmem:[%s2625_s5 + $0x90] sm:$0xff]   ;;  %v2508_v45 = vld [vmem:[%s2638_s12 + $0x88] sm:$0xff]   ;;  %v2510_v47 = vld [vmem:[%s2625_s5 + $0x98] sm:$0xff]  }
  0x1d   : > { %2190 = vmatmul.mubr.msk.bf16.vlgmr.msra.gmra.mrb[0].mxu1 %vm1279_vm3, %v2480_v17  ;;  %2181 = vmatprep.subr.bf16.mxu0 %v2475_v8  ;;  %v2511_v46 = vld [vmem:[%s2638_s12 + $0x90] sm:$0xff]   ;;  %v2513_v48 = vld [vmem:[%s2625_s5 + $0xa0] sm:$0xff]   ;;  %v2512_v49 = vld [vmem:[%s2638_s12 + $0x98] sm:$0xff]  }
  0x1e   : > { %2193 = vmatprep.mubr.msk.bf16.mxu1 %vm1279_vm3, %v2483_v18  ;;  %v2515_v50 = vld [vmem:[%s2638_s12 + $0xa0] sm:$0xff]   ;;  %v2514_v51 = vld [vmem:[%s2625_s5 + $0xa8] sm:$0xff]   ;;  %v2517_v52 = vld [vmem:[%s2625_s5 + $0xb0] sm:$0xff]  }
  0x1f   : > { %v2516_v53 = vld [vmem:[%s2638_s12 + $0xa8] sm:$0xff]   ;;  %v2519_v54 = vld [vmem:[%s2638_s12 + $0xb0] sm:$0xff]   ;;  %v2518_v55 = vld [vmem:[%s2625_s5 + $0xb8] sm:$0xff]  }
  0x20   : > { %2182 = vmatpush3.bf16.msra.mxu0 %v2475_v8  ;;  %v2521_v56 = vld [vmem:[%s2625_s5 + $0xc0] sm:$0xff]   ;;  %v2520_v57 = vld [vmem:[%s2638_s12 + $0xb8] sm:$0xff]   ;;  %v2522_v59 = vld [vmem:[%s2625_s5 + $0xc8] sm:$0xff]  }
  0x21   : > { %2443 = vmatprep.subr.msk.bf16.mxu0 %vm1376_vm4, %v2478_v11  ;;  %v2523_v58 = vld [vmem:[%s2638_s12 + $0xc0] sm:$0xff]   ;;  %v2525_v60 = vld [vmem:[%s2625_s5 + $0xd0] sm:$0xff]   ;;  %v2524_v61 = vld [vmem:[%s2638_s12 + $0xc8] sm:$0xff]  }
  0x22   : > { %v2527_v62 = vld [vmem:[%s2638_s12 + $0xd0] sm:$0xff]   ;;  %v2526_v63 = vld [vmem:[%s2625_s5 + $0xd8] sm:$0xff]   ;;  %v2529_v0 = vld [vmem:[%s2625_s5 + $0xe0] sm:$0xff]  }
  0x23   : > { %2120 = vmatmul.mubr.msk.bf16.gmra.mrb[8].mxu0 %vm498_vm2, %v2482_v19  ;;  %v2528_v1 = vld [vmem:[%s2638_s12 + $0xd8] sm:$0xff]   ;;  %v2531_v2 = vld [vmem:[%s2638_s12 + $0xe0] sm:$0xff]   ;;  %v2530_v3 = vld [vmem:[%s2625_s5 + $0xe8] sm:$0xff]  }
  0x24   : > { %2123 = vmatprep.mubr.msk.bf16.mxu0 %vm498_vm2, %v2485_v20  ;;  %2184 = vmatpush3.bf16.msra.mxu0 %v1378_v15  ;;  %v2533_v4 = vld [vmem:[%s2625_s5 + $0xf0] sm:$0xff]   ;;  %v2532_v5 = vld [vmem:[%s2638_s12 + $0xe8] sm:$0xff]   ;;  %v2534_v7 = vld [vmem:[%s2625_s5 + $0xf8] sm:$0xff]  }
  0x25   : > { %2194 = vmatmul.mubr.msk.bf16.gmra.mrb[4].mxu1 %vm1279_vm3, %v2484_v21  ;;  %v2535_v6 = vld [vmem:[%s2638_s12 + $0xf0] sm:$0xff]   ;;  %v2537_v8 = vld [vmem:[%s2638_s12] sm:$0xff]   ;;  %v2536_v9 = vld [vmem:[%s2638_s12 + $0xf8] sm:$0xff]  }
  0x26   : > { %2197 = vmatprep.mubr.msk.bf16.mxu1 %vm1279_vm3, %v2487_v22  ;;  %v2538_v10 = vld [vmem:[%s2638_s12 + $0x8] sm:$0xff]  }
  0x2b   : > { %2124 = vmatmul.mubr.msk.bf16.gmra.mrb[12].mxu0 %vm498_vm2, %v2486_v23 }
  0x2c   : > { %2127 = vmatprep.mubr.msk.bf16.mxu0 %vm498_vm2, %v2489_v24 }
  0x2d   : > { %2198 = vmatmul.mubr.msk.bf16.gmra.mrb[8].mxu1 %vm1279_vm3, %v2488_v25 }
  0x2e   : > { %2201 = vmatprep.mubr.msk.bf16.mxu1 %vm1279_vm3, %v2491_v26 }
  0x33   : > { %2128 = vmatmul.mubr.msk.bf16.gmra.mrb[16].mxu0 %vm498_vm2, %v2490_v27 }
  0x34   : > { %2131 = vmatprep.mubr.msk.bf16.mxu0 %vm498_vm2, %v2493_v28 }
  0x35   : > { %2202 = vmatmul.mubr.msk.bf16.gmra.mrb[12].mxu1 %vm1279_vm3, %v2492_v29 }
  0x36   : > { %2205 = vmatprep.mubr.msk.bf16.mxu1 %vm1279_vm3, %v2495_v30 }
  0x3b   : > { %2132 = vmatmul.mubr.msk.bf16.gmra.mrb[20].mxu0 %vm498_vm2, %v2494_v31 }
  0x3c   : > { %2135 = vmatprep.mubr.msk.bf16.mxu0 %vm498_vm2, %v2497_v32 }
  0x3d   : > { %2206 = vmatmul.mubr.msk.bf16.gmra.mrb[16].mxu1 %vm1279_vm3, %v2496_v33 }
  0x3e   : > { %2209 = vmatprep.mubr.msk.bf16.mxu1 %vm1279_vm3, %v2499_v34 }
  0x43   : > { %2136 = vmatmul.mubr.msk.bf16.gmra.mrb[24].mxu0 %vm498_vm2, %v2498_v35 }
  0x44   : > { %2139 = vmatprep.mubr.msk.bf16.mxu0 %vm498_vm2, %v2501_v36 }
  0x45   : > { %2210 = vmatmul.mubr.msk.bf16.gmra.mrb[20].mxu1 %vm1279_vm3, %v2500_v37 }
  0x46   : > { %2213 = vmatprep.mubr.msk.bf16.mxu1 %vm1279_vm3, %v2503_v38 }
  0x4b   : > { %2140 = vmatmul.mubr.msk.bf16.gmra.mrb[28].mxu0 %vm498_vm2, %v2502_v39 }
  0x4c   : > { %2143 = vmatprep.mubr.msk.bf16.mxu0 %vm498_vm2, %v2505_v40 }
  0x4d   : > { %2214 = vmatmul.mubr.msk.bf16.gmra.mrb[24].mxu1 %vm1279_vm3, %v2504_v41 }
  0x4e   : > { %2217 = vmatprep.mubr.msk.bf16.mxu1 %vm1279_vm3, %v2507_v42 }
  0x53   : > { %2144 = vmatmul.mubr.msk.bf16.gmra.mrb[32].mxu0 %vm498_vm2, %v2506_v43 }
  0x54   : > { %2147 = vmatprep.mubr.msk.bf16.mxu0 %vm498_vm2, %v2509_v44 }
  0x55   : > { %2218 = vmatmul.mubr.msk.bf16.gmra.mrb[28].mxu1 %vm1279_vm3, %v2508_v45 }
  0x56   : > { %2221 = vmatprep.mubr.msk.bf16.mxu1 %vm1279_vm3, %v2511_v46 }
  0x5b   : > { %2148 = vmatmul.mubr.msk.bf16.gmra.mrb[36].mxu0 %vm498_vm2, %v2510_v47 }
  0x5c   : > { %2151 = vmatprep.mubr.msk.bf16.mxu0 %vm498_vm2, %v2513_v48 }
  0x5d   : > { %2222 = vmatmul.mubr.msk.bf16.gmra.mrb[32].mxu1 %vm1279_vm3, %v2512_v49 }
  0x5e   : > { %2225 = vmatprep.mubr.msk.bf16.mxu1 %vm1279_vm3, %v2515_v50 }
  0x63   : > { %2152 = vmatmul.mubr.msk.bf16.gmra.mrb[40].mxu0 %vm498_vm2, %v2514_v51 }
  0x64   : > { %2155 = vmatprep.mubr.msk.bf16.mxu0 %vm498_vm2, %v2517_v52 }
  0x65   : > { %2226 = vmatmul.mubr.msk.bf16.gmra.mrb[36].mxu1 %vm1279_vm3, %v2516_v53 }
  0x66   : > { %2229 = vmatprep.mubr.msk.bf16.mxu1 %vm1279_vm3, %v2519_v54 }
  0x6b   : > { %2156 = vmatmul.mubr.msk.bf16.gmra.mrb[44].mxu0 %vm498_vm2, %v2518_v55 }
  0x6c   : > { %2159 = vmatprep.mubr.msk.bf16.mxu0 %vm498_vm2, %v2521_v56 }
  0x6d   : > { %2230 = vmatmul.mubr.msk.bf16.gmra.mrb[40].mxu1 %vm1279_vm3, %v2520_v57 }
  0x6e   : > { %2233 = vmatprep.mubr.msk.bf16.mxu1 %vm1279_vm3, %v2523_v58 }
  0x73   : > { %2160 = vmatmul.mubr.msk.bf16.gmra.mrb[48].mxu0 %vm498_vm2, %v2522_v59 }
  0x74   : > { %2163 = vmatprep.mubr.msk.bf16.mxu0 %vm498_vm2, %v2525_v60 }
  0x75   : > { %2234 = vmatmul.mubr.msk.bf16.gmra.mrb[44].mxu1 %vm1279_vm3, %v2524_v61 }
  0x76   : > { %2237 = vmatprep.mubr.msk.bf16.mxu1 %vm1279_vm3, %v2527_v62 }
  0x7b   : > { %2164 = vmatmul.mubr.msk.bf16.gmra.mrb[52].mxu0 %vm498_vm2, %v2526_v63 }
  0x7c   : > { %2167 = vmatprep.mubr.msk.bf16.mxu0 %vm498_vm2, %v2529_v0 }
  0x7d   : > { %2238 = vmatmul.mubr.msk.bf16.gmra.mrb[48].mxu1 %vm1279_vm3, %v2528_v1 }
  0x7e   : > { %2241 = vmatprep.mubr.msk.bf16.mxu1 %vm1279_vm3, %v2531_v2 }
  0x83   : > { %2168 = vmatmul.mubr.msk.bf16.gmra.mrb[56].mxu0 %vm498_vm2, %v2530_v3 }
  0x84   : > { %2171 = vmatprep.mubr.msk.bf16.mxu0 %vm498_vm2, %v2533_v4 }
  0x85   : > { %2242 = vmatmul.mubr.msk.bf16.gmra.mrb[52].mxu1 %vm1279_vm3, %v2532_v5 }
  0x86   : > { %2245 = vmatprep.mubr.msk.bf16.mxu1 %vm1279_vm3, %v2535_v6 }
  0x8b   : > { %2172 = vmatmul.mubr.msk.bf16.gmra.mrb[60].mxu0 %vm498_vm2, %v2534_v7 }
  0x8c   : > { %2185 = vmatprep.mubr.msk.bf16.mxu0 %vm1279_vm3, %v2537_v8 }
  0x8d   : > { %2246 = vmatmul.mubr.msk.bf16.gmra.mrb[56].mxu1 %vm1279_vm3, %v2536_v9 }
  0x93   : > { %2186 = vmatmul.mubr.msk.bf16.vlgmr.msra.gmra.mrb[0].mxu0 %vm1279_vm3, %v2538_v10 }
  0xee   : > { %v2117_v11 = vpop.f32.mrb[4].mxu0 }
  0xef   : > { %v652_v12 = vpop.f32.mrb[5].mxu0 }
  0xf0   : > { %v2118_v13 = vpop.f32.mrb[6].mxu0  ;;  %v2191_v14 = vpop.f32.mrb[0].mxu1 }
  0xf1   : > { %v655_v15 = vpop.f32.mrb[7].mxu0  ;;  %v2261_v16 = vadd.f32 %v2191_v14, %v2117_v11  ;;  %v1430_v17 = vpop.f32.mrb[1].mxu1 }
  0xf2   : > { %v2264_v18 = vadd.f32 %v1430_v17, %v652_v12  ;;  %v2192_v19 = vpop.f32.mrb[2].mxu1 }
  0xf3   : > { %1739 = vst [vmem:[%s2773_s19 + $0x30] sm:$0xff] %v2261_v16  ;;  %v2267_v20 = vadd.f32 %v2192_v19, %v2118_v13  ;;  %v1433_v21 = vpop.f32.mrb[3].mxu1 }
  0xf4   : > { %1737 = vst [vmem:[%s2773_s19 + $0x20] sm:$0xff] %v2264_v18  ;;  %v2270_v22 = vadd.f32 %v1433_v21, %v655_v15 }
  0xf5   : > { %1740 = vst [vmem:[%s2773_s19 + $0x38] sm:$0xff] %v2267_v20 }
  0xf6   : > { %v2121_v23 = vpop.f32.mrb[8].mxu0  ;;  %1738 = vst [vmem:[%s2773_s19 + $0x28] sm:$0xff] %v2270_v22 }
  0xf7   : > { %v668_v24 = vpop.f32.mrb[9].mxu0 }
  0xf8   : > { %v2122_v25 = vpop.f32.mrb[10].mxu0  ;;  %v2195_v26 = vpop.f32.mrb[4].mxu1 }
  0xf9   : > { %v671_v27 = vpop.f32.mrb[11].mxu0  ;;  %v2273_v28 = vadd.f32 %v2195_v26, %v2121_v23  ;;  %v1446_v29 = vpop.f32.mrb[5].mxu1 }
  0xfa   : > { %v2276_v30 = vadd.f32 %v1446_v29, %v668_v24  ;;  %v2196_v31 = vpop.f32.mrb[6].mxu1 }
  0xfb   : > { %1743 = vst [vmem:[%s2773_s19 + $0x50] sm:$0xff] %v2273_v28  ;;  %v2279_v32 = vadd.f32 %v2196_v31, %v2122_v25  ;;  %v1449_v33 = vpop.f32.mrb[7].mxu1 }
  0xfc   : > { %1741 = vst [vmem:[%s2773_s19 + $0x40] sm:$0xff] %v2276_v30  ;;  %v2282_v34 = vadd.f32 %v1449_v33, %v671_v27 }
  0xfd   : > { %1744 = vst [vmem:[%s2773_s19 + $0x58] sm:$0xff] %v2279_v32 }
  0xfe   : > { %v2125_v35 = vpop.f32.mrb[12].mxu0  ;;  %1742 = vst [vmem:[%s2773_s19 + $0x48] sm:$0xff] %v2282_v34 }
  0xff   : > { %v684_v36 = vpop.f32.mrb[13].mxu0 }
 0x100   : > { %v2126_v37 = vpop.f32.mrb[14].mxu0  ;;  %v2199_v38 = vpop.f32.mrb[8].mxu1 }
 0x101   : > { %v687_v39 = vpop.f32.mrb[15].mxu0  ;;  %v2285_v40 = vadd.f32 %v2199_v38, %v2125_v35  ;;  %v1462_v41 = vpop.f32.mrb[9].mxu1 }
 0x102   : > { %v2288_v42 = vadd.f32 %v1462_v41, %v684_v36  ;;  %v2200_v43 = vpop.f32.mrb[10].mxu1 }
 0x103   : > { %1747 = vst [vmem:[%s2773_s19 + $0x70] sm:$0xff] %v2285_v40  ;;  %v2291_v44 = vadd.f32 %v2200_v43, %v2126_v37  ;;  %v1465_v45 = vpop.f32.mrb[11].mxu1 }
 0x104   : > { %1745 = vst [vmem:[%s2773_s19 + $0x60] sm:$0xff] %v2288_v42  ;;  %v2294_v46 = vadd.f32 %v1465_v45, %v687_v39 }
 0x105   : > { %1748 = vst [vmem:[%s2773_s19 + $0x78] sm:$0xff] %v2291_v44 }
 0x106   : > { %v2129_v47 = vpop.f32.mrb[16].mxu0  ;;  %1746 = vst [vmem:[%s2773_s19 + $0x68] sm:$0xff] %v2294_v46 }
 0x107   : > { %v700_v48 = vpop.f32.mrb[17].mxu0 }
 0x108   : > { %v2130_v49 = vpop.f32.mrb[18].mxu0  ;;  %v2203_v50 = vpop.f32.mrb[12].mxu1 }
 0x109   : > { %v703_v51 = vpop.f32.mrb[19].mxu0  ;;  %v2297_v52 = vadd.f32 %v2203_v50, %v2129_v47  ;;  %v1478_v53 = vpop.f32.mrb[13].mxu1 }
 0x10a   : > { %v2300_v54 = vadd.f32 %v1478_v53, %v700_v48  ;;  %v2204_v55 = vpop.f32.mrb[14].mxu1 }
 0x10b   : > { %1751 = vst [vmem:[%s2773_s19 + $0x90] sm:$0xff] %v2297_v52  ;;  %v2303_v56 = vadd.f32 %v2204_v55, %v2130_v49  ;;  %v1481_v57 = vpop.f32.mrb[15].mxu1 }
 0x10c   : > { %1749 = vst [vmem:[%s2773_s19 + $0x80] sm:$0xff] %v2300_v54  ;;  %v2306_v58 = vadd.f32 %v1481_v57, %v703_v51 }
 0x10d   : > { %1752 = vst [vmem:[%s2773_s19 + $0x98] sm:$0xff] %v2303_v56 }
 0x10e   : > { %v2133_v59 = vpop.f32.mrb[20].mxu0  ;;  %1750 = vst [vmem:[%s2773_s19 + $0x88] sm:$0xff] %v2306_v58 }
 0x10f   : > { %v716_v60 = vpop.f32.mrb[21].mxu0 }
 0x110   : > { %v2134_v61 = vpop.f32.mrb[22].mxu0  ;;  %v2207_v62 = vpop.f32.mrb[16].mxu1 }
 0x111   : > { %v719_v63 = vpop.f32.mrb[23].mxu0  ;;  %v2309_v0 = vadd.f32 %v2207_v62, %v2133_v59  ;;  %v1494_v1 = vpop.f32.mrb[17].mxu1 }
 0x112   : > { %v2312_v2 = vadd.f32 %v1494_v1, %v716_v60  ;;  %v2208_v3 = vpop.f32.mrb[18].mxu1 }
 0x113   : > { %1755 = vst [vmem:[%s2773_s19 + $0xb0] sm:$0xff] %v2309_v0  ;;  %v2315_v4 = vadd.f32 %v2208_v3, %v2134_v61  ;;  %v1497_v5 = vpop.f32.mrb[19].mxu1 }
 0x114   : > { %1753 = vst [vmem:[%s2773_s19 + $0xa0] sm:$0xff] %v2312_v2  ;;  %v2318_v6 = vadd.f32 %v1497_v5, %v719_v63 }
 0x115   : > { %1756 = vst [vmem:[%s2773_s19 + $0xb8] sm:$0xff] %v2315_v4 }
 0x116   : > { %v2137_v7 = vpop.f32.mrb[24].mxu0  ;;  %1754 = vst [vmem:[%s2773_s19 + $0xa8] sm:$0xff] %v2318_v6 }
 0x117   : > { %v732_v8 = vpop.f32.mrb[25].mxu0 }
 0x118   : > { %v2138_v9 = vpop.f32.mrb[26].mxu0  ;;  %v2211_v10 = vpop.f32.mrb[20].mxu1 }
 0x119   : > { %v735_v11 = vpop.f32.mrb[27].mxu0  ;;  %v2321_v12 = vadd.f32 %v2211_v10, %v2137_v7  ;;  %v1510_v13 = vpop.f32.mrb[21].mxu1 }
 0x11a   : > { %v2324_v14 = vadd.f32 %v1510_v13, %v732_v8  ;;  %v2212_v15 = vpop.f32.mrb[22].mxu1 }
 0x11b   : > { %1759 = vst [vmem:[%s2773_s19 + $0xd0] sm:$0xff] %v2321_v12  ;;  %v2327_v16 = vadd.f32 %v2212_v15, %v2138_v9  ;;  %v1513_v17 = vpop.f32.mrb[23].mxu1 }
 0x11c   : > { %1757 = vst [vmem:[%s2773_s19 + $0xc0] sm:$0xff] %v2324_v14  ;;  %v2330_v18 = vadd.f32 %v1513_v17, %v735_v11 }
 0x11d   : > { %1760 = vst [vmem:[%s2773_s19 + $0xd8] sm:$0xff] %v2327_v16 }
 0x11e   : > { %v2141_v19 = vpop.f32.mrb[28].mxu0  ;;  %1758 = vst [vmem:[%s2773_s19 + $0xc8] sm:$0xff] %v2330_v18 }
 0x11f   : > { %v748_v20 = vpop.f32.mrb[29].mxu0 }
 0x120   : > { %v2142_v21 = vpop.f32.mrb[30].mxu0  ;;  %v2215_v22 = vpop.f32.mrb[24].mxu1 }
 0x121   : > { %v751_v23 = vpop.f32.mrb[31].mxu0  ;;  %v2333_v24 = vadd.f32 %v2215_v22, %v2141_v19  ;;  %v1526_v25 = vpop.f32.mrb[25].mxu1 }
 0x122   : > { %v2336_v26 = vadd.f32 %v1526_v25, %v748_v20  ;;  %v2216_v27 = vpop.f32.mrb[26].mxu1 }
 0x123   : > { %1763 = vst [vmem:[%s2773_s19 + $0xf0] sm:$0xff] %v2333_v24  ;;  %v2339_v28 = vadd.f32 %v2216_v27, %v2142_v21  ;;  %v1529_v29 = vpop.f32.mrb[27].mxu1 }
 0x124   : > { %1761 = vst [vmem:[%s2773_s19 + $0xe0] sm:$0xff] %v2336_v26  ;;  %v2342_v30 = vadd.f32 %v1529_v29, %v751_v23 }
 0x125   : > { %1764 = vst [vmem:[%s2773_s19 + $0xf8] sm:$0xff] %v2339_v28 }
 0x126   : > { %v2145_v31 = vpop.f32.mrb[32].mxu0  ;;  %1762 = vst [vmem:[%s2773_s19 + $0xe8] sm:$0xff] %v2342_v30 }
 0x127   : > { %v764_v32 = vpop.f32.mrb[33].mxu0 }
 0x128   : > { %v2146_v33 = vpop.f32.mrb[34].mxu0  ;;  %v2219_v34 = vpop.f32.mrb[28].mxu1 }
 0x129   : > { %v767_v35 = vpop.f32.mrb[35].mxu0  ;;  %v2345_v36 = vadd.f32 %v2219_v34, %v2145_v31  ;;  %v1542_v37 = vpop.f32.mrb[29].mxu1 }
 0x12a   : > { %v2348_v38 = vadd.f32 %v1542_v37, %v764_v32  ;;  %v2220_v39 = vpop.f32.mrb[30].mxu1 }
 0x12b   : > { %1767 = vst [vmem:[%s2773_s19 + $0x110] sm:$0xff] %v2345_v36  ;;  %v2351_v40 = vadd.f32 %v2220_v39, %v2146_v33  ;;  %v1545_v41 = vpop.f32.mrb[31].mxu1 }
 0x12c   : > { %1765 = vst [vmem:[%s2773_s19 + $0x100] sm:$0xff] %v2348_v38  ;;  %v2354_v42 = vadd.f32 %v1545_v41, %v767_v35 }
 0x12d   : > { %1768 = vst [vmem:[%s2773_s19 + $0x118] sm:$0xff] %v2351_v40 }
 0x12e   : > { %v2149_v43 = vpop.f32.mrb[36].mxu0  ;;  %1766 = vst [vmem:[%s2773_s19 + $0x108] sm:$0xff] %v2354_v42 }
 0x12f   : > { %v780_v44 = vpop.f32.mrb[37].mxu0 }
 0x130   : > { %v2150_v45 = vpop.f32.mrb[38].mxu0  ;;  %v2223_v46 = vpop.f32.mrb[32].mxu1 }
 0x131   : > { %v783_v47 = vpop.f32.mrb[39].mxu0  ;;  %v2357_v48 = vadd.f32 %v2223_v46, %v2149_v43  ;;  %v1558_v49 = vpop.f32.mrb[33].mxu1 }
 0x132   : > { %v2360_v50 = vadd.f32 %v1558_v49, %v780_v44  ;;  %v2224_v51 = vpop.f32.mrb[34].mxu1 }
 0x133   : > { %1771 = vst [vmem:[%s2773_s19 + $0x130] sm:$0xff] %v2357_v48  ;;  %v2363_v52 = vadd.f32 %v2224_v51, %v2150_v45  ;;  %v1561_v53 = vpop.f32.mrb[35].mxu1 }
 0x134   : > { %1769 = vst [vmem:[%s2773_s19 + $0x120] sm:$0xff] %v2360_v50  ;;  %v2366_v54 = vadd.f32 %v1561_v53, %v783_v47 }
 0x135   : > { %1772 = vst [vmem:[%s2773_s19 + $0x138] sm:$0xff] %v2363_v52 }
 0x136   : > { %v2153_v55 = vpop.f32.mrb[40].mxu0  ;;  %1770 = vst [vmem:[%s2773_s19 + $0x128] sm:$0xff] %v2366_v54 }
 0x137   : > { %v796_v56 = vpop.f32.mrb[41].mxu0 }
 0x138   : > { %v2154_v57 = vpop.f32.mrb[42].mxu0  ;;  %v2227_v58 = vpop.f32.mrb[36].mxu1 }
 0x139   : > { %v799_v59 = vpop.f32.mrb[43].mxu0  ;;  %v2369_v60 = vadd.f32 %v2227_v58, %v2153_v55  ;;  %v1574_v61 = vpop.f32.mrb[37].mxu1 }
 0x13a   : > { %v2372_v62 = vadd.f32 %v1574_v61, %v796_v56  ;;  %v2228_v63 = vpop.f32.mrb[38].mxu1 }
 0x13b   : > { %1775 = vst [vmem:[%s2773_s19 + $0x150] sm:$0xff] %v2369_v60  ;;  %v2375_v0 = vadd.f32 %v2228_v63, %v2154_v57  ;;  %v1577_v1 = vpop.f32.mrb[39].mxu1 }
 0x13c   : > { %1773 = vst [vmem:[%s2773_s19 + $0x140] sm:$0xff] %v2372_v62  ;;  %v2378_v2 = vadd.f32 %v1577_v1, %v799_v59 }
 0x13d   : > { %1776 = vst [vmem:[%s2773_s19 + $0x158] sm:$0xff] %v2375_v0 }
 0x13e   : > { %v2157_v3 = vpop.f32.mrb[44].mxu0  ;;  %1774 = vst [vmem:[%s2773_s19 + $0x148] sm:$0xff] %v2378_v2 }
 0x13f   : > { %v812_v4 = vpop.f32.mrb[45].mxu0 }
 0x140   : > { %v2158_v5 = vpop.f32.mrb[46].mxu0  ;;  %v2231_v6 = vpop.f32.mrb[40].mxu1 }
 0x141   : > { %v815_v7 = vpop.f32.mrb[47].mxu0  ;;  %v2381_v8 = vadd.f32 %v2231_v6, %v2157_v3  ;;  %v1590_v9 = vpop.f32.mrb[41].mxu1 }
 0x142   : > { %v2384_v10 = vadd.f32 %v1590_v9, %v812_v4  ;;  %v2232_v11 = vpop.f32.mrb[42].mxu1 }
 0x143   : > { %1779 = vst [vmem:[%s2773_s19 + $0x170] sm:$0xff] %v2381_v8  ;;  %v2387_v12 = vadd.f32 %v2232_v11, %v2158_v5  ;;  %v1593_v13 = vpop.f32.mrb[43].mxu1 }
 0x144   : > { %1777 = vst [vmem:[%s2773_s19 + $0x160] sm:$0xff] %v2384_v10  ;;  %v2390_v14 = vadd.f32 %v1593_v13, %v815_v7 }
 0x145   : > { %1780 = vst [vmem:[%s2773_s19 + $0x178] sm:$0xff] %v2387_v12 }
 0x146   : > { %v2161_v15 = vpop.f32.mrb[48].mxu0  ;;  %1778 = vst [vmem:[%s2773_s19 + $0x168] sm:$0xff] %v2390_v14 }
 0x147   : > { %v828_v16 = vpop.f32.mrb[49].mxu0 }
 0x148   : > { %v2162_v17 = vpop.f32.mrb[50].mxu0  ;;  %v2235_v18 = vpop.f32.mrb[44].mxu1 }
 0x149   : > { %v831_v19 = vpop.f32.mrb[51].mxu0  ;;  %v2393_v20 = vadd.f32 %v2235_v18, %v2161_v15  ;;  %v1606_v21 = vpop.f32.mrb[45].mxu1 }
 0x14a   : > { %v2396_v22 = vadd.f32 %v1606_v21, %v828_v16  ;;  %v2236_v23 = vpop.f32.mrb[46].mxu1 }
 0x14b   : > { %1783 = vst [vmem:[%s2773_s19 + $0x190] sm:$0xff] %v2393_v20  ;;  %v2399_v24 = vadd.f32 %v2236_v23, %v2162_v17  ;;  %v1609_v25 = vpop.f32.mrb[47].mxu1 }
 0x14c   : > { %1781 = vst [vmem:[%s2773_s19 + $0x180] sm:$0xff] %v2396_v22  ;;  %v2402_v26 = vadd.f32 %v1609_v25, %v831_v19 }
 0x14d   : > { %1784 = vst [vmem:[%s2773_s19 + $0x198] sm:$0xff] %v2399_v24 }
 0x14e   : > { %v2165_v27 = vpop.f32.mrb[52].mxu0  ;;  %1782 = vst [vmem:[%s2773_s19 + $0x188] sm:$0xff] %v2402_v26 }
 0x14f   : > { %v844_v28 = vpop.f32.mrb[53].mxu0 }
 0x150   : > { %v2166_v29 = vpop.f32.mrb[54].mxu0  ;;  %v2239_v30 = vpop.f32.mrb[48].mxu1 }
 0x151   : > { %v847_v31 = vpop.f32.mrb[55].mxu0  ;;  %v2405_v32 = vadd.f32 %v2239_v30, %v2165_v27  ;;  %v1622_v33 = vpop.f32.mrb[49].mxu1 }
 0x152   : > { %v2408_v34 = vadd.f32 %v1622_v33, %v844_v28  ;;  %v2240_v35 = vpop.f32.mrb[50].mxu1 }
 0x153   : > { %1787 = vst [vmem:[%s2773_s19 + $0x1b0] sm:$0xff] %v2405_v32  ;;  %v2411_v36 = vadd.f32 %v2240_v35, %v2166_v29  ;;  %v1625_v37 = vpop.f32.mrb[51].mxu1 }
 0x154   : > { %1785 = vst [vmem:[%s2773_s19 + $0x1a0] sm:$0xff] %v2408_v34  ;;  %v2414_v38 = vadd.f32 %v1625_v37, %v847_v31 }
 0x155   : > { %1788 = vst [vmem:[%s2773_s19 + $0x1b8] sm:$0xff] %v2411_v36 }
 0x156   : > { %v2169_v39 = vpop.f32.mrb[56].mxu0  ;;  %1786 = vst [vmem:[%s2773_s19 + $0x1a8] sm:$0xff] %v2414_v38 }
 0x157   : > { %v860_v40 = vpop.f32.mrb[57].mxu0 }
 0x158   : > { %v2170_v41 = vpop.f32.mrb[58].mxu0  ;;  %v2243_v42 = vpop.f32.mrb[52].mxu1 }
 0x159   : > { %v863_v43 = vpop.f32.mrb[59].mxu0  ;;  %v2417_v44 = vadd.f32 %v2243_v42, %v2169_v39  ;;  %v1638_v45 = vpop.f32.mrb[53].mxu1 }
 0x15a   : > { %v2420_v46 = vadd.f32 %v1638_v45, %v860_v40  ;;  %v2244_v47 = vpop.f32.mrb[54].mxu1 }
 0x15b   : > { %1791 = vst [vmem:[%s2773_s19 + $0x1d0] sm:$0xff] %v2417_v44  ;;  %v2423_v48 = vadd.f32 %v2244_v47, %v2170_v41  ;;  %v1641_v49 = vpop.f32.mrb[55].mxu1 }
 0x15c   : > { %1789 = vst [vmem:[%s2773_s19 + $0x1c0] sm:$0xff] %v2420_v46  ;;  %v2426_v50 = vadd.f32 %v1641_v49, %v863_v43 }
 0x15d   : > { %1792 = vst [vmem:[%s2773_s19 + $0x1d8] sm:$0xff] %v2423_v48 }
 0x15e   : > { %v2173_v51 = vpop.f32.mrb[60].mxu0  ;;  %1790 = vst [vmem:[%s2773_s19 + $0x1c8] sm:$0xff] %v2426_v50 }
 0x15f   : > { %v876_v52 = vpop.f32.mrb[61].mxu0 }
 0x160   : > { %v2174_v53 = vpop.f32.mrb[62].mxu0  ;;  %v2247_v54 = vpop.f32.mrb[56].mxu1 }
 0x161   : > { %v879_v55 = vpop.f32.mrb[63].mxu0  ;;  %v2429_v56 = vadd.f32 %v2247_v54, %v2173_v51  ;;  %v1654_v57 = vpop.f32.mrb[57].mxu1 }
 0x162   : > { %v2432_v58 = vadd.f32 %v1654_v57, %v876_v52  ;;  %v2248_v59 = vpop.f32.mrb[58].mxu1 }
 0x163   : > { %1795 = vst [vmem:[%s2773_s19 + $0x1f0] sm:$0xff] %v2429_v56  ;;  %v2435_v60 = vadd.f32 %v2248_v59, %v2174_v53  ;;  %v1657_v61 = vpop.f32.mrb[59].mxu1 }
 0x164   : > { %1793 = vst [vmem:[%s2773_s19 + $0x1e0] sm:$0xff] %v2432_v58  ;;  %v2438_v62 = vadd.f32 %v1657_v61, %v879_v55 }
 0x165   : > { %1796 = vst [vmem:[%s2773_s19 + $0x1f8] sm:$0xff] %v2435_v60 }
 0x166   : > { %v2187_v63 = vpop.f32.mrb[0].mxu0  ;;  %1794 = vst [vmem:[%s2773_s19 + $0x1e8] sm:$0xff] %v2438_v62 }
 0x167   : > { %1735 = vst [vmem:[%s2773_s19 + $0x10] sm:$0xff] %v2187_v63  ;;  %v1414_v0 = vpop.f32.mrb[1].mxu0 }
 0x168   : > { %1733 = vst [vmem:[%s2773_s19] sm:$0xff] %v1414_v0  ;;  %v2188_v1 = vpop.f32.mrb[2].mxu0 }
 0x169   : > { %1736 = vst [vmem:[%s2773_s19 + $0x18] sm:$0xff] %v2188_v1  ;;  %v1417_v2 = vpop.f32.mrb[3].mxu0 }
 0x16a   : > { %1734 = vst [vmem:[%s2773_s19 + $0x8] sm:$0xff] %v1417_v2 }
 0x16b PF: > { %s14_s17 = sadd.s32 1, %s2561_s17   ;;  %s2853_s15 = smov %s2557_s16 }
 0x16c   : > { %p11_p5 = scmp.ge.s32.totalorder %s14_s17, 6   ;;  %s2854_s16 = smov %s2856_s18 }
 0x16e   :  { %13 = sbr.rel (!%p11_p5) target bundleno = 2 (0x2), region = 76 }

</bundles_post_ra>
